<compile_context>
chip_gen: v5e
topology: v5e:2x2
jax: 0.10.0
libtpu: 0.0.40
codegen_flags: <defaults>
</compile_context>

<pallas_src>
import math
import functools

import jax
import jax.numpy as jnp
import numpy as np
from jax.experimental import pallas as pl
from jax.experimental.pallas import tpu as pltpu


def _prelu(x, a):
    return jnp.where(x > 0, x, a * x)


def decomposable_attention_kernel(
    alphas_ref,                       # SMEM (6,) PReLU slopes
    a_emb_ref, b_emb_ref,             # (TB, S, E)  compute dtype
    p_ref,                            # (1, S, E)   f32 positional encoding
    w_sq_ref,                         # (4, E, E)   [w1, w2, wg3, wh3]
    w_in2h_ref,                       # (4, E, 2H)  [wg1a, wg1b, wh1a, wh1b]
    w_2h_h_ref,                       # (2, 2H, H)  [wg2, wh2]
    wo_ref,                           # (H, 3)
    bias_ref,                         # (9, maxF)   f32 padded biases
    mask_ref,                         # (R, R)      f32 additive block-diag mask
    y_ref,                            # (TB, 3)
    *, scale, compute_dtype, approx_recip):
    f32 = jnp.float32
    cdt = compute_dtype

    TB, S, E = a_emb_ref.shape
    twoH = w_in2h_ref.shape[-1]
    H = twoH // 2
    R = 2 * TB * S                    # stacked-batch row count (A rows then B rows)
    half = TB * S

    def mm(x_c, w):                   # MXU matmul, f32 accumulation
        return jnp.dot(x_c, w, preferred_element_type=f32)

    def softmax_last(x):
        m = jnp.max(x, axis=-1, keepdims=True)
        e = jnp.exp(x - m)
        s = jnp.sum(e, axis=-1, keepdims=True)
        if approx_recip:
            return e * pl.reciprocal(s, approx=True)     # EUP vrcp, off the VALU
        return e / s

    # Padded bias rows: [b1, b2, bg1, bg2, bg3, bh1, bh2, bh3, bo]
    b1  = bias_ref[0:1, :E]
    b2  = bias_ref[1:2, :E]
    bg1 = bias_ref[2:3, :twoH]
    bg2 = bias_ref[3:4, :H]
    bg3 = bias_ref[4:5, :H]
    bh1 = bias_ref[5:6, :twoH]
    bh2 = bias_ref[6:7, :H]
    bh3 = bias_ref[7:8, :H]
    bo  = bias_ref[8:9, :y_ref.shape[-1]]

    a1 = alphas_ref[0]; a2 = alphas_ref[1]; a3 = alphas_ref[2]
    a4 = alphas_ref[3]; a5 = alphas_ref[4]; a6 = alphas_ref[5]

    # embedding * sqrt(num_hiddens) + positional encoding (dropout = identity),
    # A/B stacked along the batch axis and flattened to one (R, E) slab.
    A  = a_emb_ref[...].astype(f32) * scale + p_ref[...]
    Bm = b_emb_ref[...].astype(f32) * scale + p_ref[...]
    AB = jnp.concatenate([A, Bm], axis=0).reshape(R, E)
    AB_c = AB.astype(cdt)             # cast once; reused by Attend / ctx / Compare

    # ---- Attend: shared PositionWiseFFN over the stacked batch -------------
    h   = jnp.maximum(mm(AB_c, w_sq_ref[0]) + b1, 0.0)
    fAB = mm(h.astype(cdt), w_sq_ref[1]) + b2
    fc  = fAB.astype(cdt)             # cast once; both gram operands

    # ---- Block-diagonal gram + masked full-width softmax + context ---------
    # Each per-batch gram f(X) @ f(X)^T is bitwise symmetric (same operand,
    # same k-order), so softmax(G.permute(0,2,1), -1) == softmax(G, -1) and no
    # in-kernel transpose is needed.  The additive mask keeps only the SxS
    # diagonal blocks, so one (R,R) softmax reproduces the 2*TB batched ones.
    gram = jnp.einsum('ie,je->ij', fc, fc, preferred_element_type=f32)   # (R, R)
    attn = softmax_last(gram + mask_ref[...])
    ctx = mm(attn.astype(cdt), AB_c)                                     # (R, E)
    # ctx rows: [:half] = alpha (A with A-gram), [half:] = beta (B with B-gram);
    # Compare needs [A|beta ; B|alpha] -> swap halves of the flat 2D slab.
    # TODO(synk): swap via pltpu.roll (XLU sublane rotate) once validated
    # on-target; at R<=256 the slice+concat copy is negligible.
    ctx_sw_c = jnp.concatenate([ctx[half:], ctx[:half]], axis=0).astype(cdt)

    # ---- Compare (mlp g, flatten=False; dropouts = identity) ---------------
    # Row-split dense1: x1 @ W[:k] + x2 @ W[k:] == concat([x1, x2]) @ W.
    hg = _prelu(mm(AB_c, w_in2h_ref[0]) + mm(ctx_sw_c, w_in2h_ref[1]) + bg1, a1)
    hg = _prelu(mm(hg.astype(cdt), w_2h_h_ref[0]) + bg2, a2)
    V  = _prelu(mm(hg.astype(cdt), w_sq_ref[2]) + bg3, a3)               # (R, H)

    # ---- Aggregate ----------------------------------------------------------
    vab = jnp.sum(V.reshape(2 * TB, S, H), axis=1)                       # (2TB, H)
    va = vab[:TB].astype(cdt)
    vb = vab[TB:].astype(cdt)
    hh = _prelu(mm(va, w_in2h_ref[2]) + mm(vb, w_in2h_ref[3]) + bh1, a4)
    hh = _prelu(mm(hh.astype(cdt), w_2h_h_ref[1]) + bh2, a5)
    hh = _prelu(mm(hh.astype(cdt), w_sq_ref[3]) + bh3, a6)
    y = mm(hh.astype(cdt), wo_ref[...]) + bo
    y_ref[...] = y.astype(y_ref.dtype)


# ------------------------------ glue / wrapper -------------------------------

def positional_encoding(max_len, num_hiddens):
    pos = jnp.arange(max_len, dtype=jnp.float32)[:, None]
    div = jnp.power(10000.0,
                    jnp.arange(0, num_hiddens, 2, dtype=jnp.float32) / num_hiddens)
    ang = pos / div
    P = jnp.zeros((max_len, num_hiddens), jnp.float32)
    P = P.at[:, 0::2].set(jnp.sin(ang)).at[:, 1::2].set(jnp.cos(ang))
    return P[None]                                  # (1, max_len, H)


def build_params(key, vocab_size, embed_size, num_hiddens):
    E, H = embed_size, num_hiddens
    keys = jax.random.split(key, 16)

    def lin(k, fan_in, fan_out):
        bound = 1.0 / math.sqrt(fan_in)
        kw, kb = jax.random.split(k)
        w = jax.random.uniform(kw, (fan_in, fan_out), jnp.float32, -bound, bound)
        b = jax.random.uniform(kb, (1, fan_out), jnp.float32, -bound, bound)
        return w, b

    p = {}
    p['embedding'] = jax.random.normal(keys[0], (vocab_size, E), jnp.float32)
    p['w1'],  p['b1']  = lin(keys[1], E, E)          # Attend FFN dense1
    p['w2'],  p['b2']  = lin(keys[2], E, E)          # Attend FFN dense2
    p['wg1'], p['bg1'] = lin(keys[3], 2 * E, 2 * H)  # Compare g
    p['wg2'], p['bg2'] = lin(keys[4], 2 * H, H)
    p['wg3'], p['bg3'] = lin(keys[5], H, H)
    p['wh1'], p['bh1'] = lin(keys[6], 2 * H, 2 * H)  # Aggregate h
    p['wh2'], p['bh2'] = lin(keys[7], 2 * H, H)
    p['wh3'], p['bh3'] = lin(keys[8], H, H)
    p['wo'],  p['bo']  = lin(keys[9], H, 3)          # Aggregate output linear
    p['alphas'] = jnp.full((6,), 0.25, jnp.float32)  # PReLU slopes (torch default)
    return p


def _resident_spec(arr):
    zeros = (0,) * arr.ndim
    return pl.BlockSpec(arr.shape, lambda i, _z=zeros: _z)


def _cost_estimate(TB, S, E, H, num_blocks, emb_itemsize):
    R = 2 * TB * S
    flops = 2 * R * E * E * 2                      # Attend FFN (two ExE layers)
    flops += 2 * R * R * E * 2                     # block-diag gram + context
    flops += 2 * R * (2 * E) * (2 * H)             # Compare dense1 (row-split)
    flops += 2 * R * (2 * H) * H + 2 * R * H * H
    flops += 2 * TB * ((2 * H) * (2 * H) + (2 * H) * H + H * H + H * 3)
    transcendentals = R * R + R                    # exp + softmax reciprocal
    bytes_accessed = (2 * TB * S * E * emb_itemsize + S * E * 4 + TB * 3 * 4
                      + R * R * 4
                      + 2 * (4 * E * E + 4 * E * 2 * H + 2 * 2 * H * H
                             + H * 3 + 9 * max(E, 2 * H, 3)))
    return pl.CostEstimate(flops=int(flops) * num_blocks,
                           transcendentals=int(transcendentals) * num_blocks,
                           bytes_accessed=int(bytes_accessed) * num_blocks)


def decomposable_attention(params, premises, hypotheses, num_hiddens, *,
                           batch_tile=None, compute_dtype=jnp.bfloat16,
                           approx_recip=True):
    emb = params['embedding']
    E = emb.shape[1]
    H = num_hiddens
    assert E == H, "pos-encoding broadcast requires embed_size == num_hiddens"
    Bt, S = premises.shape
    cdt = compute_dtype

    # Batch tile: default is a single grid step (best on the 1-TC v5e/v6e where
    # the grid is a serial loop); pass batch_tile=Bt//2 on v7x for exactly one
    # "parallel" step per TensorCore.  Output block (TB, 3) needs TB % 8 == 0
    # (sublane) unless TB == Bt.
    TB = Bt if batch_tile is None else batch_tile
    if TB >= Bt or Bt % TB != 0 or TB % 8 != 0:
        TB = Bt
    num_blocks = Bt // TB
    R = 2 * TB * S

    # Embedding gather stays in XLA glue (tiny E); the slabs are handed to the
    # kernel already in the compute dtype (halves the only big HBM->VMEM DMAs
    # on the bf16 path).  scale*emb + P is done in f32 inside the kernel.
    # TODO(synk): fold the gather in-kernel (scalar-prefetched token ids +
    # pl.Element row blocks) to save one HBM round-trip of the activations.
    A_emb = jnp.take(emb, premises, axis=0).astype(cdt)
    B_emb = jnp.take(emb, hypotheses, axis=0).astype(cdt)
    P = positional_encoding(max(64, S), E)[:, :S, :]
    scale = math.sqrt(float(num_hiddens))

    # Stacked / row-split weights: x1 @ W[:k] + x2 @ W[k:] == concat([x1,x2]) @ W
    # (no lane-axis concatenation); same-shape matrices share one operand so the
    # in_spec count drops from ~24 to 10.
    wg1a, wg1b = params['wg1'][:E], params['wg1'][E:]
    wh1a, wh1b = params['wh1'][:H], params['wh1'][H:]
    w_sq   = jnp.stack([params['w1'], params['w2'],
                        params['wg3'], params['wh3']]).astype(cdt)   # (4,E,E)
    w_in2h = jnp.stack([wg1a, wg1b, wh1a, wh1b]).astype(cdt)         # (4,E,2H)
    w_2h_h = jnp.stack([params['wg2'], params['wh2']]).astype(cdt)   # (2,2H,H)
    wo     = params['wo'].astype(cdt)                                # (H,3)
    maxF = max(E, 2 * H, 3)

    def _pad(b):
        b = b.reshape(-1).astype(jnp.float32)
        return jnp.pad(b, (0, maxF - b.shape[0]))

    bias_stack = jnp.stack([_pad(params[k]) for k in
                            ('b1', 'b2', 'bg1', 'bg2', 'bg3',
                             'bh1', 'bh2', 'bh3', 'bo')])            # (9, maxF)

    # Additive block-diagonal softmax mask for the flattened (R, R) scores:
    # 0 inside each SxS batch block, -1e30 elsewhere (precomputed -> one VPU
    # add in-kernel, no vector integer division / iota compare needed).
    blk = np.arange(R) // S
    mask = jnp.asarray(np.where(blk[:, None] == blk[None, :], 0.0, -1e30),
                       dtype=jnp.float32)                            # (R, R)

    resident_ops = [w_sq, w_in2h, w_2h_h, wo, bias_stack, mask]

    emb_spec = pl.BlockSpec((TB, S, E), lambda i: (i, 0, 0))
    pe_spec = pl.BlockSpec((1, S, E), lambda i: (0, 0, 0))
    smem_spec = pl.BlockSpec(memory_space=pltpu.MemorySpace.SMEM)
    # TODO(synk): single-buffer the grid-invariant specs (pipeline_mode=
    # pl.Buffered(1)) to reclaim VMEM when E/H/TB scale up; irrelevant here.
    in_specs = ([smem_spec, emb_spec, emb_spec, pe_spec]
                + [_resident_spec(w) for w in resident_ops])
    out_specs = pl.BlockSpec((TB, 3), lambda i: (i, 0))

    grid_spec = pltpu.PrefetchScalarGridSpec(
        num_scalar_prefetch=0,
        grid=(num_blocks,),
        in_specs=in_specs,
        out_specs=out_specs,
    )

    # VMEM budget: double-buffered grid-varying blocks + resident operands +
    # in-kernel intermediates (incl. the (R,R) score/attention matrices) with
    # 2x margin, capped per-generation (v5e/v6e: 128 MiB, v7x: 64 MiB per TC).
    esz = jnp.dtype(cdt).itemsize
    act_bytes = 2 * (2 * TB * S * E * esz) + 2 * S * E * 4 + 2 * TB * 3 * 4
    w_bytes = 2 * sum(int(w.size) * w.dtype.itemsize for w in resident_ops)
    inter_bytes = R * R * (3 * 4 + esz) + 10 * R * (E + 2 * H) * 4
    try:
        vmem_cap = int(getattr(pltpu.get_tpu_info(), 'vmem_capacity_bytes',
                               64 << 20))
    except Exception:
        vmem_cap = 64 << 20
    vmem_limit = int(min(max(2 * (act_bytes + w_bytes + inter_bytes), 16 << 20),
                         (3 * vmem_cap) // 4))

    kernel = functools.partial(decomposable_attention_kernel, scale=scale,
                               compute_dtype=cdt, approx_recip=approx_recip)
    return pl.pallas_call(
        kernel,
        out_shape=jax.ShapeDtypeStruct((Bt, 3), jnp.float32),
        grid_spec=grid_spec,
        compiler_params=pltpu.CompilerParams(
            dimension_semantics=("parallel",),   # batch tiles -> both TCs on v7x
            vmem_limit_bytes=vmem_limit,
        ),
        cost_estimate=_cost_estimate(TB, S, E, H, num_blocks, esz),
    )(params['alphas'], A_emb, B_emb, P, *resident_ops)


# ------------------------------ references -----------------------------------

def decomposable_attention_reference(params, premises, hypotheses, num_hiddens):
    """Pure-JAX f32 mirror of the torch forward (eval mode), explicit transposes/concats."""
    E = params['embedding'].shape[1]
    Bt, S = premises.shape
    scale = math.sqrt(float(num_hiddens))
    P = positional_encoding(max(64, S), E)[:, :S, :]
    A  = jnp.take(params['embedding'], premises,  axis=0) * scale + P
    Bm = jnp.take(params['embedding'], hypotheses, axis=0) * scale + P

    def prelu(x, a): return jnp.where(x > 0, x, a * x)

    def ffn(x):
        h = jnp.maximum(x @ params['w1'] + params['b1'], 0.0)
        return h @ params['w2'] + params['b2']

    fA = ffn(A);  fA = jnp.einsum('bik,bjk->bij', fA, fA)
    fB = ffn(Bm); fB = jnp.einsum('bik,bjk->bij', fB, fB)
    beta  = jax.nn.softmax(jnp.swapaxes(fB, -1, -2), axis=-1) @ Bm
    alpha = jax.nn.softmax(jnp.swapaxes(fA, -1, -2), axis=-1) @ A

    al = params['alphas']

    def g(x):
        h = prelu(x @ params['wg1'] + params['bg1'], al[0])
        h = prelu(h @ params['wg2'] + params['bg2'], al[1])
        h = prelu(h @ params['wg3'] + params['bg3'], al[2])
        return h

    V_A = g(jnp.concatenate([A, beta], axis=2))
    V_B = g(jnp.concatenate([Bm, alpha], axis=2))
    x = jnp.concatenate([V_A.sum(1), V_B.sum(1)], axis=1)
    h = prelu(x @ params['wh1'] + params['bh1'], al[3])
    h = prelu(h @ params['wh2'] + params['bh2'], al[4])
    h = prelu(h @ params['wh3'] + params['bh3'], al[5])
    return h @ params['wo'] + params['bo']


def decomposable_attention_bf16_reference(params, premises, hypotheses, num_hiddens):
    """Pure-JAX mirror of the kernel's bf16 perf path (same cast points) so the
    bf16 kernel can be validated at a much tighter tolerance than vs f32."""
    f32, bf16 = jnp.float32, jnp.bfloat16
    E = params['embedding'].shape[1]; H = num_hiddens
    Bt, S = premises.shape
    R = 2 * Bt * S; half = Bt * S
    scale = math.sqrt(float(num_hiddens))
    P = positional_encoding(max(64, S), E)[:, :S, :]
    emb = params['embedding'].astype(bf16)
    A  = jnp.take(emb, premises,  axis=0).astype(f32) * scale + P
    Bm = jnp.take(emb, hypotheses, axis=0).astype(f32) * scale + P
    AB = jnp.concatenate([A, Bm], axis=0).reshape(R, E)

    c = lambda x: x.astype(bf16)
    mm = lambda x, w: jnp.dot(c(x), c(w), preferred_element_type=f32)
    prelu = lambda x, a: jnp.where(x > 0, x, a * x)
    al = params['alphas']

    h = jnp.maximum(mm(AB, params['w1']) + params['b1'], 0.0)
    fAB = mm(h, params['w2']) + params['b2']
    gram = jnp.dot(c(fAB), c(fAB).T, preferred_element_type=f32)
    blk = jnp.arange(R) // S
    masked = jnp.where(blk[:, None] == blk[None, :], gram, -1e30)
    attn = jax.nn.softmax(masked, axis=-1)
    ctx = mm(attn, AB)
    ctx_sw = jnp.concatenate([ctx[half:], ctx[:half]], axis=0)

    hg = prelu(mm(AB, params['wg1'][:E]) + mm(ctx_sw, params['wg1'][E:])
               + params['bg1'], al[0])
    hg = prelu(mm(hg, params['wg2']) + params['bg2'], al[1])
    V  = prelu(mm(hg, params['wg3']) + params['bg3'], al[2])
    vab = V.reshape(2 * Bt, S, H).sum(axis=1)
    va, vb = vab[:Bt], vab[Bt:]
    hh = prelu(mm(va, params['wh1'][:H]) + mm(vb, params['wh1'][H:])
               + params['bh1'], al[3])
    hh = prelu(mm(hh, params['wh2']) + params['bh2'], al[4])
    hh = prelu(mm(hh, params['wh3']) + params['bh3'], al[5])
    return mm(hh, params['wo']) + params['bo']


if __name__ == "__main__":
    # TODO(synk): nn.Dropout layers are treated as eval-mode identity (no in-kernel RNG masks).
    key = jax.random.PRNGKey(0)
    vocab_size, embed_size, num_hiddens = 64, 32, 32   # module's pos-encoding add requires embed_size == num_hiddens
    batch, seq = 16, 8

    kp, kpr, khy = jax.random.split(key, 3)
    params = build_params(kp, vocab_size, embed_size, num_hiddens)
    premises   = jax.random.randint(kpr, (batch, seq), 0, vocab_size, dtype=jnp.int32)
    hypotheses = jax.random.randint(khy, (batch, seq), 0, vocab_size, dtype=jnp.int32)

    y_expected = decomposable_attention_reference(params, premises, hypotheses, num_hiddens)
    y_expected = np.asarray(jax.block_until_ready(y_expected))

    # 1) f32 / exact-reciprocal path, single grid step (default TB = batch):
    #    validates the block-diagonal attention, operand stacking and weight
    #    splits tight against the pure-JAX reference.
    y_f32 = decomposable_attention(params, premises, hypotheses, num_hiddens,
                                   compute_dtype=jnp.float32, approx_recip=False)
    y_f32 = np.asarray(jax.block_until_ready(y_f32))
    np.testing.assert_allclose(y_f32, y_expected, rtol=1e-4, atol=1e-4)

    # 2) Same exact path with a 2-step batch-tiled grid (validates the grid
    #    index maps; this is also the v7x two-TensorCore configuration).
    y_f32_t = decomposable_attention(params, premises, hypotheses, num_hiddens,
                                     batch_tile=batch // 2,
                                     compute_dtype=jnp.float32, approx_recip=False)
    y_f32_t = np.asarray(jax.block_until_ready(y_f32_t))
    np.testing.assert_allclose(y_f32_t, y_expected, rtol=1e-4, atol=1e-4)

    # 3) Default perf path: bf16 MXU operands / bf16 embedding DMAs (f32
    #    accumulation) + EUP approx reciprocal in the softmax.  Checked tightly
    #    against a bf16-emulating JAX reference (same cast points), and loosely
    #    against the f32 reference for overall accuracy.
    y_bf16 = decomposable_attention(params, premises, hypotheses, num_hiddens)
    y_bf16 = np.asarray(jax.block_until_ready(y_bf16))
    y_bf16_ref = np.asarray(jax.block_until_ready(
        decomposable_attention_bf16_reference(params, premises, hypotheses, num_hiddens)))
    np.testing.assert_allclose(y_bf16, y_bf16_ref, rtol=3e-2, atol=3e-2)
    np.testing.assert_allclose(y_bf16, y_expected, rtol=2e-1, atol=2e-1)

    print("KERNEL_OK")
</pallas_src>

<mosaic_0001>
module attributes {stable_mosaic.version = 11 : i64} {
  func.func @decomposable_attention_kernel(%arg0: i32, %arg1: memref<6xf32, #tpu.memory_space<smem>>, %arg2: memref<16x8x32xf32, #tpu.memory_space<vmem>>, %arg3: memref<16x8x32xf32, #tpu.memory_space<vmem>>, %arg4: memref<1x8x32xf32, #tpu.memory_space<vmem>>, %arg5: memref<4x32x32xf32, #tpu.memory_space<vmem>>, %arg6: memref<4x32x64xf32, #tpu.memory_space<vmem>>, %arg7: memref<2x64x32xf32, #tpu.memory_space<vmem>>, %arg8: memref<32x3xf32, #tpu.memory_space<vmem>>, %arg9: memref<9x64xf32, #tpu.memory_space<vmem>>, %arg10: memref<256x256xf32, #tpu.memory_space<vmem>>, %arg11: memref<16x3xf32, #tpu.memory_space<vmem>>) attributes {dimension_semantics = [#tpu.dimension_semantics<parallel>], iteration_bounds = array<i64: 1>, scalar_prefetch = 0 : i64, scratch_operands = 0 : i64, tpu.core_type = #tpu.core_type<tc>, window_params = [{transform_indices = @transform_0, window_bounds = array<i64: 6>}, {transform_indices = @transform_1, window_bounds = array<i64: 16, 8, 32>}, {transform_indices = @transform_2, window_bounds = array<i64: 16, 8, 32>}, {pipeline_mode = #tpu.pipeline_mode<synchronous>, transform_indices = @transform_3, window_bounds = array<i64: 1, 8, 32>}, {pipeline_mode = #tpu.pipeline_mode<synchronous>, transform_indices = @transform_4, window_bounds = array<i64: 4, 32, 32>}, {pipeline_mode = #tpu.pipeline_mode<synchronous>, transform_indices = @transform_5, window_bounds = array<i64: 4, 32, 64>}, {pipeline_mode = #tpu.pipeline_mode<synchronous>, transform_indices = @transform_6, window_bounds = array<i64: 2, 64, 32>}, {pipeline_mode = #tpu.pipeline_mode<synchronous>, transform_indices = @transform_7, window_bounds = array<i64: 32, 3>}, {pipeline_mode = #tpu.pipeline_mode<synchronous>, transform_indices = @transform_8, window_bounds = array<i64: 9, 64>}, {pipeline_mode = #tpu.pipeline_mode<synchronous>, transform_indices = @transform_9, window_bounds = array<i64: 256, 256>}, {transform_indices = @transform_10, window_bounds = array<i64: 16, 3>}]} {
    %c0 = arith.constant 0 : index
    %c0_0 = arith.constant 0 : index
    %0 = vector.load %arg9[%c0, %c0_0] : memref<9x64xf32, #tpu.memory_space<vmem>>, vector<1x32xf32>
    %c1 = arith.constant 1 : index
    %c0_1 = arith.constant 0 : index
    %1 = vector.load %arg9[%c1, %c0_1] : memref<9x64xf32, #tpu.memory_space<vmem>>, vector<1x32xf32>
    %c2 = arith.constant 2 : index
    %c0_2 = arith.constant 0 : index
    %2 = vector.load %arg9[%c2, %c0_2] : memref<9x64xf32, #tpu.memory_space<vmem>>, vector<1x64xf32>
    %c3 = arith.constant 3 : index
    %c0_3 = arith.constant 0 : index
    %3 = vector.load %arg9[%c3, %c0_3] : memref<9x64xf32, #tpu.memory_space<vmem>>, vector<1x32xf32>
    %c4 = arith.constant 4 : index
    %c0_4 = arith.constant 0 : index
    %4 = vector.load %arg9[%c4, %c0_4] : memref<9x64xf32, #tpu.memory_space<vmem>>, vector<1x32xf32>
    %c5 = arith.constant 5 : index
    %c0_5 = arith.constant 0 : index
    %5 = vector.load %arg9[%c5, %c0_5] : memref<9x64xf32, #tpu.memory_space<vmem>>, vector<1x64xf32>
    %c6 = arith.constant 6 : index
    %c0_6 = arith.constant 0 : index
    %6 = vector.load %arg9[%c6, %c0_6] : memref<9x64xf32, #tpu.memory_space<vmem>>, vector<1x32xf32>
    %c7 = arith.constant 7 : index
    %c0_7 = arith.constant 0 : index
    %7 = vector.load %arg9[%c7, %c0_7] : memref<9x64xf32, #tpu.memory_space<vmem>>, vector<1x32xf32>
    %c8 = arith.constant 8 : index
    %c0_8 = arith.constant 0 : index
    %8 = vector.load %arg9[%c8, %c0_8] : memref<9x64xf32, #tpu.memory_space<vmem>>, vector<1x3xf32>
    %c0_9 = arith.constant 0 : index
    %9 = memref.load %arg1[%c0_9] : memref<6xf32, #tpu.memory_space<smem>>
    %c1_10 = arith.constant 1 : index
    %10 = memref.load %arg1[%c1_10] : memref<6xf32, #tpu.memory_space<smem>>
    %c2_11 = arith.constant 2 : index
    %11 = memref.load %arg1[%c2_11] : memref<6xf32, #tpu.memory_space<smem>>
    %c3_12 = arith.constant 3 : index
    %12 = memref.load %arg1[%c3_12] : memref<6xf32, #tpu.memory_space<smem>>
    %c4_13 = arith.constant 4 : index
    %13 = memref.load %arg1[%c4_13] : memref<6xf32, #tpu.memory_space<smem>>
    %c5_14 = arith.constant 5 : index
    %14 = memref.load %arg1[%c5_14] : memref<6xf32, #tpu.memory_space<smem>>
    %c0_15 = arith.constant 0 : index
    %c0_16 = arith.constant 0 : index
    %c0_17 = arith.constant 0 : index
    %15 = vector.load %arg2[%c0_15, %c0_16, %c0_17] : memref<16x8x32xf32, #tpu.memory_space<vmem>>, vector<16x8x32xf32>
    %cst = arith.constant 5.65685415 : f32
    %16 = vector.broadcast %cst : f32 to vector<16x8x32xf32>
    %17 = arith.mulf %15, %16 : vector<16x8x32xf32>
    %c0_18 = arith.constant 0 : index
    %c0_19 = arith.constant 0 : index
    %c0_20 = arith.constant 0 : index
    %18 = vector.load %arg4[%c0_18, %c0_19, %c0_20] : memref<1x8x32xf32, #tpu.memory_space<vmem>>, vector<1x8x32xf32>
    %19 = vector.broadcast %18 : vector<1x8x32xf32> to vector<16x8x32xf32>
    %20 = arith.addf %17, %19 : vector<16x8x32xf32>
    %c0_21 = arith.constant 0 : index
    %c0_22 = arith.constant 0 : index
    %c0_23 = arith.constant 0 : index
    %21 = vector.load %arg3[%c0_21, %c0_22, %c0_23] : memref<16x8x32xf32, #tpu.memory_space<vmem>>, vector<16x8x32xf32>
    %cst_24 = arith.constant 5.65685415 : f32
    %22 = vector.broadcast %cst_24 : f32 to vector<16x8x32xf32>
    %23 = arith.mulf %21, %22 : vector<16x8x32xf32>
    %c0_25 = arith.constant 0 : index
    %c0_26 = arith.constant 0 : index
    %c0_27 = arith.constant 0 : index
    %24 = vector.load %arg4[%c0_25, %c0_26, %c0_27] : memref<1x8x32xf32, #tpu.memory_space<vmem>>, vector<1x8x32xf32>
    %25 = vector.broadcast %24 : vector<1x8x32xf32> to vector<16x8x32xf32>
    %26 = arith.addf %23, %25 : vector<16x8x32xf32>
    %27 = tpu.concatenate %20, %26 in 0 : vector<16x8x32xf32>, vector<16x8x32xf32> -> vector<32x8x32xf32>
    %28 = vector.shape_cast %27 : vector<32x8x32xf32> to vector<256x32xf32>
    %c0_28 = arith.constant 0 : index
    %c0_29 = arith.constant 0 : index
    %c0_30 = arith.constant 0 : index
    %29 = vector.load %arg5[%c0_28, %c0_29, %c0_30] : memref<4x32x32xf32, #tpu.memory_space<vmem>>, vector<1x32x32xf32>
    %30 = vector.shape_cast %29 : vector<1x32x32xf32> to vector<32x32xf32>
    %cst_31 = arith.constant dense<0.000000e+00> : vector<256x32xf32>
    %31 = tpu.matmul %28, %30, %cst_31 {dimension_numbers = #tpu.dot_dimension_numbers<[1], [0], [0], [1], [0, 0, 1, 1], [], []>} : vector<256x32xf32>, vector<32x32xf32>, vector<256x32xf32> -> vector<256x32xf32>
    %32 = vector.broadcast %0 : vector<1x32xf32> to vector<256x32xf32>
    %33 = arith.addf %31, %32 : vector<256x32xf32>
    %cst_32 = arith.constant 0.000000e+00 : f32
    %34 = vector.broadcast %cst_32 : f32 to vector<256x32xf32>
    %35 = arith.maximumf %33, %34 : vector<256x32xf32>
    %c1_33 = arith.constant 1 : index
    %c0_34 = arith.constant 0 : index
    %c0_35 = arith.constant 0 : index
    %36 = vector.load %arg5[%c1_33, %c0_34, %c0_35] : memref<4x32x32xf32, #tpu.memory_space<vmem>>, vector<1x32x32xf32>
    %37 = vector.shape_cast %36 : vector<1x32x32xf32> to vector<32x32xf32>
    %cst_36 = arith.constant dense<0.000000e+00> : vector<256x32xf32>
    %38 = tpu.matmul %35, %37, %cst_36 {dimension_numbers = #tpu.dot_dimension_numbers<[1], [0], [0], [1], [0, 0, 1, 1], [], []>} : vector<256x32xf32>, vector<32x32xf32>, vector<256x32xf32> -> vector<256x32xf32>
    %39 = vector.broadcast %1 : vector<1x32xf32> to vector<256x32xf32>
    %40 = arith.addf %38, %39 : vector<256x32xf32>
    "tpu.trace_start"() <{level = 10 : i32, message = "ie,je->ij"}> : () -> ()
    %cst_37 = arith.constant dense<0.000000e+00> : vector<256x256xf32>
    %41 = tpu.matmul %40, %40, %cst_37 {dimension_numbers = #tpu.dot_dimension_numbers<[1], [1], [0], [0], [0, 0, 1, 0], [], []>} : vector<256x32xf32>, vector<256x32xf32>, vector<256x256xf32> -> vector<256x256xf32>
    "tpu.trace_stop"() : () -> ()
    %c0_38 = arith.constant 0 : index
    %c0_39 = arith.constant 0 : index
    %42 = vector.load %arg10[%c0_38, %c0_39] : memref<256x256xf32, #tpu.memory_space<vmem>>, vector<256x256xf32>
    %43 = arith.addf %41, %42 : vector<256x256xf32>
    %cst_40 = arith.constant dense<0xFF800000> : vector<256xf32>
    %44 = vector.multi_reduction <maximumf>, %43, %cst_40 [1] : vector<256x256xf32> to vector<256xf32>
    %45 = vector.shape_cast %44 : vector<256xf32> to vector<256x1xf32>
    %46 = vector.broadcast %45 : vector<256x1xf32> to vector<256x256xf32>
    %47 = arith.subf %43, %46 : vector<256x256xf32>
    %48 = math.exp %47 : vector<256x256xf32>
    %cst_41 = arith.constant dense<0.000000e+00> : vector<256xf32>
    %49 = vector.multi_reduction <add>, %48, %cst_41 [1] : vector<256x256xf32> to vector<256xf32>
    %50 = vector.shape_cast %49 : vector<256xf32> to vector<256x1xf32>
    %51 = vector.broadcast %50 : vector<256x1xf32> to vector<256x256xf32>
    %52 = arith.divf %48, %51 : vector<256x256xf32>
    %cst_42 = arith.constant dense<0.000000e+00> : vector<256x32xf32>
    %53 = tpu.matmul %52, %28, %cst_42 {dimension_numbers = #tpu.dot_dimension_numbers<[1], [0], [0], [1], [0, 0, 1, 1], [], []>} : vector<256x256xf32>, vector<256x32xf32>, vector<256x32xf32> -> vector<256x32xf32>
    %54 = vector.extract_strided_slice %53 {offsets = [128, 0], sizes = [128, 32], strides = [1, 1]} : vector<256x32xf32> to vector<128x32xf32>
    %55 = vector.extract_strided_slice %53 {offsets = [0, 0], sizes = [128, 32], strides = [1, 1]} : vector<256x32xf32> to vector<128x32xf32>
    %56 = tpu.concatenate %54, %55 in 0 : vector<128x32xf32>, vector<128x32xf32> -> vector<256x32xf32>
    %c0_43 = arith.constant 0 : index
    %c0_44 = arith.constant 0 : index
    %c0_45 = arith.constant 0 : index
    %57 = vector.load %arg6[%c0_43, %c0_44, %c0_45] : memref<4x32x64xf32, #tpu.memory_space<vmem>>, vector<1x32x64xf32>
    %58 = vector.shape_cast %57 : vector<1x32x64xf32> to vector<32x64xf32>
    %cst_46 = arith.constant dense<0.000000e+00> : vector<256x64xf32>
    %59 = tpu.matmul %28, %58, %cst_46 {dimension_numbers = #tpu.dot_dimension_numbers<[1], [0], [0], [1], [0, 0, 1, 1], [], []>} : vector<256x32xf32>, vector<32x64xf32>, vector<256x64xf32> -> vector<256x64xf32>
    %c1_47 = arith.constant 1 : index
    %c0_48 = arith.constant 0 : index
    %c0_49 = arith.constant 0 : index
    %60 = vector.load %arg6[%c1_47, %c0_48, %c0_49] : memref<4x32x64xf32, #tpu.memory_space<vmem>>, vector<1x32x64xf32>
    %61 = vector.shape_cast %60 : vector<1x32x64xf32> to vector<32x64xf32>
    %cst_50 = arith.constant dense<0.000000e+00> : vector<256x64xf32>
    %62 = tpu.matmul %56, %61, %cst_50 {dimension_numbers = #tpu.dot_dimension_numbers<[1], [0], [0], [1], [0, 0, 1, 1], [], []>} : vector<256x32xf32>, vector<32x64xf32>, vector<256x64xf32> -> vector<256x64xf32>
    %63 = arith.addf %59, %62 : vector<256x64xf32>
    %64 = vector.broadcast %2 : vector<1x64xf32> to vector<256x64xf32>
    %65 = arith.addf %63, %64 : vector<256x64xf32>
    %cst_51 = arith.constant 0.000000e+00 : f32
    %66 = vector.broadcast %cst_51 : f32 to vector<256x64xf32>
    %67 = arith.cmpf ogt, %65, %66 : vector<256x64xf32>
    %68 = vector.broadcast %9 : f32 to vector<256x64xf32>
    %69 = arith.mulf %68, %65 : vector<256x64xf32>
    %70 = arith.select %67, %65, %69 : vector<256x64xi1>, vector<256x64xf32>
    %c0_52 = arith.constant 0 : index
    %c0_53 = arith.constant 0 : index
    %c0_54 = arith.constant 0 : index
    %71 = vector.load %arg7[%c0_52, %c0_53, %c0_54] : memref<2x64x32xf32, #tpu.memory_space<vmem>>, vector<1x64x32xf32>
    %72 = vector.shape_cast %71 : vector<1x64x32xf32> to vector<64x32xf32>
    %cst_55 = arith.constant dense<0.000000e+00> : vector<256x32xf32>
    %73 = tpu.matmul %70, %72, %cst_55 {dimension_numbers = #tpu.dot_dimension_numbers<[1], [0], [0], [1], [0, 0, 1, 1], [], []>} : vector<256x64xf32>, vector<64x32xf32>, vector<256x32xf32> -> vector<256x32xf32>
    %74 = vector.broadcast %3 : vector<1x32xf32> to vector<256x32xf32>
    %75 = arith.addf %73, %74 : vector<256x32xf32>
    %cst_56 = arith.constant 0.000000e+00 : f32
    %76 = vector.broadcast %cst_56 : f32 to vector<256x32xf32>
    %77 = arith.cmpf ogt, %75, %76 : vector<256x32xf32>
    %78 = vector.broadcast %10 : f32 to vector<256x32xf32>
    %79 = arith.mulf %78, %75 : vector<256x32xf32>
    %80 = arith.select %77, %75, %79 : vector<256x32xi1>, vector<256x32xf32>
    %c2_57 = arith.constant 2 : index
    %c0_58 = arith.constant 0 : index
    %c0_59 = arith.constant 0 : index
    %81 = vector.load %arg5[%c2_57, %c0_58, %c0_59] : memref<4x32x32xf32, #tpu.memory_space<vmem>>, vector<1x32x32xf32>
    %82 = vector.shape_cast %81 : vector<1x32x32xf32> to vector<32x32xf32>
    %cst_60 = arith.constant dense<0.000000e+00> : vector<256x32xf32>
    %83 = tpu.matmul %80, %82, %cst_60 {dimension_numbers = #tpu.dot_dimension_numbers<[1], [0], [0], [1], [0, 0, 1, 1], [], []>} : vector<256x32xf32>, vector<32x32xf32>, vector<256x32xf32> -> vector<256x32xf32>
    %84 = vector.broadcast %4 : vector<1x32xf32> to vector<256x32xf32>
    %85 = arith.addf %83, %84 : vector<256x32xf32>
    %cst_61 = arith.constant 0.000000e+00 : f32
    %86 = vector.broadcast %cst_61 : f32 to vector<256x32xf32>
    %87 = arith.cmpf ogt, %85, %86 : vector<256x32xf32>
    %88 = vector.broadcast %11 : f32 to vector<256x32xf32>
    %89 = arith.mulf %88, %85 : vector<256x32xf32>
    %90 = arith.select %87, %85, %89 : vector<256x32xi1>, vector<256x32xf32>
    %91 = vector.shape_cast %90 : vector<256x32xf32> to vector<32x8x32xf32>
    %cst_62 = arith.constant dense<0.000000e+00> : vector<32x32xf32>
    %92 = vector.multi_reduction <add>, %91, %cst_62 [1] : vector<32x8x32xf32> to vector<32x32xf32>
    %93 = vector.extract_strided_slice %92 {offsets = [0, 0], sizes = [16, 32], strides = [1, 1]} : vector<32x32xf32> to vector<16x32xf32>
    %94 = vector.extract_strided_slice %92 {offsets = [16, 0], sizes = [16, 32], strides = [1, 1]} : vector<32x32xf32> to vector<16x32xf32>
    %c2_63 = arith.constant 2 : index
    %c0_64 = arith.constant 0 : index
    %c0_65 = arith.constant 0 : index
    %95 = vector.load %arg6[%c2_63, %c0_64, %c0_65] : memref<4x32x64xf32, #tpu.memory_space<vmem>>, vector<1x32x64xf32>
    %96 = vector.shape_cast %95 : vector<1x32x64xf32> to vector<32x64xf32>
    %cst_66 = arith.constant dense<0.000000e+00> : vector<16x64xf32>
    %97 = tpu.matmul %93, %96, %cst_66 {dimension_numbers = #tpu.dot_dimension_numbers<[1], [0], [0], [1], [0, 0, 1, 1], [], []>} : vector<16x32xf32>, vector<32x64xf32>, vector<16x64xf32> -> vector<16x64xf32>
    %c3_67 = arith.constant 3 : index
    %c0_68 = arith.constant 0 : index
    %c0_69 = arith.constant 0 : index
    %98 = vector.load %arg6[%c3_67, %c0_68, %c0_69] : memref<4x32x64xf32, #tpu.memory_space<vmem>>, vector<1x32x64xf32>
    %99 = vector.shape_cast %98 : vector<1x32x64xf32> to vector<32x64xf32>
    %cst_70 = arith.constant dense<0.000000e+00> : vector<16x64xf32>
    %100 = tpu.matmul %94, %99, %cst_70 {dimension_numbers = #tpu.dot_dimension_numbers<[1], [0], [0], [1], [0, 0, 1, 1], [], []>} : vector<16x32xf32>, vector<32x64xf32>, vector<16x64xf32> -> vector<16x64xf32>
    %101 = arith.addf %97, %100 : vector<16x64xf32>
    %102 = vector.broadcast %5 : vector<1x64xf32> to vector<16x64xf32>
    %103 = arith.addf %101, %102 : vector<16x64xf32>
    %cst_71 = arith.constant 0.000000e+00 : f32
    %104 = vector.broadcast %cst_71 : f32 to vector<16x64xf32>
    %105 = arith.cmpf ogt, %103, %104 : vector<16x64xf32>
    %106 = vector.broadcast %12 : f32 to vector<16x64xf32>
    %107 = arith.mulf %106, %103 : vector<16x64xf32>
    %108 = arith.select %105, %103, %107 : vector<16x64xi1>, vector<16x64xf32>
    %c1_72 = arith.constant 1 : index
    %c0_73 = arith.constant 0 : index
    %c0_74 = arith.constant 0 : index
    %109 = vector.load %arg7[%c1_72, %c0_73, %c0_74] : memref<2x64x32xf32, #tpu.memory_space<vmem>>, vector<1x64x32xf32>
    %110 = vector.shape_cast %109 : vector<1x64x32xf32> to vector<64x32xf32>
    %cst_75 = arith.constant dense<0.000000e+00> : vector<16x32xf32>
    %111 = tpu.matmul %108, %110, %cst_75 {dimension_numbers = #tpu.dot_dimension_numbers<[1], [0], [0], [1], [0, 0, 1, 1], [], []>} : vector<16x64xf32>, vector<64x32xf32>, vector<16x32xf32> -> vector<16x32xf32>
    %112 = vector.broadcast %6 : vector<1x32xf32> to vector<16x32xf32>
    %113 = arith.addf %111, %112 : vector<16x32xf32>
    %cst_76 = arith.constant 0.000000e+00 : f32
    %114 = vector.broadcast %cst_76 : f32 to vector<16x32xf32>
    %115 = arith.cmpf ogt, %113, %114 : vector<16x32xf32>
    %116 = vector.broadcast %13 : f32 to vector<16x32xf32>
    %117 = arith.mulf %116, %113 : vector<16x32xf32>
    %118 = arith.select %115, %113, %117 : vector<16x32xi1>, vector<16x32xf32>
    %c3_77 = arith.constant 3 : index
    %c0_78 = arith.constant 0 : index
    %c0_79 = arith.constant 0 : index
    %119 = vector.load %arg5[%c3_77, %c0_78, %c0_79] : memref<4x32x32xf32, #tpu.memory_space<vmem>>, vector<1x32x32xf32>
    %120 = vector.shape_cast %119 : vector<1x32x32xf32> to vector<32x32xf32>
    %cst_80 = arith.constant dense<0.000000e+00> : vector<16x32xf32>
    %121 = tpu.matmul %118, %120, %cst_80 {dimension_numbers = #tpu.dot_dimension_numbers<[1], [0], [0], [1], [0, 0, 1, 1], [], []>} : vector<16x32xf32>, vector<32x32xf32>, vector<16x32xf32> -> vector<16x32xf32>
    %122 = vector.broadcast %7 : vector<1x32xf32> to vector<16x32xf32>
    %123 = arith.addf %121, %122 : vector<16x32xf32>
    %cst_81 = arith.constant 0.000000e+00 : f32
    %124 = vector.broadcast %cst_81 : f32 to vector<16x32xf32>
    %125 = arith.cmpf ogt, %123, %124 : vector<16x32xf32>
    %126 = vector.broadcast %14 : f32 to vector<16x32xf32>
    %127 = arith.mulf %126, %123 : vector<16x32xf32>
    %128 = arith.select %125, %123, %127 : vector<16x32xi1>, vector<16x32xf32>
    %c0_82 = arith.constant 0 : index
    %c0_83 = arith.constant 0 : index
    %129 = vector.load %arg8[%c0_82, %c0_83] : memref<32x3xf32, #tpu.memory_space<vmem>>, vector<32x3xf32>
    %cst_84 = arith.constant dense<0.000000e+00> : vector<16x3xf32>
    %130 = tpu.matmul %128, %129, %cst_84 {dimension_numbers = #tpu.dot_dimension_numbers<[1], [0], [0], [1], [0, 0, 1, 1], [], []>} : vector<16x32xf32>, vector<32x3xf32>, vector<16x3xf32> -> vector<16x3xf32>
    %131 = vector.broadcast %8 : vector<1x3xf32> to vector<16x3xf32>
    %132 = arith.addf %130, %131 : vector<16x3xf32>
    %c0_85 = arith.constant 0 : index
    %c0_86 = arith.constant 0 : index
    %133 = vector.load %arg11[%c0_85, %c0_86] : memref<16x3xf32, #tpu.memory_space<vmem>>, vector<16x3xf32>
    tpu.vector_store %arg11[%c0_85, %c0_86], %132 {strides = array<i32>} : memref<16x3xf32, #tpu.memory_space<vmem>>, vector<16x3xf32>,
    return
  }
  func.func @transform_0(%arg0: i32) -> i32 {
    %c0_i32 = arith.constant 0 : i32
    %c0_i32_0 = arith.constant 0 : i32
    return %c0_i32 : i32
  }
  func.func @transform_1(%arg0: i32) -> (i32, i32, i32) {
    %c0_i32 = arith.constant 0 : i32
    %c0_i32_0 = arith.constant 0 : i32
    %c0_i32_1 = arith.constant 0 : i32
    return %arg0, %c0_i32, %c0_i32_0 : i32, i32, i32
  }
  func.func @transform_2(%arg0: i32) -> (i32, i32, i32) {
    %c0_i32 = arith.constant 0 : i32
    %c0_i32_0 = arith.constant 0 : i32
    %c0_i32_1 = arith.constant 0 : i32
    return %arg0, %c0_i32, %c0_i32_0 : i32, i32, i32
  }
  func.func @transform_3(%arg0: i32) -> (i32, i32, i32) {
    %c0_i32 = arith.constant 0 : i32
    %c0_i32_0 = arith.constant 0 : i32
    %c0_i32_1 = arith.constant 0 : i32
    %c0_i32_2 = arith.constant 0 : i32
    return %c0_i32, %c0_i32_0, %c0_i32_1 : i32, i32, i32
  }
  func.func @transform_4(%arg0: i32) -> (i32, i32, i32) {
    %c0_i32 = arith.constant 0 : i32
    %c0_i32_0 = arith.constant 0 : i32
    %c0_i32_1 = arith.constant 0 : i32
    %c0_i32_2 = arith.constant 0 : i32
    return %c0_i32, %c0_i32_0, %c0_i32_1 : i32, i32, i32
  }
  func.func @transform_5(%arg0: i32) -> (i32, i32, i32) {
    %c0_i32 = arith.constant 0 : i32
    %c0_i32_0 = arith.constant 0 : i32
    %c0_i32_1 = arith.constant 0 : i32
    %c0_i32_2 = arith.constant 0 : i32
    return %c0_i32, %c0_i32_0, %c0_i32_1 : i32, i32, i32
  }
  func.func @transform_6(%arg0: i32) -> (i32, i32, i32) {
    %c0_i32 = arith.constant 0 : i32
    %c0_i32_0 = arith.constant 0 : i32
    %c0_i32_1 = arith.constant 0 : i32
    %c0_i32_2 = arith.constant 0 : i32
    return %c0_i32, %c0_i32_0, %c0_i32_1 : i32, i32, i32
  }
  func.func @transform_7(%arg0: i32) -> (i32, i32) {
    %c0_i32 = arith.constant 0 : i32
    %c0_i32_0 = arith.constant 0 : i32
    %c0_i32_1 = arith.constant 0 : i32
    return %c0_i32, %c0_i32_0 : i32, i32
  }
  func.func @transform_8(%arg0: i32) -> (i32, i32) {
    %c0_i32 = arith.constant 0 : i32
    %c0_i32_0 = arith.constant 0 : i32
    %c0_i32_1 = arith.constant 0 : i32
    return %c0_i32, %c0_i32_0 : i32, i32
  }
  func.func @transform_9(%arg0: i32) -> (i32, i32) {
    %c0_i32 = arith.constant 0 : i32
    %c0_i32_0 = arith.constant 0 : i32
    %c0_i32_1 = arith.constant 0 : i32
    return %c0_i32, %c0_i32_0 : i32, i32
  }
  func.func @transform_10(%arg0: i32) -> (i32, i32) {
    %c0_i32 = arith.constant 0 : i32
    %c0_i32_0 = arith.constant 0 : i32
    return %arg0, %c0_i32 : i32, i32
  }
}

</mosaic_0001>

<bundles_post_ra>
// kernel: tpu_custom_call.1
= control target key start
LH: loop header
LB: loop body
LE: loop exit
PB: predicated region body
PF: predicated region fallthrough
CT: control target
= control target key end

     0   :  { %15 = vsyncpa [#allocation4], 0  ;;  %s6508_s0 = inlined_call_operand.vmem [shape: f32[6], index: 0, kind: input, shape index: {}]   ;;  %s6509_s1 = inlined_call_operand.vmem [shape: f32[16,8,32], index: 1, kind: input, shape index: {}]   ;;  %s6510_s2 = inlined_call_operand.hbm [shape: f32[16,8,32], index: 2, kind: input, shape index: {}]   ;;  %s6511_s3 = inlined_call_operand.vmem [shape: f32[1,8,32], index: 3, kind: input, shape index: {}]   ;;  %s6512_s4 = inlined_call_operand.hbm [shape: f32[4,32,32], index: 4, kind: input, shape index: {}]   ;;  %s6513_s5 = inlined_call_operand.hbm [shape: f32[4,32,64], index: 5, kind: input, shape index: {}]   ;;  %s6514_s6 = inlined_call_operand.vmem [shape: f32[2,64,32], index: 6, kind: input, shape index: {}]   ;;  %s6515_s7 = inlined_call_operand.vmem [shape: f32[32,3], index: 7, kind: input, shape index: {}]   ;;  %s6516_s8 = inlined_call_operand.vmem [shape: f32[9,64], index: 8, kind: input, shape index: {}]   ;;  %s6517_s9 = inlined_call_operand.hbm [shape: f32[256,256], index: 9, kind: input, shape index: {}]   ;;  %s6518_s10 = inlined_call_operand.vmem [shape: f32[16,3], index: 10, kind: output, shape index: {}]  }
   0x1   :  { %16 = vsyncpa [#allocation3], 0 }
   0x2   :  { %17 = vsyncpa [#allocation7], 0 }
   0x3   :  { %18 = vsyncpa [#allocation10], 0  ;;  %s49_s15 = sshll.u32 %s6512_s4, 4  ;;  %s4441_s16 = smov [#allocation6]   ;;  %s50_s15 = int_to_ptr.hbm [resolvable:$true] %s49_s15 }
   0x4   :  { %s51_s17 = sshll.u32 %s4441_s16, 4  ;;  %s24_s20 = sshll.u32 %s6508_s0, 4  ;;  %s52_s17 = int_to_ptr.vmem [resolvable:$true] %s51_s17  ;;  %s25_s20 = int_to_ptr.vmem [resolvable:$true] %s24_s20 }
   0x5   :  { %s4442_s21 = smov 128   ;;  %s4443_s22 = smov 8  }
   0x6   :  { %57 = dma.hbm_to_vmem [thread:$0]  %s50_s15, 2048, %s52_s17, [#allocation7], %s4442_s21, %s4442_s21, %s4443_s22  }
   0x7   :  { %s4444_s23 = smov [#allocation2]   ;;  %s34_s26 = sshll.u32 %s6510_s2, 4  ;;  %s35_s26 = int_to_ptr.hbm [resolvable:$true] %s34_s26 }
   0x8   :  { %27 = dma.vmem_to_smem %s25_s20, 16, %s4444_s23, [#allocation4]  }
   0x9   :  { %s4445_s4 = smov [#allocation5]   ;;  %s62_s30 = sshll.u32 %s6513_s5, 4  ;;  %s63_s30 = int_to_ptr.hbm [resolvable:$true] %s62_s30 }
   0xa   :  { %s36_s27 = sshll.u32 %s4445_s4, 4  ;;  %s4446_s0 = smov [#allocation8]   ;;  %s37_s27 = int_to_ptr.vmem [resolvable:$true] %s36_s27 }
   0xb   :  { %42 = dma.hbm_to_vmem [thread:$0]  %s35_s26, 2048, %s37_s27, [#allocation3], %s4442_s21, %s4442_s21, %s4443_s22  }
   0xc   :  { %s64_s11 = sshll.u32 %s4446_s0, 4  ;;  %s81_s14 = sshll.u32 %s6517_s9, 4  ;;  %s65_s11 = int_to_ptr.vmem [resolvable:$true] %s64_s11  ;;  %s82_s14 = int_to_ptr.hbm [resolvable:$true] %s81_s14 }
   0xd   :  { %70 = dma.hbm_to_vmem [thread:$0]  %s63_s30, 2048, %s65_s11, [#allocation7], %s4442_s21, %s4442_s21, %s4443_s22  }
   0xe   :  { %s4447_s2 = smov [#allocation9]   ;;  %s4448_s16 = smov 256  }
   0xf   :  { %s83_s15 = sshll.u32 %s4447_s2, 4  ;;  %s4449_s17 = smov 16   ;;  %s84_s15 = int_to_ptr.vmem [resolvable:$true] %s83_s15 }
  0x10   :  { %89 = dma.hbm_to_vmem [thread:$0]  %s82_s14, 8192, %s84_s15, [#allocation10], %s4448_s16, %s4448_s16, %s4449_s17  }
  0x11   :  { %4433 = dma.done.wait [#allocation4], 16  }
  0x12   :  { %4434 = vsyncadd [#allocation4], 4294967280 }
  0x13   :  { %4435 = dma.done.wait [#allocation3], 2048  }
  0x14   :  { %4436 = vsyncadd [#allocation3], 4294965248 }
  0x15   :  { %4437 = dma.done.wait [#allocation7], 4096  }
  0x16   :  { %4438 = vsyncadd [#allocation7], 4294963200 }
  0x17   :  { %4439 = dma.done.wait [#allocation10], 8192  }
  0x18   :  { %4440 = vsyncadd [#allocation10], 4294959104 }
  0x19   :  { %110 = sfence }
  0x1a   :  { %v226_v0 = vld [vmem:[#allocation6 + $0x18] sm:$0xff]  ;;  %v225_v1 = vld [vmem:[#allocation6 + $0x10] sm:$0xff]  ;;  %v126_v2 = vld [vmem:[%s6509_s1] sm:$0xff]  ;;  %vm228_vm0 = vcmask 261120   ;;  %s120_s9 = sld [smem:[#allocation2]] }
  0x1b   :  { %337 = vmatpush.msra.mxu0 %v226_v0  ;;  %v4526_v3 = vld [vmem:[%s6511_s3] sm:$0xff]  ;;  %4091 = vmatpush.msra.mxu3 %v226_v0  ;;  %v224_v4 = vld [vmem:[#allocation6 + $0x8] sm:$0xff]  ;;  %v142_v5 = vmul.f32 5.656854, %v126_v2  ;;  %v128_v11 = vld [vmem:[%s6509_s1 + $0x10] sm:$0xff]  ;;  %s3780_s20 = sld [smem:[#allocation2 + $0x1]] }
  0x1c   :  { %v223_v6 = vld [vmem:[#allocation6] sm:$0xff]  ;;  %v127_v8 = vld [vmem:[%s6509_s1 + $0x8] sm:$0xff]  ;;  %v144_v12 = vmul.f32 5.656854, %v128_v11  ;;  %v129_v14 = vld [vmem:[%s6509_s1 + $0x18] sm:$0xff]  ;;  %s3781_s22 = sld [smem:[#allocation2 + $0x2]] }
  0x1d   :  { %338 = vmatpush.msra.mxu0 %v225_v1  ;;  %4092 = vmatpush.msra.mxu3 %v225_v1  ;;  %v4529_v7 = vadd.f32 %v4526_v3, %v142_v5  ;;  %v143_v9 = vmul.f32 5.656854, %v127_v8  ;;  %v145_v15 = vmul.f32 5.656854, %v129_v14  ;;  %v130_v17 = vld [vmem:[%s6509_s1 + $0x20] sm:$0xff]  ;;  %v131_v20 = vld [vmem:[%s6509_s1 + $0x28] sm:$0xff] }
  0x1e   :  { %v4545_v13 = vadd.f32 %v4526_v3, %v144_v12  ;;  %v146_v18 = vmul.f32 5.656854, %v130_v17  ;;  %v147_v21 = vmul.f32 5.656854, %v131_v20  ;;  %v132_v23 = vld [vmem:[%s6509_s1 + $0x30] sm:$0xff]  ;;  %v133_v26 = vld [vmem:[%s6509_s1 + $0x38] sm:$0xff] }
  0x1f   :  { %339 = vmatpush.msra.mxu0 %v224_v4  ;;  %4093 = vmatpush.msra.mxu3 %v224_v4  ;;  %v4537_v10 = vadd.f32 %v4526_v3, %v143_v9  ;;  %v4553_v16 = vadd.f32 %v4526_v3, %v145_v15  ;;  %v148_v24 = vmul.f32 5.656854, %v132_v23  ;;  %v149_v27 = vmul.f32 5.656854, %v133_v26  ;;  %v134_v29 = vld [vmem:[%s6509_s1 + $0x40] sm:$0xff]  ;;  %v135_v32 = vld [vmem:[%s6509_s1 + $0x48] sm:$0xff] }
  0x20   :  { %v4561_v19 = vadd.f32 %v4526_v3, %v146_v18  ;;  %v4569_v22 = vadd.f32 %v4526_v3, %v147_v21  ;;  %v150_v30 = vmul.f32 5.656854, %v134_v29  ;;  %v151_v33 = vmul.f32 5.656854, %v135_v32  ;;  %v136_v35 = vld [vmem:[%s6509_s1 + $0x50] sm:$0xff]  ;;  %v137_v38 = vld [vmem:[%s6509_s1 + $0x58] sm:$0xff] }
  0x21   :  { %340 = vmatpush.msra.mxu0 %v223_v6  ;;  %4094 = vmatpush.msra.mxu3 %v223_v6  ;;  %v4577_v25 = vadd.f32 %v4526_v3, %v148_v24  ;;  %v4585_v28 = vadd.f32 %v4526_v3, %v149_v27  ;;  %v152_v36 = vmul.f32 5.656854, %v136_v35  ;;  %v140_v39 = vld [vmem:[%s6509_s1 + $0x70] sm:$0xff]  ;;  %v153_v40 = vmul.f32 5.656854, %v137_v38  ;;  %v141_v41 = vld [vmem:[%s6509_s1 + $0x78] sm:$0xff] }
  0x22   :  { %3785 = vmatmul.msk.f32.vlgmr.msra.gmra.mxu0 %vm228_vm0, %v4529_v7  ;;  %v4593_v31 = vadd.f32 %v4526_v3, %v150_v30  ;;  %v4601_v34 = vadd.f32 %v4526_v3, %v151_v33  ;;  %v139_v42 = vld [vmem:[%s6509_s1 + $0x68] sm:$0xff]  ;;  %v156_v43 = vmul.f32 5.656854, %v140_v39  ;;  %v157_v44 = vmul.f32 5.656854, %v141_v41  ;;  %v138_v45 = vld [vmem:[%s6509_s1 + $0x60] sm:$0xff] }
  0x23   :  { %v4609_v37 = vadd.f32 %v4526_v3, %v152_v36  ;;  %v4632_v47 = vadd.f32 %v4526_v3, %v153_v40  ;;  %v155_v48 = vmul.f32 5.656854, %v139_v42  ;;  %v154_v50 = vmul.f32 5.656854, %v138_v45  ;;  %v474_v52 = vld [vmem:[#allocation6 + $0x38] sm:$0xff]  ;;  %v473_v54 = vld [vmem:[#allocation6 + $0x30] sm:$0xff] }
  0x24   :  { %6542 = vst [vmem:[#allocation15_spill] sm:$0xff] %v4601_v34  ;;  %v4629_v46 = vadd.f32 %v4526_v3, %v157_v44  ;;  %v4635_v49 = vadd.f32 %v4526_v3, %v156_v43  ;;  %584 = vmatpush.msra.mxu1 %v474_v52  ;;  %4095 = vmatpush.msra.mxu2 %v474_v52  ;;  %v472_v55 = vld [vmem:[#allocation6 + $0x28] sm:$0xff]  ;;  %v471_v56 = vld [vmem:[#allocation6 + $0x20] sm:$0xff]  ;;  %v177_v9 = vld [vmem:[#allocation5 + $0x10] sm:$0xff]  ;;  %s3782_s17 = sld [smem:[#allocation2 + $0x3]] }
  0x25   :  { %6543 = vst [vmem:[#allocation16_spill] sm:$0xff] %v4609_v37  ;;  %v4642_v51 = vadd.f32 %v4526_v3, %v155_v48  ;;  %v4645_v53 = vadd.f32 %v4526_v3, %v154_v50  ;;  %v175_v57 = vld [vmem:[#allocation5] sm:$0xff]  ;;  %v176_v62 = vld [vmem:[#allocation5 + $0x8] sm:$0xff]  ;;  %v181_v11 = vld [vmem:[#allocation5 + $0x30] sm:$0xff]  ;;  %v193_v17 = vmul.f32 5.656854, %v177_v9 }
  0x26   :  { %6544 = vst [vmem:[#allocation17_spill] sm:$0xff] %v4629_v46  ;;  %1967 = vmatpush.msrb.mxu0 %v4629_v46  ;;  %585 = vmatpush.msra.mxu1 %v473_v54  ;;  %v191_v58 = vmul.f32 5.656854, %v175_v57  ;;  %v4672_v59 = vld [vmem:[%s6516_s8] ss:$0 sm:$0xff]  ;;  %v180_v63 = vld [vmem:[#allocation5 + $0x28] sm:$0xff] }
  0x27   :  { %6545 = vst [vmem:[#allocation18_spill] sm:$0xff] %v4632_v47  ;;  %4096 = vmatpush.msra.mxu2 %v473_v54  ;;  %v196_v1 = vmul.f32 5.656854, %v180_v63  ;;  %v192_v4 = vmul.f32 5.656854, %v176_v62  ;;  %v4699_v20 = vadd.f32 %v193_v17, %v4526_v3  ;;  %v178_v23 = vld [vmem:[#allocation5 + $0x18] sm:$0xff] }
  0x28   :  { %6546 = vst [vmem:[#allocation19_spill] sm:$0xff] %v4635_v49  ;;  %1968 = vmatpush.msrb.mxu0 %v4635_v49  ;;  %586 = vmatpush.msra.mxu1 %v472_v55  ;;  %v4675_v60 = vadd.f32 %v191_v58, %v4526_v3  ;;  %v197_v14 = vmul.f32 5.656854, %v181_v11  ;;  %v182_v24 = vld [vmem:[#allocation5 + $0x38] sm:$0xff]  ;;  %v194_v30 = vmul.f32 5.656854, %v178_v23 }
  0x29   :  { %6547 = vst [vmem:[#allocation20_spill] sm:$0xff] %v4642_v51  ;;  %4097 = vmatpush.msra.mxu2 %v472_v55  ;;  %v4681_v5 = vadd.f32 %v196_v1, %v4526_v3  ;;  %v4687_v6 = vadd.f32 %v192_v4, %v4526_v3  ;;  %v198_v27 = vmul.f32 5.656854, %v182_v24  ;;  %v179_v36 = vld [vmem:[#allocation5 + $0x20] sm:$0xff]  ;;  %v184_v48 = vld [vmem:[#allocation5 + $0x48] sm:$0xff]  ;;  %v185_v57 = vld [vmem:[#allocation5 + $0x50] sm:$0xff] }
  0x2a   :  { %3786 = vmatmul.msk.f32.gmra.mxu0 %vm228_vm0, %v4537_v10  ;;  %6548 = vst [vmem:[#allocation21_spill] sm:$0xff] %v4645_v53  ;;  %587 = vmatpush.msra.mxu1 %v471_v56  ;;  %v4693_v18 = vadd.f32 %v197_v14, %v4526_v3  ;;  %v4711_v33 = vadd.f32 %v194_v30, %v4526_v3  ;;  %v183_v38 = vld [vmem:[#allocation5 + $0x40] sm:$0xff]  ;;  %v195_v42 = vmul.f32 5.656854, %v179_v36  ;;  %v200_v52 = vmul.f32 5.656854, %v184_v48 }
  0x2b   :  { %1969 = vmatpush.msrb.mxu0 %v4642_v51  ;;  %4098 = vmatpush.msra.mxu2 %v471_v56  ;;  %6549 = vst [vmem:[#allocation22_spill] sm:$0xff] %v4675_v60  ;;  %v4705_v32 = vadd.f32 %v198_v27, %v4526_v3  ;;  %v199_v40 = vmul.f32 5.656854, %v183_v38  ;;  %v186_v1 = vld [vmem:[#allocation5 + $0x58] sm:$0xff]  ;;  %v188_v24 = vld [vmem:[#allocation5 + $0x68] sm:$0xff]  ;;  %v189_v36 = vld [vmem:[#allocation5 + $0x70] sm:$0xff] }
  0x2c   :  { %6550 = vst [vmem:[#allocation23_spill] sm:$0xff] %v4681_v5  ;;  %3806 = vmatmul.msk.f32.vlgmr.msra.gmra.mxu3 %vm228_vm0, %v4681_v5  ;;  %v4723_v44 = vadd.f32 %v195_v42, %v4526_v3  ;;  %v4729_v55 = vadd.f32 %v200_v52, %v4526_v3  ;;  %v202_v4 = vmul.f32 5.656854, %v186_v1  ;;  %v204_v27 = vmul.f32 5.656854, %v188_v24  ;;  %s3784_s26 = sld [smem:[#allocation2 + $0x5]] }
  0x2d   :  { %1970 = vmatpush.msrb.mxu0 %v4645_v53  ;;  %6551 = vst [vmem:[#allocation24_spill] sm:$0xff] %v4687_v6  ;;  %v4717_v43 = vadd.f32 %v199_v40, %v4526_v3 }
  0x2e   :  { %6552 = vst [vmem:[#allocation25_spill] sm:$0xff] %v4693_v18  ;;  %v4743_v9 = vadd.f32 %v202_v4, %v4526_v3  ;;  %v4757_v30 = vadd.f32 %v204_v27, %v4526_v3 }
  0x2f   :  { %1971 = vmatpush.msrb.mxu0 %v4632_v47  ;;  %6553 = vst [vmem:[#allocation26_spill] sm:$0xff] %v4699_v20 }
  0x30   :  { %6554 = vst [vmem:[#allocation27_spill] sm:$0xff] %v4705_v32 }
  0x31   :  { %1972 = vmatpush.msrb.mxu0 %v4609_v37  ;;  %6555 = vst [vmem:[#allocation28_spill] sm:$0xff] %v4711_v33 }
  0x32   :  { %3787 = vmatmul.msk.f32.gmra.mxu0 %vm228_vm0, %v4545_v13  ;;  %6556 = vst [vmem:[#allocation29_spill] sm:$0xff] %v4717_v43 }
  0x33   :  { %1973 = vmatpush.msrb.mxu0 %v4601_v34  ;;  %6557 = vst [vmem:[#allocation30_spill] sm:$0xff] %v4723_v44 }
  0x34   :  { %3807 = vmatmul.msk.f32.gmra.mxu3 %vm228_vm0, %v4693_v18  ;;  %6558 = vst [vmem:[#allocation31_spill] sm:$0xff] %v4729_v55 }
  0x35   :  { %1974 = vmatpush.msrb.mxu0 %v4593_v31  ;;  %6560 = vst [vmem:[#allocation33_spill] sm:$0xff] %v4743_v9 }
  0x36   :  { %6562 = vst [vmem:[#allocation35_spill] sm:$0xff] %v4757_v30 }
  0x37   :  { %1975 = vmatpush.msrb.mxu0 %v4585_v28 }
  0x39   :  { %1976 = vmatpush.msrb.mxu0 %v4577_v25 }
  0x3a   :  { %3788 = vmatmul.msk.f32.gmra.mxu0 %vm228_vm0, %v4553_v16 }
  0x3b   :  { %1977 = vmatpush.msrb.mxu0 %v4569_v22 }
  0x3c   :  { %3808 = vmatmul.msk.f32.gmra.mxu3 %vm228_vm0, %v4705_v32 }
  0x3d   :  { %1978 = vmatpush.msrb.mxu0 %v4561_v19 }
  0x3f   :  { %1979 = vmatpush.msrb.mxu0 %v4553_v16 }
  0x41   :  { %1980 = vmatpush.msrb.mxu0 %v4545_v13 }
  0x42   :  { %3789 = vmatmul.msk.f32.gmra.mxu0 %vm228_vm0, %v4561_v19 }
  0x43   :  { %1981 = vmatpush.msrb.mxu0 %v4537_v10 }
  0x44   :  { %3809 = vmatmul.msk.f32.gmra.mxu3 %vm228_vm0, %v4717_v43 }
  0x45   :  { %1982 = vmatpush.msrb.mxu0 %v4529_v7 }
  0x4a   :  { %3790 = vmatmul.msk.f32.gmra.mxu0 %vm228_vm0, %v4569_v22 }
  0x4c   :  { %3810 = vmatmul.msk.f32.gmra.mxu3 %vm228_vm0, %v4729_v55 }
  0x52   :  { %3791 = vmatmul.msk.f32.gmra.mxu0 %vm228_vm0, %v4577_v25 }
  0x5a   :  { %3792 = vmatmul.msk.f32.gmra.mxu0 %vm228_vm0, %v4585_v28 }
  0x62   :  { %3793 = vmatmul.msk.f32.gmra.mxu0 %vm228_vm0, %v4593_v31 }
  0x6a   :  { %3794 = vmatmul.msk.f32.gmra.mxu0 %vm228_vm0, %v4601_v34 }
  0x72   :  { %3795 = vmatmul.msk.f32.gmra.mxu0 %vm228_vm0, %v4609_v37 }
  0x7a   :  { %3796 = vmatmul.msk.f32.gmra.mxu0 %vm228_vm0, %v4632_v47 }
  0x82   :  { %3797 = vmatmul.msk.f32.gmra.mxu0 %vm228_vm0, %v4645_v53 }
  0x8a   :  { %3798 = vmatmul.msk.f32.gmra.mxu0 %vm228_vm0, %v4642_v51 }
  0x92   :  { %3799 = vmatmul.msk.f32.gmra.mxu0 %vm228_vm0, %v4635_v49 }
  0x9a   :  { %3800 = vmatmul.msk.f32.gmra.mxu0 %vm228_vm0, %v4629_v46 }
  0x9f   :  { %v342_v61 = vpop.f32.mrf.mxu0 }
  0xa0   :  { %v343_v0 = vadd.f32 %v4672_v59, %v342_v61  ;;  %v201_v61 = vmul.f32 5.656854, %v185_v57 }
  0xa2   :  { %v438_v2 = vmax.f32 %v343_v0, 0.0  ;;  %3801 = vmatmul.msk.f32.gmra.mxu0 %vm228_vm0, %v4675_v60  ;;  %v4736_v63 = vadd.f32 %v201_v61, %v4526_v3 }
  0xa4   :  { %3817 = vmatmul.msk.f32.vlgmr.msra.gmra.mxu1 %vm228_vm0, %v438_v2  ;;  %6559 = vst [vmem:[#allocation32_spill] sm:$0xff] %v4736_v63  ;;  %3811 = vmatmul.msk.f32.gmra.mxu3 %vm228_vm0, %v4736_v63 }
  0xa7   :  { %v345_v8 = vpop.f32.mrf.mxu0 }
  0xa8   :  { %v346_v12 = vadd.f32 %v4672_v59, %v345_v8 }
  0xaa   :  { %v439_v15 = vmax.f32 %v346_v12, 0.0  ;;  %3802 = vmatmul.msk.f32.gmra.mxu0 %vm228_vm0, %v4687_v6  ;;  %v187_v12 = vld [vmem:[#allocation5 + $0x60] sm:$0xff] }
  0xac   :  { %3818 = vmatmul.msk.f32.gmra.mxu1 %vm228_vm0, %v439_v15  ;;  %3812 = vmatmul.msk.f32.gmra.mxu3 %vm228_vm0, %v4743_v9  ;;  %v203_v15 = vmul.f32 5.656854, %v187_v12 }
  0xaf   :  { %v348_v21 = vpop.f32.mrf.mxu0 }
  0xb0   :  { %v349_v26 = vadd.f32 %v4672_v59, %v348_v21  ;;  %v4750_v21 = vadd.f32 %v203_v15, %v4526_v3 }
  0xb2   :  { %v440_v29 = vmax.f32 %v349_v26, 0.0  ;;  %3803 = vmatmul.msk.f32.gmra.mxu0 %vm228_vm0, %v4699_v20  ;;  %6561 = vst [vmem:[#allocation34_spill] sm:$0xff] %v4750_v21 }
  0xb4   :  { %3819 = vmatmul.msk.f32.gmra.mxu1 %vm228_vm0, %v440_v29  ;;  %3813 = vmatmul.msk.f32.gmra.mxu3 %vm228_vm0, %v4750_v21 }
  0xb7   :  { %v351_v35 = vpop.f32.mrf.mxu0 }
  0xb8   :  { %v352_v39 = vadd.f32 %v4672_v59, %v351_v35 }
  0xba   :  { %v441_v41 = vmax.f32 %v352_v39, 0.0  ;;  %3804 = vmatmul.msk.f32.gmra.mxu0 %vm228_vm0, %v4711_v33  ;;  %v205_v39 = vmul.f32 5.656854, %v189_v36 }
  0xbc   :  { %3820 = vmatmul.msk.f32.gmra.mxu1 %vm228_vm0, %v441_v41  ;;  %3814 = vmatmul.msk.f32.gmra.mxu3 %vm228_vm0, %v4757_v30  ;;  %v4764_v41 = vadd.f32 %v205_v39, %v4526_v3 }
  0xbe   :  { %6563 = vst [vmem:[#allocation36_spill] sm:$0xff] %v4764_v41 }
  0xbf   :  { %v354_v45 = vpop.f32.mrf.mxu0 }
  0xc0   :  { %v355_v50 = vadd.f32 %v4672_v59, %v354_v45  ;;  %v190_v45 = vld [vmem:[#allocation5 + $0x78] sm:$0xff] }
  0xc2   :  { %v442_v54 = vmax.f32 %v355_v50, 0.0  ;;  %3805 = vmatmul.msk.f32.gmra.mxu0 %vm228_vm0, %v4723_v44  ;;  %v206_v50 = vmul.f32 5.656854, %v190_v45 }
  0xc4   :  { %3821 = vmatmul.msk.f32.gmra.mxu1 %vm228_vm0, %v442_v54  ;;  %3815 = vmatmul.msk.f32.gmra.mxu3 %vm228_vm0, %v4764_v41  ;;  %v4771_v54 = vadd.f32 %v206_v50, %v4526_v3 }
  0xc6   :  { %6564 = vst [vmem:[#allocation37_spill] sm:$0xff] %v4771_v54  ;;  %2080 = vmatpush.msrb.mxu1 %v4771_v54 }
  0xc7   :  { %v357_v56 = vpop.f32.mrf.mxu0 }
  0xc8   :  { %v358_v58 = vadd.f32 %v4672_v59, %v357_v56  ;;  %2081 = vmatpush.msrb.mxu1 %v4764_v41 }
  0xca   :  { %v443_v62 = vmax.f32 %v358_v58, 0.0  ;;  %2082 = vmatpush.msrb.mxu1 %v4757_v30 }
  0xcc   :  { %3822 = vmatmul.msk.f32.gmra.mxu1 %vm228_vm0, %v443_v62  ;;  %3816 = vmatmul.msk.f32.gmra.mxu3 %vm228_vm0, %v4771_v54 }
  0xcd   :  { %2083 = vmatpush.msrb.mxu1 %v4750_v21 }
  0xcf   :  { %v360_v0 = vpop.f32.mrf.mxu0  ;;  %2084 = vmatpush.msrb.mxu1 %v4743_v9 }
  0xd0   :  { %v361_v2 = vadd.f32 %v4672_v59, %v360_v0 }
  0xd1   :  { %2085 = vmatpush.msrb.mxu1 %v4736_v63 }
  0xd2   :  { %v444_v8 = vmax.f32 %v361_v2, 0.0 }
  0xd3   :  { %2086 = vmatpush.msrb.mxu1 %v4729_v55 }
  0xd4   :  { %3823 = vmatmul.msk.f32.gmra.mxu1 %vm228_vm0, %v444_v8 }
  0xd5   :  { %2087 = vmatpush.msrb.mxu1 %v4717_v43 }
  0xd7   :  { %v363_v11 = vpop.f32.mrf.mxu0  ;;  %2088 = vmatpush.msrb.mxu1 %v4705_v32 }
  0xd8   :  { %v364_v14 = vadd.f32 %v4672_v59, %v363_v11 }
  0xd9   :  { %2089 = vmatpush.msrb.mxu1 %v4693_v18 }
  0xda   :  { %v445_v17 = vmax.f32 %v364_v14, 0.0 }
  0xdb   :  { %2090 = vmatpush.msrb.mxu1 %v4681_v5 }
  0xdc   :  { %3824 = vmatmul.msk.f32.gmra.mxu1 %vm228_vm0, %v445_v17 }
  0xdd   :  { %2091 = vmatpush.msrb.mxu1 %v4723_v44 }
  0xdf   :  { %v366_v23 = vpop.f32.mrf.mxu0  ;;  %2092 = vmatpush.msrb.mxu1 %v4711_v33 }
  0xe0   :  { %v367_v26 = vadd.f32 %v4672_v59, %v366_v23 }
  0xe1   :  { %2093 = vmatpush.msrb.mxu1 %v4699_v20 }
  0xe2   :  { %v446_v29 = vmax.f32 %v367_v26, 0.0 }
  0xe3   :  { %2094 = vmatpush.msrb.mxu1 %v4687_v6 }
  0xe4   :  { %3825 = vmatmul.msk.f32.gmra.mxu1 %vm228_vm0, %v446_v29 }
  0xe5   :  { %2095 = vmatpush.msrb.mxu1 %v4675_v60 }
  0xe7   :  { %v369_v35 = vpop.f32.mrf.mxu0 }
  0xe8   :  { %v370_v38 = vadd.f32 %v4672_v59, %v369_v35 }
  0xea   :  { %v447_v40 = vmax.f32 %v370_v38, 0.0  ;;  %v405_v38 = vpop.f32.mrf.mxu3 }
  0xec   :  { %3826 = vmatmul.msk.f32.gmra.mxu1 %vm228_vm0, %v447_v40 }
  0xef   :  { %v372_v42 = vpop.f32.mrf.mxu0 }
  0xf0   :  { %v373_v48 = vadd.f32 %v4672_v59, %v372_v42 }
  0xf2   :  { %v448_v52 = vmax.f32 %v373_v48, 0.0  ;;  %v408_v50 = vpop.f32.mrf.mxu3 }
  0xf4   :  { %3827 = vmatmul.msk.f32.gmra.mxu1 %vm228_vm0, %v448_v52 }
  0xf7   :  { %v375_v56 = vpop.f32.mrf.mxu0 }
  0xf8   :  { %v376_v57 = vadd.f32 %v4672_v59, %v375_v56 }
  0xfa   :  { %v449_v58 = vmax.f32 %v376_v57, 0.0 }
  0xfc   :  { %3828 = vmatmul.msk.f32.gmra.mxu1 %vm228_vm0, %v449_v58 }
  0xff   :  { %v378_v3 = vpop.f32.mrf.mxu0 }
 0x100   :  { %v379_v61 = vadd.f32 %v4672_v59, %v378_v3 }
 0x102   :  { %v450_v62 = vmax.f32 %v379_v61, 0.0 }
 0x104   :  { %3829 = vmatmul.msk.f32.gmra.mxu1 %vm228_vm0, %v450_v62  ;;  %v411_v62 = vpop.f32.mrf.mxu3 }
 0x107   :  { %v381_v0 = vpop.f32.mrf.mxu0 }
 0x108   :  { %v382_v1 = vadd.f32 %v4672_v59, %v381_v0 }
 0x10a   :  { %v451_v2 = vmax.f32 %v382_v1, 0.0  ;;  %v406_v1 = vadd.f32 %v4672_v59, %v405_v38 }
 0x10c   :  { %3830 = vmatmul.msk.f32.gmra.mxu1 %vm228_vm0, %v451_v2  ;;  %v459_v2 = vmax.f32 %v406_v1, 0.0 }
 0x10f   :  { %v384_v4 = vpop.f32.mrf.mxu0 }
 0x110   :  { %v385_v8 = vadd.f32 %v4672_v59, %v384_v4 }
 0x112   :  { %v452_v11 = vmax.f32 %v385_v8, 0.0  ;;  %v414_v8 = vpop.f32.mrf.mxu3 }
 0x114   :  { %3831 = vmatmul.msk.f32.gmra.mxu1 %vm228_vm0, %v452_v11  ;;  %v409_v11 = vadd.f32 %v4672_v59, %v408_v50 }
 0x117   :  { %v387_v12 = vpop.f32.mrf.mxu0 }
 0x118   :  { %v388_v14 = vadd.f32 %v4672_v59, %v387_v12  ;;  %v460_v12 = vmax.f32 %v409_v11, 0.0 }
 0x11a   :  { %v453_v15 = vmax.f32 %v388_v14, 0.0 }
 0x11c   :  { %3832 = vmatmul.msk.f32.gmra.mxu1 %vm228_vm0, %v453_v15  ;;  %v412_v15 = vadd.f32 %v4672_v59, %v411_v62 }
 0x11f   :  { %v390_v17 = vpop.f32.mrf.mxu0 }
 0x120   :  { %v391_v23 = vadd.f32 %v4672_v59, %v390_v17  ;;  %v417_v17 = vpop.f32.mrf.mxu3 }
 0x121   :  { %v4803_v24 = vpop.f32.mrf.mxu1 }
 0x122   :  { %v454_v26 = vmax.f32 %v391_v23, 0.0  ;;  %v461_v23 = vmax.f32 %v412_v15, 0.0 }
 0x124   :  { %3833 = vmatmul.msk.f32.gmra.mxu1 %vm228_vm0, %v454_v26 }
 0x127   :  { %v393_v27 = vpop.f32.mrf.mxu0 }
 0x128   :  { %v394_v29 = vadd.f32 %v4672_v59, %v393_v27  ;;  %v415_v27 = vadd.f32 %v4672_v59, %v414_v8 }
 0x129   :  { %v4807_v35 = vpop.f32.mrf.mxu1 }
 0x12a   :  { %v455_v36 = vmax.f32 %v394_v29, 0.0  ;;  %v420_v29 = vpop.f32.mrf.mxu3 }
 0x12b   :  { %v421_v50 = vadd.f32 %v4672_v59, %v420_v29 }
 0x12c   :  { %3834 = vmatmul.msk.f32.gmra.mxu1 %vm228_vm0, %v455_v36  ;;  %v462_v36 = vmax.f32 %v415_v27, 0.0 }
 0x12f   :  { %v396_v39 = vpop.f32.mrf.mxu0 }
 0x130   :  { %v397_v40 = vadd.f32 %v4672_v59, %v396_v39  ;;  %v418_v39 = vadd.f32 %v4672_v59, %v417_v17 }
 0x131   :  { %v4811_v42 = vpop.f32.mrf.mxu1 }
 0x132   :  { %v456_v45 = vmax.f32 %v397_v40, 0.0  ;;  %v463_v40 = vmax.f32 %v418_v39, 0.0 }
 0x134   :  { %3835 = vmatmul.msk.f32.gmra.mxu1 %vm228_vm0, %v456_v45 }
 0x137   :  { %v399_v48 = vpop.f32.mrf.mxu0 }
 0x138   :  { %v400_v52 = vadd.f32 %v4672_v59, %v399_v48  ;;  %v423_v48 = vpop.f32.mrf.mxu3 }
 0x139   :  { %v4815_v56 = vpop.f32.mrf.mxu1 }
 0x13a   :  { %v457_v57 = vmax.f32 %v400_v52, 0.0  ;;  %v464_v52 = vmax.f32 %v421_v50, 0.0 }
 0x13c   :  { %3836 = vmatmul.msk.f32.vlgmr.msra.gmra.mxu2 %vm228_vm0, %v457_v57 }
 0x13f   :  { %v402_v58 = vpop.f32.mrf.mxu0 }
 0x140   :  { %v403_v3 = vadd.f32 %v4672_v59, %v402_v58  ;;  %v426_v58 = vpop.f32.mrf.mxu3 }
 0x141   :  { %v4819_v61 = vpop.f32.mrf.mxu1  ;;  %v427_v1 = vadd.f32 %v4672_v59, %v426_v58 }
 0x142   :  { %v458_v0 = vmax.f32 %v403_v3, 0.0  ;;  %v424_v3 = vadd.f32 %v4672_v59, %v423_v48  ;;  %v4850_v48 = vld [vmem:[%s6516_s8 + $0x1] ss:$0 sm:$0xff] }
 0x143   :  { %v466_v8 = vmax.f32 %v427_v1, 0.0 }
 0x144   :  { %3837 = vmatmul.msk.f32.gmra.mxu2 %vm228_vm0, %v458_v0  ;;  %v465_v62 = vmax.f32 %v424_v3, 0.0 }
 0x149   :  { %v4823_v4 = vpop.f32.mrf.mxu1 }
 0x14c   :  { %3838 = vmatmul.msk.f32.gmra.mxu2 %vm228_vm0, %v459_v2  ;;  %v429_v2 = vpop.f32.mrf.mxu3 }
 0x151   :  { %v4827_v14 = vpop.f32.mrf.mxu1 }
 0x154   :  { %3839 = vmatmul.msk.f32.gmra.mxu2 %vm228_vm0, %v460_v12  ;;  %v430_v12 = vadd.f32 %v4672_v59, %v429_v2  ;;  %v432_v15 = vpop.f32.mrf.mxu3 }
 0x155   :  { %v433_v27 = vadd.f32 %v4672_v59, %v432_v15 }
 0x156   :  { %v467_v17 = vmax.f32 %v430_v12, 0.0 }
 0x157   :  { %v468_v29 = vmax.f32 %v433_v27, 0.0 }
 0x159   :  { %v610_v26 = vpop.f32.mrf.mxu1 }
 0x15c   :  { %3840 = vmatmul.msk.f32.gmra.mxu2 %vm228_vm0, %v461_v23  ;;  %v435_v39 = vpop.f32.mrf.mxu3 }
 0x161   :  { %v613_v38 = vpop.f32.mrf.mxu1 }
 0x164   :  { %3841 = vmatmul.msk.f32.gmra.mxu2 %vm228_vm0, %v462_v36 }
 0x169   :  { %v616_v45 = vpop.f32.mrf.mxu1 }
 0x16c   :  { %3842 = vmatmul.msk.f32.gmra.mxu2 %vm228_vm0, %v463_v40  ;;  %v436_v40 = vadd.f32 %v4672_v59, %v435_v39 }
 0x16e   :  { %v469_v50 = vmax.f32 %v436_v40, 0.0 }
 0x171   :  { %v619_v57 = vpop.f32.mrf.mxu1 }
 0x172   :  { %v4879_v2 = vadd.f32 %v4850_v48, %v619_v57  ;;  %v4900_v57 = vadd.f32 %v4850_v48, %v4827_v14  ;;  %v4920_v14 = vadd.f32 %v4850_v48, %v4815_v56  ;;  %v4938_v56 = vadd.f32 %v4850_v48, %v4803_v24 }
 0x174   :  { %3843 = vmatmul.msk.f32.gmra.mxu2 %vm228_vm0, %v464_v52 }
 0x179   :  { %v622_v0 = vpop.f32.mrf.mxu1 }
 0x17a   :  { %v4874_v1 = vadd.f32 %v4850_v48, %v622_v0  ;;  %v4894_v0 = vadd.f32 %v4850_v48, %v610_v26  ;;  %v4914_v26 = vadd.f32 %v4850_v48, %v4819_v61  ;;  %v4932_v61 = vadd.f32 %v4850_v48, %v4807_v35 }
 0x17c   :  { %3844 = vmatmul.msk.f32.gmra.mxu2 %vm228_vm0, %v465_v62 }
 0x181   :  { %v625_v11 = vpop.f32.mrf.mxu1 }
 0x182   :  { %v4869_v62 = vadd.f32 %v4850_v48, %v625_v11  ;;  %v4889_v11 = vadd.f32 %v4850_v48, %v613_v38  ;;  %v4908_v38 = vadd.f32 %v4850_v48, %v4823_v4  ;;  %v4926_v4 = vadd.f32 %v4850_v48, %v4811_v42 }
 0x184   :  { %3845 = vmatmul.msk.f32.gmra.mxu2 %vm228_vm0, %v466_v8  ;;  %v4884_v8 = vadd.f32 %v4850_v48, %v616_v45 }
 0x189   :  { %v628_v23 = vpop.f32.mrf.mxu1 }
 0x18a   :  { %v4864_v59 = vadd.f32 %v4850_v48, %v628_v23 }
 0x18c   :  { %3846 = vmatmul.msk.f32.gmra.mxu2 %vm228_vm0, %v467_v17 }
 0x191   :  { %v631_v36 = vpop.f32.mrf.mxu1 }
 0x192   :  { %v4859_v3 = vadd.f32 %v4850_v48, %v631_v36 }
 0x194   :  { %3847 = vmatmul.msk.f32.gmra.mxu2 %vm228_vm0, %v468_v29 }
 0x199   :  { %v634_v52 = vpop.f32.mrf.mxu1 }
 0x19a   :  { %v4853_v58 = vadd.f32 %v4850_v48, %v634_v52 }
 0x19c   :  { %3848 = vmatmul.msk.f32.gmra.mxu2 %vm228_vm0, %v469_v50 }
 0x19d   :  { %3849 = vmatpush.xpose.msk.msrb.mxu2 %vm228_vm0, %v4853_v58 }
 0x1a1   :  { %3850 = vmatpush.xpose.msk.msrb.mxu2 %vm228_vm0, %v4859_v3 }
 0x1a5   :  { %3851 = vmatpush.xpose.msk.msrb.mxu2 %vm228_vm0, %v4864_v59 }
 0x1a9   :  { %3852 = vmatpush.xpose.msk.msrb.mxu2 %vm228_vm0, %v4869_v62 }
 0x1ad   :  { %3853 = vmatpush.xpose.msk.msrb.mxu2 %vm228_vm0, %v4874_v1 }
 0x1b1   :  { %3854 = vmatpush.xpose.msk.msrb.mxu2 %vm228_vm0, %v4879_v2 }
 0x1b5   :  { %3855 = vmatpush.xpose.msk.msrb.mxu2 %vm228_vm0, %v4884_v8 }
 0x1b9   :  { %3856 = vmatpush.xpose.msk.msrb.mxu2 %vm228_vm0, %v4889_v11 }
 0x1bd   :  { %3857 = vmatpush.xpose.msk.msrb.mxu2 %vm228_vm0, %v4894_v0 }
 0x1bf   :  { %v4902_v45 = vpop.f32.mrf.mxu2 }
 0x1c1   :  { %3858 = vmatpush.xpose.msk.msrb.mxu2 %vm228_vm0, %v4900_v57 }
 0x1c5   :  { %3859 = vmatpush.xpose.msk.msrb.mxu2 %vm228_vm0, %v4908_v38 }
 0x1c7   :  { %v649_v12 = vpop.f32.mrf.mxu2 }
 0x1c9   :  { %3860 = vmatpush.xpose.msk.msrb.mxu2 %vm228_vm0, %v4914_v26 }
 0x1cd   :  { %3861 = vmatpush.xpose.msk.msrb.mxu2 %vm228_vm0, %v4920_v14 }
 0x1cf   :  { %v652_v15 = vpop.f32.mrf.mxu2 }
 0x1d0   :  { %v5021_v30 = vadd.f32 %v4850_v48, %v652_v15 }
 0x1d1   :  { %3862 = vmatpush.xpose.msk.msrb.mxu2 %vm228_vm0, %v4926_v4 }
 0x1d5   :  { %3863 = vmatpush.xpose.msk.msrb.mxu2 %vm228_vm0, %v4932_v61 }
 0x1d7   :  { %v655_v17 = vpop.f32.mrf.mxu2 }
 0x1d9   :  { %3864 = vmatpush.xpose.msk.msrb.mxu2 %vm228_vm0, %v4938_v56 }
 0x1dc   :  { %3865 = vmatmul.msk.f32.vlgmr.msrb.gmra.mxu2 %vm228_vm0, %v4938_v56 }
 0x1df   :  { %v658_v42 = vpop.f32.mrf.mxu2 }
 0x1e0   :  { %v5009_v41 = vadd.f32 %v4850_v48, %v658_v42  ;;  %v5026_v42 = vadd.f32 %v4850_v48, %v649_v12 }
 0x1e4   :  { %3866 = vmatmul.msk.f32.gmra.mxu2 %vm228_vm0, %v4932_v61 }
 0x1e7   :  { %v661_v35 = vpop.f32.mrf.mxu2 }
 0x1ec   :  { %3867 = vmatmul.msk.f32.gmra.mxu2 %vm228_vm0, %v4926_v4 }
 0x1ef   :  { %v664_v23 = vpop.f32.mrf.mxu2 }
 0x1f4   :  { %3868 = vmatmul.msk.f32.gmra.mxu2 %vm228_vm0, %v4920_v14 }
 0x1f7   :  { %v667_v24 = vpop.f32.mrf.mxu2 }
 0x1fc   :  { %3869 = vmatmul.msk.f32.gmra.mxu2 %vm228_vm0, %v4914_v26 }
 0x1ff   :  { %v670_v27 = vpop.f32.mrf.mxu2 }
 0x204   :  { %3870 = vmatmul.msk.f32.gmra.mxu2 %vm228_vm0, %v4908_v38 }
 0x207   :  { %v673_v29 = vpop.f32.mrf.mxu2 }
 0x20c   :  { %3871 = vmatmul.msk.f32.gmra.mxu2 %vm228_vm0, %v4900_v57 }
 0x20f   :  { %v676_v36 = vpop.f32.mrf.mxu2 }
 0x210   :  { %v4973_v54 = vadd.f32 %v4850_v48, %v676_v36  ;;  %v4990_v36 = vadd.f32 %v4850_v48, %v667_v24  ;;  %v637_v24 = vpop.f32.mrf.mxu1 }
 0x211   :  { %v638_v9 = vadd.f32 %v4850_v48, %v637_v24  ;;  %v689_v24 = vld [vmem:[#allocation9 + $0x20] sm:$0xff] }
 0x214   :  { %3872 = vmatmul.msk.f32.gmra.mxu2 %vm228_vm0, %v4894_v0 }
 0x217   :  { %v679_v39 = vpop.f32.mrf.mxu2 }
 0x218   :  { %v4966_v52 = vadd.f32 %v4850_v48, %v679_v39  ;;  %v4985_v39 = vadd.f32 %v4850_v48, %v670_v27  ;;  %v5002_v27 = vadd.f32 %v4850_v48, %v661_v35  ;;  %v640_v35 = vpop.f32.mrf.mxu1 }
 0x219   :  { %v5046_v12 = vadd.f32 %v4850_v48, %v640_v35  ;;  %v690_v35 = vld [vmem:[#allocation9 + $0x28] sm:$0xff] }
 0x21c   :  { %3873 = vmatmul.msk.f32.gmra.mxu2 %vm228_vm0, %v4889_v11 }
 0x21f   :  { %v682_v40 = vpop.f32.mrf.mxu2 }
 0x220   :  { %v4961_v50 = vadd.f32 %v4850_v48, %v682_v40  ;;  %v4978_v40 = vadd.f32 %v4850_v48, %v673_v29  ;;  %v4997_v29 = vadd.f32 %v4850_v48, %v664_v23  ;;  %v5014_v23 = vadd.f32 %v4850_v48, %v655_v17  ;;  %v643_v21 = vpop.f32.mrf.mxu1 }
 0x221   :  { %v5034_v17 = vadd.f32 %v4850_v48, %v4902_v45  ;;  %v5039_v15 = vadd.f32 %v4850_v48, %v643_v21 }
 0x222   :  { %3897 = vmatpush.xpose.msk.msrb.mxu3 %vm228_vm0, %v4961_v50 }
 0x224   :  { %3874 = vmatmul.msk.f32.gmra.mxu2 %vm228_vm0, %v4884_v8 }
 0x226   :  { %3898 = vmatpush.xpose.msk.msrb.mxu3 %vm228_vm0, %v4966_v52 }
 0x22a   :  { %3899 = vmatpush.xpose.msk.msrb.mxu3 %vm228_vm0, %v4973_v54 }
 0x22c   :  { %3875 = vmatmul.msk.f32.gmra.mxu2 %vm228_vm0, %v4879_v2 }
 0x22e   :  { %3900 = vmatpush.xpose.msk.msrb.mxu3 %vm228_vm0, %v4978_v40 }
 0x232   :  { %3901 = vmatpush.xpose.msk.msrb.mxu3 %vm228_vm0, %v4985_v39 }
 0x234   :  { %3876 = vmatmul.msk.f32.gmra.mxu2 %vm228_vm0, %v4874_v1 }
 0x236   :  { %3902 = vmatpush.xpose.msk.msrb.mxu3 %vm228_vm0, %v4990_v36 }
 0x23a   :  { %3903 = vmatpush.xpose.msk.msrb.mxu3 %vm228_vm0, %v4997_v29 }
 0x23c   :  { %3877 = vmatmul.msk.f32.gmra.mxu2 %vm228_vm0, %v4869_v62 }
 0x23e   :  { %3904 = vmatpush.xpose.msk.msrb.mxu3 %vm228_vm0, %v5002_v27 }
 0x242   :  { %3905 = vmatpush.xpose.msk.msrb.mxu3 %vm228_vm0, %v5009_v41 }
 0x244   :  { %3878 = vmatmul.msk.f32.gmra.mxu2 %vm228_vm0, %v4864_v59 }
 0x246   :  { %3906 = vmatpush.xpose.msk.msrb.mxu3 %vm228_vm0, %v5014_v23 }
 0x24a   :  { %3907 = vmatpush.xpose.msk.msrb.mxu3 %vm228_vm0, %v5021_v30 }
 0x24c   :  { %3879 = vmatmul.msk.f32.gmra.mxu2 %vm228_vm0, %v4859_v3 }
 0x24e   :  { %3908 = vmatpush.xpose.msk.msrb.mxu3 %vm228_vm0, %v5026_v42 }
 0x252   :  { %3909 = vmatpush.xpose.msk.msrb.mxu3 %vm228_vm0, %v5034_v17 }
 0x254   :  { %3880 = vmatmul.msk.f32.gmra.mxu2 %vm228_vm0, %v4853_v58 }
 0x256   :  { %3910 = vmatpush.xpose.msk.msrb.mxu3 %vm228_vm0, %v5039_v15 }
 0x25a   :  { %3911 = vmatpush.xpose.msk.msrb.mxu3 %vm228_vm0, %v5046_v12 }
 0x25c   :  { %3881 = vmatmul.msk.f32.gmra.mxu2 %vm228_vm0, %v638_v9 }
 0x25e   :  { %3912 = vmatpush.xpose.msk.msrb.mxu3 %vm228_vm0, %v638_v9 }
 0x25f   :  { %v862_v21 = vpop.f32.mrf.mxu2 }
 0x261   :  { %3913 = vmatmul.msk.f32.vlgmr.msrb.gmra.mxu3 %vm228_vm0, %v4938_v56 }
 0x262   :  { %4099 = vmatpush.msra.mxu3 %v4629_v46 }
 0x264   :  { %4100 = vmatpush.msra.mxu3 %v4635_v49  ;;  %3882 = vmatmul.msk.f32.gmra.mxu2 %vm228_vm0, %v5046_v12 }
 0x266   :  { %4101 = vmatpush.msra.mxu3 %v4642_v51 }
 0x267   :  { %v865_v48 = vpop.f32.mrf.mxu2 }
 0x268   :  { %4102 = vmatpush.msra.mxu3 %v4645_v53 }
 0x269   :  { %3914 = vmatmul.msk.f32.gmra.mxu3 %vm228_vm0, %v4932_v61 }
 0x26a   :  { %4103 = vmatpush.msra.mxu3 %v4632_v47 }
 0x26c   :  { %4104 = vmatpush.msra.mxu3 %v4609_v37  ;;  %3883 = vmatmul.msk.f32.gmra.mxu2 %vm228_vm0, %v5039_v15 }
 0x26e   :  { %4105 = vmatpush.msra.mxu3 %v4601_v34 }
 0x26f   :  { %v868_v45 = vpop.f32.mrf.mxu2 }
 0x270   :  { %4106 = vmatpush.msra.mxu3 %v4593_v31 }
 0x271   :  { %3915 = vmatmul.msk.f32.gmra.mxu3 %vm228_vm0, %v4926_v4  ;;  %v688_v4 = vld [vmem:[#allocation9 + $0x18] sm:$0xff] }
 0x272   :  { %4107 = vmatpush.msra.mxu3 %v4585_v28 }
 0x274   :  { %4108 = vmatpush.msra.mxu3 %v4577_v25  ;;  %3884 = vmatmul.msk.f32.gmra.mxu2 %vm228_vm0, %v5034_v17 }
 0x276   :  { %4109 = vmatpush.msra.mxu3 %v4569_v22 }
 0x278   :  { %4110 = vmatpush.msra.mxu3 %v4561_v19 }
 0x279   :  { %3916 = vmatmul.msk.f32.gmra.mxu3 %vm228_vm0, %v4920_v14  ;;  %v687_v14 = vld [vmem:[#allocation9 + $0x10] sm:$0xff] }
 0x27a   :  { %4111 = vmatpush.msra.mxu3 %v4553_v16 }
 0x27c   :  { %4112 = vmatpush.msra.mxu3 %v4545_v13  ;;  %3885 = vmatmul.msk.f32.gmra.mxu2 %vm228_vm0, %v5026_v42 }
 0x27e   :  { %4113 = vmatpush.msra.mxu3 %v4537_v10 }
 0x280   :  { %4114 = vmatpush.msra.mxu3 %v4529_v7 }
 0x281   :  { %3917 = vmatmul.msk.f32.gmra.mxu3 %vm228_vm0, %v4914_v26 }
 0x284   :  { %3886 = vmatmul.msk.f32.gmra.mxu2 %vm228_vm0, %v5021_v30 }
 0x289   :  { %3918 = vmatmul.msk.f32.gmra.mxu3 %vm228_vm0, %v4908_v38 }
 0x28c   :  { %3887 = vmatmul.msk.f32.gmra.mxu2 %vm228_vm0, %v5014_v23 }
 0x291   :  { %3919 = vmatmul.msk.f32.gmra.mxu3 %vm228_vm0, %v4900_v57  ;;  %v871_v57 = vpop.f32.mrf.mxu2 }
 0x294   :  { %3888 = vmatmul.msk.f32.gmra.mxu2 %vm228_vm0, %v5009_v41 }
 0x299   :  { %3920 = vmatmul.msk.f32.gmra.mxu3 %vm228_vm0, %v4894_v0  ;;  %v874_v0 = vpop.f32.mrf.mxu2 }
 0x29c   :  { %3889 = vmatmul.msk.f32.gmra.mxu2 %vm228_vm0, %v5002_v27 }
 0x2a1   :  { %3921 = vmatmul.msk.f32.gmra.mxu3 %vm228_vm0, %v4889_v11  ;;  %v877_v11 = vpop.f32.mrf.mxu2 }
 0x2a4   :  { %3890 = vmatmul.msk.f32.gmra.mxu2 %vm228_vm0, %v4997_v29 }
 0x2a9   :  { %3922 = vmatmul.msk.f32.gmra.mxu3 %vm228_vm0, %v4884_v8  ;;  %v686_v8 = vld [vmem:[#allocation9 + $0x8] sm:$0xff] }
 0x2ac   :  { %3891 = vmatmul.msk.f32.gmra.mxu2 %vm228_vm0, %v4990_v36 }
 0x2b1   :  { %3923 = vmatmul.msk.f32.gmra.mxu3 %vm228_vm0, %v4879_v2  ;;  %v880_v2 = vpop.f32.mrf.mxu2 }
 0x2b4   :  { %3892 = vmatmul.msk.f32.gmra.mxu2 %vm228_vm0, %v4985_v39 }
 0x2b9   :  { %3924 = vmatmul.msk.f32.gmra.mxu3 %vm228_vm0, %v4874_v1  ;;  %v5127_v1 = vpop.f32.mrf.mxu2 }
 0x2bc   :  { %3893 = vmatmul.msk.f32.gmra.mxu2 %vm228_vm0, %v4978_v40 }
 0x2c1   :  { %3925 = vmatmul.msk.f32.gmra.mxu3 %vm228_vm0, %v4869_v62  ;;  %v685_v62 = vld [vmem:[#allocation9] sm:$0xff] }
 0x2c2   :  { %v5134_v38 = vadd.f32 %v862_v21, %v685_v62  ;;  %v5150_v62 = vadd.f32 %v868_v45, %v689_v24 }
 0x2c4   :  { %3894 = vmatmul.msk.f32.gmra.mxu2 %vm228_vm0, %v4973_v54 }
 0x2c9   :  { %3926 = vmatmul.msk.f32.gmra.mxu3 %vm228_vm0, %v4864_v59 }
 0x2cc   :  { %3895 = vmatmul.msk.f32.gmra.mxu2 %vm228_vm0, %v4966_v52 }
 0x2d1   :  { %3927 = vmatmul.msk.f32.gmra.mxu3 %vm228_vm0, %v4859_v3 }
 0x2d4   :  { %3896 = vmatmul.msk.f32.gmra.mxu2 %vm228_vm0, %v4961_v50 }
 0x2d9   :  { %3928 = vmatmul.msk.f32.gmra.mxu3 %vm228_vm0, %v4853_v58  ;;  %v5142_v58 = vadd.f32 %v865_v48, %v687_v14 }
 0x2e1   :  { %3929 = vmatmul.msk.f32.gmra.mxu3 %vm228_vm0, %v638_v9 }
 0x2e4   :  { %v975_v59 = vpop.f32.mrf.mxu3 }
 0x2e5   :  { %v5136_v26 = vadd.f32 %v975_v59, %v686_v8  ;;  %v691_v8 = vld [vmem:[#allocation9 + $0x30] sm:$0xff]  ;;  %v692_v59 = vld [vmem:[#allocation9 + $0x38] sm:$0xff] }
 0x2e6   :  { %v5158_v14 = vadd.f32 %v871_v57, %v691_v8 }
 0x2e7   :  { %v1071_v3 = vmax.f32 %v5134_v38, %v5136_v26 }
 0x2e9   :  { %3930 = vmatmul.msk.f32.gmra.mxu3 %vm228_vm0, %v5046_v12  ;;  %1072 = vmax.xlane.f32.xlu0 %v1071_v3 }
 0x2ec   :  { %v978_v61 = vpop.f32.mrf.mxu3 }
 0x2ed   :  { %v5144_v9 = vadd.f32 %v978_v61, %v688_v4  ;;  %v693_v4 = vld [vmem:[#allocation9 + $0x40] sm:$0xff]  ;;  %v694_v61 = vld [vmem:[#allocation9 + $0x48] sm:$0xff] }
 0x2ee   :  { %v5166_v24 = vadd.f32 %v874_v0, %v693_v4 }
 0x2ef   :  { %v1074_v56 = vmax.f32 %v5142_v58, %v5144_v9 }
 0x2f1   :  { %3931 = vmatmul.msk.f32.gmra.mxu3 %vm228_vm0, %v5039_v15  ;;  %1075 = vmax.xlane.f32.xlu0 %v1074_v56 }
 0x2f4   :  { %v981_v21 = vpop.f32.mrf.mxu3 }
 0x2f5   :  { %v5152_v12 = vadd.f32 %v981_v21, %v690_v35  ;;  %v695_v35 = vld [vmem:[#allocation9 + $0x50] sm:$0xff]  ;;  %v696_v21 = vld [vmem:[#allocation9 + $0x58] sm:$0xff] }
 0x2f6   :  { %v5174_v8 = vadd.f32 %v877_v11, %v695_v35 }
 0x2f7   :  { %v1077_v48 = vmax.f32 %v5150_v62, %v5152_v12 }
 0x2f9   :  { %3932 = vmatmul.msk.f32.gmra.mxu3 %vm228_vm0, %v5034_v17  ;;  %1078 = vmax.xlane.f32.xlu1 %v1077_v48 }
 0x2fc   :  { %v984_v3 = vpop.f32.mrf.mxu3 }
 0x2fd   :  { %v5160_v15 = vadd.f32 %v984_v3, %v692_v59  ;;  %v697_v59 = vld [vmem:[#allocation9 + $0x60] sm:$0xff]  ;;  %v698_v3 = vld [vmem:[#allocation9 + $0x68] sm:$0xff] }
 0x2fe   :  { %v5182_v4 = vadd.f32 %v880_v2, %v697_v59 }
 0x2ff   :  { %v1080_v45 = vmax.f32 %v5158_v14, %v5160_v15 }
 0x301   :  { %3933 = vmatmul.msk.f32.gmra.mxu3 %vm228_vm0, %v5026_v42  ;;  %1081 = vmax.xlane.f32.xlu1 %v1080_v45 }
 0x304   :  { %v987_v56 = vpop.f32.mrf.mxu3 }
 0x305   :  { %v5168_v17 = vadd.f32 %v987_v56, %v694_v61  ;;  %v699_v61 = vld [vmem:[#allocation9 + $0x70] sm:$0xff]  ;;  %v700_v56 = vld [vmem:[#allocation9 + $0x78] sm:$0xff] }
 0x307   :  { %v1083_v57 = vmax.f32 %v5166_v24, %v5168_v17 }
 0x309   :  { %3934 = vmatmul.msk.f32.gmra.mxu3 %vm228_vm0, %v5021_v30  ;;  %1084 = vmax.xlane.f32.xlu2 %v1083_v57 }
 0x30c   :  { %v990_v48 = vpop.f32.mrf.mxu3 }
 0x30d   :  { %v5176_v42 = vadd.f32 %v990_v48, %v696_v21 }
 0x30f   :  { %v1086_v0 = vmax.f32 %v5174_v8, %v5176_v42 }
 0x311   :  { %3935 = vmatmul.msk.f32.gmra.mxu3 %vm228_vm0, %v5014_v23  ;;  %1087 = vmax.xlane.f32.xlu2 %v1086_v0  ;;  %v5191_v23 = vadd.f32 %v5127_v1, %v699_v61  ;;  %v886_v1 = vpop.f32.mrf.mxu2 }
 0x314   :  { %v993_v45 = vpop.f32.mrf.mxu3 }
 0x315   :  { %v5184_v30 = vadd.f32 %v993_v45, %v698_v3  ;;  %v702_v45 = vld [vmem:[#allocation9 + $0x88] sm:$0xff] }
 0x317   :  { %v1089_v11 = vmax.f32 %v5182_v4, %v5184_v30 }
 0x319   :  { %3936 = vmatmul.msk.f32.gmra.mxu3 %vm228_vm0, %v5009_v41  ;;  %1090 = vmax.xlane.f32.xlu0 %v1089_v11  ;;  %v701_v11 = vld [vmem:[#allocation9 + $0x80] sm:$0xff] }
 0x31c   :  { %v996_v57 = vpop.f32.mrf.mxu3 }
 0x31d   :  { %v5193_v35 = vadd.f32 %v996_v57, %v700_v56 }
 0x31f   :  { %v1092_v2 = vmax.f32 %v5191_v23, %v5193_v35 }
 0x321   :  { %3937 = vmatmul.msk.f32.gmra.mxu3 %vm228_vm0, %v5002_v27  ;;  %1093 = vmax.xlane.f32.xlu2 %v1092_v2  ;;  %v5229_v2 = vadd.f32 %v886_v1, %v701_v11 }
 0x324   :  { %v999_v41 = vpop.f32.mrf.mxu3 }
 0x329   :  { %3938 = vmatmul.msk.f32.gmra.mxu3 %vm228_vm0, %v4997_v29 }
 0x331   :  { %3939 = vmatmul.msk.f32.gmra.mxu3 %vm228_vm0, %v4990_v36 }
 0x339   :  { %3940 = vmatmul.msk.f32.gmra.mxu3 %vm228_vm0, %v4985_v39 }
 0x341   :  { %3941 = vmatmul.msk.f32.gmra.mxu3 %vm228_vm0, %v4978_v40 }
 0x349   :  { %3942 = vmatmul.msk.f32.gmra.mxu3 %vm228_vm0, %v4973_v54 }
 0x351   :  { %3943 = vmatmul.msk.f32.gmra.mxu3 %vm228_vm0, %v4966_v52  ;;  %v1002_v52 = vpop.f32.mrf.mxu3 }
 0x359   :  { %3944 = vmatmul.msk.f32.gmra.mxu3 %vm228_vm0, %v4961_v50 }
 0x35c   :  { %v1073_v29 = vpop.xlane.xlu0 %1072 }
 0x35d   :  { %v1167_v27 = vsub.f32 %v5134_v38, %v1073_v29  ;;  %v1168_v36 = vsub.f32 %v5136_v26, %v1073_v29  ;;  %v889_v38 = vpop.f32.mrf.mxu2 }
 0x35f   :  { %v1231_v39 = vmul.f32 1.442695, %v1167_v27  ;;  %v1233_v21 = vmul.f32 1.442695, %v1168_v36 }
 0x361   :  { %4133 = vpow2.f32 %v1231_v39  ;;  %v1005_v39 = vpop.f32.mrf.mxu3 }
 0x362   :  { %4135 = vpow2.f32 %v1233_v21 }
 0x364   :  { %v1076_v40 = vpop.xlane.xlu0 %1075 }
 0x365   :  { %v1169_v54 = vsub.f32 %v5142_v58, %v1076_v40  ;;  %v1170_v48 = vsub.f32 %v5144_v9, %v1076_v40  ;;  %v5223_v58 = vadd.f32 %v999_v41, %v702_v45  ;;  %v892_v40 = vpop.f32.mrf.mxu2 }
 0x367   :  { %v5217_v0 = vpop.eup %4133  ;;  %v1235_v50 = vmul.f32 1.442695, %v1169_v54  ;;  %v1237_v59 = vmul.f32 1.442695, %v1170_v48  ;;  %v1095_v21 = vmax.f32 %v5229_v2, %v5223_v58 }
 0x368   :  { %v5219_v3 = vpop.eup %4135 }
 0x369   :  { %4137 = vpow2.f32 %v1235_v50  ;;  %v1359_v26 = vadd.f32 %v5219_v3, %v5217_v0 }
 0x36a   :  { %4139 = vpow2.f32 %v1237_v59 }
 0x36b   :  { %1360 = vadd.xlane.f32.xlu1 %v1359_v26 }
 0x36c   :  { %v1079_v61 = vpop.xlane.xlu1 %1078 }
 0x36d   :  { %v1171_v9 = vsub.f32 %v5150_v62, %v1079_v61  ;;  %v1172_v56 = vsub.f32 %v5152_v12, %v1079_v61  ;;  %v704_v62 = vld [vmem:[#allocation9 + $0x98] sm:$0xff]  ;;  %v703_v12 = vld [vmem:[#allocation9 + $0x90] sm:$0xff] }
 0x36e   :  { %v5237_v54 = vadd.f32 %v1002_v52, %v704_v62  ;;  %v5243_v26 = vadd.f32 %v889_v38, %v703_v12 }
 0x36f   :  { %v5227_v57 = vpop.eup %4137  ;;  %v1239_v29 = vmul.f32 1.442695, %v1171_v9  ;;  %v1241_v27 = vmul.f32 1.442695, %v1172_v56  ;;  %v706_v56 = vld [vmem:[#allocation9 + $0xa8] sm:$0xff] }
 0x370   :  { %v5231_v36 = vpop.eup %4139  ;;  %v1098_v52 = vmax.f32 %v5243_v26, %v5237_v54 }
 0x371   :  { %4141 = vpow2.f32 %v1239_v29  ;;  %v1362_v41 = vadd.f32 %v5231_v36, %v5227_v57  ;;  %v1008_v29 = vpop.f32.mrf.mxu3 }
 0x372   :  { %4143 = vpow2.f32 %v1241_v27  ;;  %v5251_v27 = vadd.f32 %v1005_v39, %v706_v56 }
 0x373   :  { %1096 = vmax.xlane.f32.xlu1 %v1095_v21  ;;  %1363 = vadd.xlane.f32.xlu0 %v1362_v41 }
 0x374   :  { %v1082_v1 = vpop.xlane.xlu1 %1081 }
 0x375   :  { %v1173_v48 = vsub.f32 %v5158_v14, %v1082_v1  ;;  %v1174_v50 = vsub.f32 %v5160_v15, %v1082_v1  ;;  %v705_v14 = vld [vmem:[#allocation9 + $0xa0] sm:$0xff]  ;;  %v895_v15 = vpop.f32.mrf.mxu2 }
 0x376   :  { %v5257_v12 = vadd.f32 %v892_v40, %v705_v14 }
 0x377   :  { %v5241_v59 = vpop.eup %4141  ;;  %v1243_v45 = vmul.f32 1.442695, %v1173_v48  ;;  %v1245_v11 = vmul.f32 1.442695, %v1174_v50 }
 0x378   :  { %v5245_v61 = vpop.eup %4143 }
 0x379   :  { %4145 = vpow2.f32 %v1243_v45  ;;  %v1365_v9 = vadd.f32 %v5245_v61, %v5241_v59  ;;  %v1101_v45 = vmax.f32 %v5257_v12, %v5251_v27 }
 0x37a   :  { %4147 = vpow2.f32 %v1245_v11  ;;  %v708_v11 = vld [vmem:[#allocation9 + $0xb8] sm:$0xff] }
 0x37b   :  { %1366 = vadd.xlane.f32.xlu2 %v1365_v9  ;;  %1099 = vmax.xlane.f32.xlu0 %v1098_v52  ;;  %v5265_v40 = vadd.f32 %v1008_v29, %v708_v11 }
 0x37c   :  { %v1085_v38 = vpop.xlane.xlu2 %1084 }
 0x37d   :  { %v1175_v21 = vsub.f32 %v5166_v24, %v1085_v38  ;;  %v1176_v41 = vsub.f32 %v5168_v17, %v1085_v38  ;;  %v707_v24 = vld [vmem:[#allocation9 + $0xb0] sm:$0xff]  ;;  %v1011_v17 = vpop.f32.mrf.mxu3  ;;  %v898_v14 = vpop.f32.mrf.mxu2 }
 0x37f   :  { %v5255_v62 = vpop.eup %4145  ;;  %v1247_v1 = vmul.f32 1.442695, %v1175_v21  ;;  %v1249_v48 = vmul.f32 1.442695, %v1176_v41  ;;  %v5271_v21 = vadd.f32 %v895_v15, %v707_v24 }
 0x380   :  { %v5259_v50 = vpop.eup %4147 }
 0x381   :  { %4149 = vpow2.f32 %v1247_v1  ;;  %v1368_v39 = vadd.f32 %v5259_v50, %v5255_v62 }
 0x382   :  { %4151 = vpow2.f32 %v1249_v48  ;;  %v1104_v48 = vmax.f32 %v5271_v21, %v5265_v40 }
 0x383   :  { %1102 = vmax.xlane.f32.xlu2 %v1101_v45  ;;  %1369 = vadd.xlane.f32.xlu1 %v1368_v39  ;;  %v710_v45 = vld [vmem:[#allocation9 + $0xc8] sm:$0xff] }
 0x384   :  { %v1088_v9 = vpop.xlane.xlu2 %1087  ;;  %v5279_v39 = vadd.f32 %v1011_v17, %v710_v45 }
 0x385   :  { %v1177_v52 = vsub.f32 %v5174_v8, %v1088_v9  ;;  %v1178_v56 = vsub.f32 %v5176_v42, %v1088_v9  ;;  %v709_v8 = vld [vmem:[#allocation9 + $0xc0] sm:$0xff]  ;;  %v1014_v24 = vpop.f32.mrf.mxu3 }
 0x387   :  { %v5269_v38 = vpop.eup %4149  ;;  %v1251_v41 = vmul.f32 1.442695, %v1177_v52  ;;  %v1253_v1 = vmul.f32 1.442695, %v1178_v56  ;;  %v5285_v52 = vadd.f32 %v898_v14, %v709_v8 }
 0x388   :  { %v5273_v63 = vpop.eup %4151 }
 0x389   :  { %4153 = vpow2.f32 %v1251_v41  ;;  %v1371_v29 = vadd.f32 %v5273_v63, %v5269_v38  ;;  %v1107_v17 = vmax.f32 %v5285_v52, %v5279_v39 }
 0x38a   :  { %4155 = vpow2.f32 %v1253_v1  ;;  %v901_v1 = vpop.f32.mrf.mxu2 }
 0x38b   :  { %1105 = vmax.xlane.f32.xlu1 %v1104_v48  ;;  %1372 = vadd.xlane.f32.xlu0 %v1371_v29 }
 0x38c   :  { %v1091_v42 = vpop.xlane.xlu0 %1090 }
 0x38d   :  { %v1179_v15 = vsub.f32 %v5182_v4, %v1091_v42  ;;  %v1180_v11 = vsub.f32 %v5184_v30, %v1091_v42  ;;  %v712_v4 = vld [vmem:[#allocation9 + $0xd8] sm:$0xff]  ;;  %v711_v30 = vld [vmem:[#allocation9 + $0xd0] sm:$0xff]  ;;  %v1017_v32 = vpop.f32.mrf.mxu3 }
 0x38e   :  { %v5293_v14 = vadd.f32 %v1014_v24, %v712_v4 }
 0x38f   :  { %v5283_v9 = vpop.eup %4153  ;;  %v1255_v56 = vmul.f32 1.442695, %v1179_v15  ;;  %v1257_v41 = vmul.f32 1.442695, %v1180_v11  ;;  %v5299_v15 = vadd.f32 %v901_v1, %v711_v30 }
 0x390   :  { %v5287_v55 = vpop.eup %4155 }
 0x391   :  { %4157 = vpow2.f32 %v1255_v56  ;;  %v1374_v48 = vadd.f32 %v5287_v55, %v5283_v9 }
 0x392   :  { %4159 = vpow2.f32 %v1257_v41  ;;  %v1110_v41 = vmax.f32 %v5299_v15, %v5293_v14 }
 0x393   :  { %1375 = vadd.xlane.f32.xlu2 %v1374_v48  ;;  %1108 = vmax.xlane.f32.xlu0 %v1107_v17  ;;  %v904_v48 = vpop.f32.mrf.mxu2 }
 0x394   :  { %v1094_v29 = vpop.xlane.xlu2 %1093 }
 0x395   :  { %v1181_v45 = vsub.f32 %v5191_v23, %v1094_v29  ;;  %v1182_v8 = vsub.f32 %v5193_v35, %v1094_v29  ;;  %v714_v23 = vld [vmem:[#allocation9 + $0xe8] sm:$0xff]  ;;  %v713_v35 = vld [vmem:[#allocation9 + $0xe0] sm:$0xff] }
 0x396   :  { %v5307_v1 = vadd.f32 %v1017_v32, %v714_v23  ;;  %v5311_v4 = vadd.f32 %v904_v48, %v713_v35 }
 0x397   :  { %v5297_v42 = vpop.eup %4157  ;;  %v1259_v11 = vmul.f32 1.442695, %v1181_v45  ;;  %v1261_v56 = vmul.f32 1.442695, %v1182_v8  ;;  %v716_v8 = vld [vmem:[#allocation9 + $0xf8] sm:$0xff] }
 0x398   :  { %v5301_v43 = vpop.eup %4159  ;;  %v1113_v45 = vmax.f32 %v5311_v4, %v5307_v1 }
 0x399   :  { %4161 = vpow2.f32 %v1259_v11  ;;  %v1377_v24 = vadd.f32 %v5301_v43, %v5297_v42  ;;  %v1020_v11 = vpop.f32.mrf.mxu3 }
 0x39a   :  { %4163 = vpow2.f32 %v1261_v56  ;;  %v715_v56 = vld [vmem:[#allocation9 + $0xf0] sm:$0xff]  ;;  %v5319_v32 = vadd.f32 %v1020_v11, %v716_v8 }
 0x39b   :  { %1111 = vmax.xlane.f32.xlu2 %v1110_v41  ;;  %1378 = vadd.xlane.f32.xlu1 %v1377_v24  ;;  %v907_v41 = vpop.f32.mrf.mxu2 }
 0x39c   :  { %v5321_v24 = vadd.f32 %v907_v41, %v715_v56 }
 0x39e   :  { %v1116_v48 = vmax.f32 %v5321_v24, %v5319_v32 }
 0x39f   :  { %v5309_v17 = vpop.eup %4161 }
 0x3a0   :  { %v5313_v30 = vpop.eup %4163 }
 0x3a1   :  { %v1380_v29 = vadd.f32 %v5313_v30, %v5309_v17  ;;  %v1023_v18 = vpop.f32.mrf.mxu3 }
 0x3a3   :  { %1381 = vadd.xlane.f32.xlu0 %v1380_v29  ;;  %1114 = vmax.xlane.f32.xlu1 %v1113_v45  ;;  %v910_v20 = vpop.f32.mrf.mxu2 }
 0x3ab   :  { %1117 = vmax.xlane.f32.xlu0 %v1116_v48 }
 0x3de   :  { %v1361_v23 = vpop.xlane.xlu1 %1360 }
 0x3df   :  { %4165 = vrcp.f32 %v1361_v23  ;;  %v1466_v11 = vand.u32 2147483648, %v1361_v23  ;;  %v1464_v48 = vand.u32 2147483647, %v1361_v23  ;;  %vm1460_vm2 = vweird.f32 %v1361_v23 }
 0x3e1   :  { %v1467_v49 = vor.u32 1.1754944e-38, %v1466_v11  ;;  %vm1465_vm4 = vcmp.eq.f32.partialorder %v1464_v48, 8.507059e+37 }
 0x3e5   :  { %v4166_v35 = vpop.eup %4165 }
 0x3e6   :  { %v1456_v5 = vmul.f32 %v4166_v35, %v1361_v23  ;;  %v1097_v44 = vpop.xlane.xlu1 %1096  ;;  %v1364_v33 = vpop.xlane.xlu0 %1363  ;;  %vm1461_vm1 = vweird.f32 %v4166_v35 }
 0x3e7   :  { %v1183_v29 = vsub.f32 %v5229_v2, %v1097_v44  ;;  %v1184_v45 = vsub.f32 %v5223_v58, %v1097_v44  ;;  %4167 = vrcp.f32 %v1364_v33  ;;  %vm1462_vm3 = vmor %vm1460_vm2, %vm1461_vm1  ;;  %vm1476_vm6 = vweird.f32 %v1364_v33 }
 0x3e8   :  { %v1457_v8 = vsub.f32 1.0, %v1456_v5  ;;  %v5329_v5 = vpop.f32.mrf.mxu3 }
 0x3e9   :  { %v1263_v56 = vmul.f32 1.442695, %v1183_v29  ;;  %v1265_v41 = vmul.f32 1.442695, %v1184_v45 }
 0x3ea   :  { %v1458_v6 = vmul.f32 %v4166_v35, %v1457_v8 }
 0x3eb   :  { %4169 = vpow2.f32 %v1263_v56  ;;  %v5338_v56 = vpop.f32.mrf.mxu2 }
 0x3ec   :  { %4171 = vpow2.f32 %v1265_v41  ;;  %v1459_v60 = vadd.f32 %v4166_v35, %v1458_v6 }
 0x3ed   :  { %v4168_v46 = vpop.eup %4167 }
 0x3ee   :  { %v1472_v51 = vmul.f32 %v4168_v46, %v1364_v33  ;;  %v5327_v53 = vpop.xlane.xlu2 %1366  ;;  %v1100_v2 = vpop.xlane.xlu0 %1099  ;;  %v1463_v44 = vsel %vm1462_vm3, %v4166_v35, %v1459_v60  ;;  %vm1477_vm5 = vweird.f32 %v4168_v46 }
 0x3ef   :  { %4173 = vrcp.f32 %v5327_v53  ;;  %v1185_v58 = vsub.f32 %v5243_v26, %v1100_v2  ;;  %v1186_v29 = vsub.f32 %v5237_v54, %v1100_v2  ;;  %v1468_v23 = vsel %vm1465_vm4, %v1467_v49, %v1463_v44  ;;  %v718_v54 = vld [vmem:[#allocation9 + $0x108] sm:$0xff]  ;;  %v717_v2 = vld [vmem:[#allocation9 + $0x100] sm:$0xff]  ;;  %vm1478_vm7 = vmor %vm1476_vm6, %vm1477_vm5 }
 0x3f0   :  { %v1473_v45 = vsub.f32 1.0, %v1472_v51  ;;  %v1469_v6 = vmul.f32 %v5217_v0, %v1468_v23  ;;  %v1470_v8 = vmul.f32 %v5219_v3, %v1468_v23  ;;  %v1482_v26 = vand.u32 2147483648, %v1364_v33 }
 0x3f1   :  { %v5336_v11 = vpop.eup %4169  ;;  %v1267_v60 = vmul.f32 1.442695, %v1185_v58  ;;  %v1269_v35 = vmul.f32 1.442695, %v1186_v29  ;;  %v1480_v51 = vand.u32 2147483647, %v1364_v33  ;;  %v5344_v44 = vadd.f32 %v1023_v18, %v718_v54  ;;  %v5356_v54 = vpop.f32.mrf.mxu3 }
 0x3f2   :  { %v5340_v41 = vpop.eup %4171  ;;  %v1474_v48 = vmul.f32 %v4168_v46, %v1473_v45  ;;  %1983 = vmatmul.f32.vlgmr.msrb.gmra.mxu0 %v1469_v6  ;;  %2096 = vmatmul.f32.vlgmr.msrb.gmra.mxu1 %v1470_v8  ;;  %v1483_v6 = vor.u32 1.1754944e-38, %v1482_v26  ;;  %v5352_v33 = vadd.f32 %v910_v20, %v717_v2  ;;  %vm1492_vm10 = vweird.f32 %v5327_v53 }
 0x3f3   :  { %4175 = vpow2.f32 %v1267_v60  ;;  %v1383_v49 = vadd.f32 %v5340_v41, %v5336_v11  ;;  %vm1481_vm8 = vcmp.eq.f32.partialorder %v1480_v51, 8.507059e+37  ;;  %v1498_v51 = vand.u32 2147483648, %v5327_v53  ;;  %v5363_v20 = vpop.f32.mrf.mxu2 }
 0x3f4   :  { %4177 = vpow2.f32 %v1269_v35  ;;  %v1475_v0 = vadd.f32 %v4168_v46, %v1474_v48  ;;  %v1119_v2 = vmax.f32 %v5352_v33, %v5344_v44 }
 0x3f5   :  { %v4174_v3 = vpop.eup %4173  ;;  %1384 = vadd.xlane.f32.xlu2 %v1383_v49 }
 0x3f6   :  { %v1488_v58 = vmul.f32 %v4174_v3, %v5327_v53  ;;  %v1103_v29 = vpop.xlane.xlu2 %1102  ;;  %v5347_v23 = vpop.xlane.xlu1 %1369  ;;  %v1479_v45 = vsel %vm1478_vm7, %v4168_v46, %v1475_v0  ;;  %vm1493_vm9 = vweird.f32 %v4174_v3  ;;  %v720_v0 = vld [vmem:[#allocation9 + $0x118] sm:$0xff] }
 0x3f7   :  { %v1187_v8 = vsub.f32 %v5257_v12, %v1103_v29  ;;  %v1188_v60 = vsub.f32 %v5251_v27, %v1103_v29  ;;  %4179 = vrcp.f32 %v5347_v23  ;;  %v1484_v48 = vsel %vm1481_vm8, %v1483_v6, %v1479_v45  ;;  %v719_v45 = vld [vmem:[#allocation9 + $0x110] sm:$0xff]  ;;  %vm1494_vm11 = vmor %vm1492_vm10, %vm1493_vm9 }
 0x3f8   :  { %v1489_v35 = vsub.f32 1.0, %v1488_v58  ;;  %v1485_v46 = vmul.f32 %v5227_v57, %v1484_v48  ;;  %v1486_v26 = vmul.f32 %v5231_v36, %v1484_v48  ;;  %v1496_v36 = vand.u32 2147483647, %v5327_v53 }
 0x3f9   :  { %v5354_v18 = vpop.eup %4175  ;;  %v1271_v49 = vmul.f32 1.442695, %v1187_v8  ;;  %v1273_v47 = vmul.f32 1.442695, %v1188_v60  ;;  %v5373_v6 = vadd.f32 %v5329_v5, %v720_v0  ;;  %vm1508_vm14 = vweird.f32 %v5347_v23 }
 0x3fa   :  { %v5360_v12 = vpop.eup %4177  ;;  %v1490_v27 = vmul.f32 %v4174_v3, %v1489_v35  ;;  %1986 = vmatmul.f32.gmra.mxu0 %v1485_v46  ;;  %2099 = vmatmul.f32.gmra.mxu1 %v1486_v26  ;;  %vm1497_vm12 = vcmp.eq.f32.partialorder %v1496_v36, 8.507059e+37  ;;  %v5382_v46 = vadd.f32 %v5338_v56, %v719_v45  ;;  %v1032_v36 = vpop.f32.mrf.mxu3  ;;  %v722_v45 = vld [vmem:[#allocation9 + $0x128] sm:$0xff] }
 0x3fb   :  { %4181 = vpow2.f32 %v1271_v49  ;;  %v1386_v57 = vadd.f32 %v5360_v12, %v5354_v18  ;;  %v1499_v49 = vor.u32 1.1754944e-38, %v1498_v51 }
 0x3fc   :  { %4183 = vpow2.f32 %v1273_v47  ;;  %v1491_v58 = vadd.f32 %v4174_v3, %v1490_v27 }
 0x3fd   :  { %v4180_v29 = vpop.eup %4179  ;;  %1120 = vmax.xlane.f32.xlu2 %v1119_v2  ;;  %1387 = vadd.xlane.f32.xlu1 %v1386_v57 }
 0x3fe   :  { %v1504_v8 = vmul.f32 %v4180_v29, %v5347_v23  ;;  %v1106_v60 = vpop.xlane.xlu1 %1105  ;;  %v5376_v35 = vpop.xlane.xlu0 %1372  ;;  %v1495_v48 = vsel %vm1494_vm11, %v4174_v3, %v1491_v58  ;;  %vm1509_vm13 = vweird.f32 %v4180_v29  ;;  %v1122_v58 = vmax.f32 %v5382_v46, %v5373_v6 }
 0x3ff   :  { %v1189_v47 = vsub.f32 %v5271_v21, %v1106_v60  ;;  %v1190_v53 = vsub.f32 %v5265_v40, %v1106_v60  ;;  %4185 = vrcp.f32 %v5376_v35  ;;  %v1500_v5 = vsel %vm1497_vm12, %v1499_v49, %v1495_v48  ;;  %v919_v60 = vpop.f32.mrf.mxu2  ;;  %vm1510_vm15 = vmor %vm1508_vm14, %vm1509_vm13  ;;  %v721_v48 = vld [vmem:[#allocation9 + $0x120] sm:$0xff] }
 0x400   :  { %v1505_v26 = vsub.f32 1.0, %v1504_v8  ;;  %v1501_v57 = vmul.f32 %v5241_v59, %v1500_v5  ;;  %v1502_v3 = vmul.f32 %v5245_v61, %v1500_v5  ;;  %v1514_v40 = vand.u32 2147483648, %v5347_v23 }
 0x401   :  { %v5384_v27 = vpop.eup %4181  ;;  %v1275_v0 = vmul.f32 1.442695, %v1189_v47  ;;  %v1277_v2 = vmul.f32 1.442695, %v1190_v53  ;;  %v1512_v59 = vand.u32 2147483647, %v5347_v23  ;;  %vm1524_vm3 = vweird.f32 %v5376_v35 }
 0x402   :  { %v5388_v51 = vpop.eup %4183  ;;  %v1506_v21 = vmul.f32 %v4180_v29, %v1505_v26  ;;  %1989 = vmatmul.f32.gmra.mxu0 %v1501_v57  ;;  %2102 = vmatmul.f32.gmra.mxu1 %v1502_v3  ;;  %v1515_v49 = vor.u32 1.1754944e-38, %v1514_v40  ;;  %v5410_v40 = vadd.f32 %v5363_v20, %v721_v48 }
 0x403   :  { %4187 = vpow2.f32 %v1275_v0  ;;  %v1389_v56 = vadd.f32 %v5388_v51, %v5384_v27  ;;  %v5402_v0 = vadd.f32 %v5356_v54, %v722_v45  ;;  %vm1513_vm1 = vcmp.eq.f32.partialorder %v1512_v59, 8.507059e+37 }
 0x404   :  { %4189 = vpow2.f32 %v1277_v2  ;;  %v1507_v61 = vadd.f32 %v4180_v29, %v1506_v21 }
 0x405   :  { %v4186_v8 = vpop.eup %4185  ;;  %1390 = vadd.xlane.f32.xlu0 %v1389_v56  ;;  %1123 = vmax.xlane.f32.xlu1 %v1122_v58  ;;  %v1125_v20 = vmax.f32 %v5410_v40, %v5402_v0 }
 0x406   :  { %v1520_v47 = vmul.f32 %v4186_v8, %v5376_v35  ;;  %v5399_v53 = vpop.xlane.xlu2 %1375  ;;  %v1109_v26 = vpop.xlane.xlu0 %1108  ;;  %v1511_v5 = vsel %vm1510_vm15, %v4180_v29, %v1507_v61  ;;  %vm1525_vm2 = vweird.f32 %v4186_v8  ;;  %v724_v61 = vld [vmem:[#allocation9 + $0x138] sm:$0xff] }
 0x407   :  { %4191 = vrcp.f32 %v5399_v53  ;;  %v1191_v23 = vsub.f32 %v5285_v52, %v1109_v26  ;;  %v1192_v57 = vsub.f32 %v5279_v39, %v1109_v26  ;;  %v1516_v3 = vsel %vm1513_vm1, %v1515_v49, %v1511_v5  ;;  %v723_v49 = vld [vmem:[#allocation9 + $0x130] sm:$0xff]  ;;  %vm1526_vm4 = vmor %vm1524_vm3, %vm1525_vm2 }
 0x408   :  { %v1521_v2 = vsub.f32 1.0, %v1520_v47  ;;  %v1517_v29 = vmul.f32 %v5255_v62, %v1516_v3  ;;  %v1518_v54 = vmul.f32 %v5259_v50, %v1516_v3  ;;  %v1530_v52 = vand.u32 2147483648, %v5376_v35  ;;  %v1035_v47 = vpop.f32.mrf.mxu3 }
 0x409   :  { %v5407_v21 = vpop.eup %4187  ;;  %v1279_v56 = vmul.f32 1.442695, %v1191_v23  ;;  %v1281_v59 = vmul.f32 1.442695, %v1192_v57  ;;  %v1528_v62 = vand.u32 2147483647, %v5376_v35  ;;  %v5424_v26 = vadd.f32 %v1032_v36, %v724_v61 }
 0x40a   :  { %v5414_v58 = vpop.eup %4189  ;;  %v1522_v45 = vmul.f32 %v4186_v8, %v1521_v2  ;;  %1992 = vmatmul.f32.gmra.mxu0 %v1517_v29  ;;  %2105 = vmatmul.f32.gmra.mxu1 %v1518_v54  ;;  %v1531_v5 = vor.u32 1.1754944e-38, %v1530_v52  ;;  %v5432_v29 = vadd.f32 %v919_v60, %v723_v49  ;;  %v922_v54 = vpop.f32.mrf.mxu2  ;;  %vm1540_vm7 = vweird.f32 %v5399_v53 }
 0x40b   :  { %4193 = vpow2.f32 %v1279_v56  ;;  %v1392_v39 = vadd.f32 %v5414_v58, %v5407_v21  ;;  %vm1529_vm5 = vcmp.eq.f32.partialorder %v1528_v62, 8.507059e+37  ;;  %v726_v62 = vld [vmem:[#allocation9 + $0x148] sm:$0xff] }
 0x40c   :  { %4195 = vpow2.f32 %v1281_v59  ;;  %v1523_v50 = vadd.f32 %v4186_v8, %v1522_v45  ;;  %v1128_v60 = vmax.f32 %v5432_v29, %v5424_v26 }
 0x40d   :  { %v4192_v48 = vpop.eup %4191  ;;  %1393 = vadd.xlane.f32.xlu2 %v1392_v39  ;;  %1126 = vmax.xlane.f32.xlu0 %v1125_v20 }
 0x40e   :  { %v1536_v23 = vmul.f32 %v4192_v48, %v5399_v53  ;;  %v1112_v2 = vpop.xlane.xlu2 %1111  ;;  %v5427_v57 = vpop.xlane.xlu1 %1378  ;;  %v1527_v3 = vsel %vm1526_vm4, %v4186_v8, %v1523_v50  ;;  %vm1541_vm6 = vweird.f32 %v4192_v48 }
 0x40f   :  { %v1193_v35 = vsub.f32 %v5299_v15, %v1112_v2  ;;  %v1194_v56 = vsub.f32 %v5293_v14, %v1112_v2  ;;  %4197 = vrcp.f32 %v5427_v57  ;;  %v1532_v36 = vsel %vm1529_vm5, %v1531_v5, %v1527_v3  ;;  %v725_v5 = vld [vmem:[#allocation9 + $0x140] sm:$0xff]  ;;  %vm5448_vm8 = vmor %vm1540_vm7, %vm1541_vm6 }
 0x410   :  { %v1537_v45 = vsub.f32 1.0, %v1536_v23  ;;  %v1533_v39 = vmul.f32 %v5269_v38, %v1532_v36  ;;  %v1534_v8 = vmul.f32 %v5273_v63, %v1532_v36  ;;  %v1546_v14 = vand.u32 2147483648, %v5399_v53  ;;  %v728_v23 = vld [vmem:[#allocation9 + $0x158] sm:$0xff] }
 0x411   :  { %v5434_v59 = vpop.eup %4193  ;;  %v1283_v52 = vmul.f32 1.442695, %v1193_v35  ;;  %v1285_v61 = vmul.f32 1.442695, %v1194_v56  ;;  %v1544_v38 = vand.u32 2147483647, %v5399_v53  ;;  %v5452_v2 = vadd.f32 %v1035_v47, %v726_v62  ;;  %v1038_v47 = vpop.f32.mrf.mxu3 }
 0x412   :  { %v5438_v20 = vpop.eup %4195  ;;  %v1538_v15 = vmul.f32 %v4192_v48, %v1537_v45  ;;  %1995 = vmatmul.f32.gmra.mxu0 %v1533_v39  ;;  %2108 = vmatmul.f32.gmra.mxu1 %v1534_v8  ;;  %v1547_v3 = vor.u32 1.1754944e-38, %v1546_v14  ;;  %v1562_v8 = vand.u32 2147483648, %v5427_v57  ;;  %vm1556_vm11 = vweird.f32 %v5427_v57 }
 0x413   :  { %4199 = vpow2.f32 %v1283_v52  ;;  %v1395_v50 = vadd.f32 %v5438_v20, %v5434_v59  ;;  %vm1545_vm9 = vcmp.eq.f32.partialorder %v1544_v38, 8.507059e+37 }
 0x414   :  { %4201 = vpow2.f32 %v1285_v61  ;;  %v1539_v63 = vadd.f32 %v4192_v48, %v1538_v15  ;;  %v5462_v61 = vadd.f32 %v922_v54, %v725_v5  ;;  %v1560_v54 = vand.u32 2147483647, %v5427_v57 }
 0x415   :  { %v4198_v49 = vpop.eup %4197  ;;  %1129 = vmax.xlane.f32.xlu2 %v1128_v60  ;;  %1396 = vadd.xlane.f32.xlu1 %v1395_v50 }
 0x416   :  { %v1552_v35 = vmul.f32 %v4198_v49, %v5427_v57  ;;  %v1115_v56 = vpop.xlane.xlu1 %1114  ;;  %v5455_v45 = vpop.xlane.xlu0 %1381  ;;  %v1543_v53 = vsel %vm5448_vm8, %v4192_v48, %v1539_v63  ;;  %vm1557_vm10 = vweird.f32 %v4198_v49  ;;  %v1131_v5 = vmax.f32 %v5462_v61, %v5452_v2 }
 0x417   :  { %v1195_v36 = vsub.f32 %v5311_v4, %v1115_v56  ;;  %v1196_v52 = vsub.f32 %v5307_v1, %v1115_v56  ;;  %4203 = vrcp.f32 %v5455_v45  ;;  %v1548_v15 = vsel %vm1545_vm9, %v1547_v3, %v1543_v53  ;;  %v925_v1 = vpop.f32.mrf.mxu2  ;;  %vm1558_vm12 = vmor %vm1556_vm11, %vm1557_vm10 }
 0x418   :  { %v1553_v39 = vsub.f32 1.0, %v1552_v35  ;;  %v1549_v48 = vmul.f32 %v5283_v9, %v1548_v15  ;;  %v1550_v4 = vmul.f32 %v5287_v55, %v1548_v15  ;;  %v1563_v3 = vor.u32 1.1754944e-38, %v1562_v8  ;;  %v727_v35 = vld [vmem:[#allocation9 + $0x150] sm:$0xff] }
 0x419   :  { %v5465_v14 = vpop.eup %4199  ;;  %v1287_v62 = vmul.f32 1.442695, %v1195_v36  ;;  %v1289_v60 = vmul.f32 1.442695, %v1196_v52  ;;  %vm1561_vm13 = vcmp.eq.f32.partialorder %v1560_v54, 8.507059e+37  ;;  %v5479_v52 = vadd.f32 %v1038_v47, %v728_v23 }
 0x41a   :  { %v5469_v50 = vpop.eup %4201  ;;  %v1554_v63 = vmul.f32 %v4198_v49, %v1553_v39  ;;  %1998 = vmatmul.f32.gmra.mxu0 %v1549_v48  ;;  %2111 = vmatmul.f32.gmra.mxu1 %v1550_v4  ;;  %v5487_v4 = vadd.f32 %v925_v1, %v727_v35  ;;  %vm1572_vm15 = vweird.f32 %v5455_v45 }
 0x41b   :  { %4205 = vpow2.f32 %v1287_v62  ;;  %v1398_v38 = vadd.f32 %v5469_v50, %v5465_v14 }
 0x41c   :  { %4207 = vpow2.f32 %v1289_v60  ;;  %v1555_v55 = vadd.f32 %v4198_v49, %v1554_v63  ;;  %v1578_v63 = vand.u32 2147483648, %v5455_v45 }
 0x41d   :  { %v4204_v9 = vpop.eup %4203  ;;  %1399 = vadd.xlane.f32.xlu0 %v1398_v38  ;;  %1132 = vmax.xlane.f32.xlu1 %v1131_v5  ;;  %v1041_v38 = vpop.f32.mrf.mxu3  ;;  %v730_v5 = vld [vmem:[#allocation9 + $0x168] sm:$0xff] }
 0x41e   :  { %v1568_v56 = vmul.f32 %v4204_v9, %v5455_v45  ;;  %v1118_v53 = vpop.xlane.xlu0 %1117  ;;  %v1559_v36 = vsel %vm1558_vm12, %v4198_v49, %v1555_v55  ;;  %vm1573_vm14 = vweird.f32 %v4204_v9  ;;  %v1579_v55 = vor.u32 1.1754944e-38, %v1578_v63 }
 0x41f   :  { %v1197_v39 = vsub.f32 %v5321_v24, %v1118_v53  ;;  %v1198_v57 = vsub.f32 %v5319_v32, %v1118_v53  ;;  %v1564_v15 = vsel %vm1561_vm13, %v1563_v3, %v1559_v36  ;;  %v1576_v32 = vand.u32 2147483647, %v5455_v45  ;;  %v928_v1 = vpop.f32.mrf.mxu2  ;;  %vm1574_vm1 = vmor %vm1572_vm15, %vm1573_vm14  ;;  %v729_v3 = vld [vmem:[#allocation9 + $0x160] sm:$0xff] }
 0x420   :  { %v1569_v62 = vsub.f32 1.0, %v1568_v56  ;;  %v1565_v8 = vmul.f32 %v5297_v42, %v1564_v15  ;;  %v1566_v60 = vmul.f32 %v5301_v43, %v1564_v15  ;;  %v1134_v43 = vmax.f32 %v5487_v4, %v5479_v52 }
 0x421   :  { %v5485_v48 = vpop.eup %4205  ;;  %v1291_v49 = vmul.f32 1.442695, %v1197_v39  ;;  %v1293_v54 = vmul.f32 1.442695, %v1198_v57  ;;  %vm1577_vm2 = vcmp.eq.f32.partialorder %v1576_v32, 8.507059e+37  ;;  %v5499_v56 = vadd.f32 %v1041_v38, %v730_v5 }
 0x422   :  { %v5490_v47 = vpop.eup %4207  ;;  %v1570_v24 = vmul.f32 %v4204_v9, %v1569_v62  ;;  %2001 = vmatmul.f32.gmra.mxu0 %v1565_v8  ;;  %2114 = vmatmul.f32.gmra.mxu1 %v1566_v60  ;;  %v5505_v45 = vadd.f32 %v928_v1, %v729_v3  ;;  %v732_v8 = vld [vmem:[#allocation9 + $0x178] sm:$0xff] }
 0x423   :  { %4209 = vpow2.f32 %v1291_v49  ;;  %v1401_v42 = vadd.f32 %v5490_v47, %v5485_v48 }
 0x424   :  { %4211 = vpow2.f32 %v1293_v54  ;;  %v1571_v23 = vadd.f32 %v4204_v9, %v1570_v24  ;;  %v1137_v62 = vmax.f32 %v5505_v45, %v5499_v56 }
 0x425   :  { %1135 = vmax.xlane.f32.xlu0 %v1134_v43  ;;  %1402 = vadd.xlane.f32.xlu2 %v1401_v42  ;;  %v1044_v60 = vpop.f32.mrf.mxu3 }
 0x426   :  { %v1575_v35 = vsel %vm1574_vm1, %v4204_v9, %v1571_v23  ;;  %v5513_v63 = vadd.f32 %v1044_v60, %v732_v8 }
 0x427   :  { %v1580_v53 = vsel %vm1577_vm2, %v1579_v55, %v1575_v35 }
 0x428   :  { %v1581_v36 = vmul.f32 %v5309_v17, %v1580_v53  ;;  %v1582_v39 = vmul.f32 %v5313_v30, %v1580_v53  ;;  %v731_v17 = vld [vmem:[#allocation9 + $0x170] sm:$0xff]  ;;  %v931_v30 = vpop.f32.mrf.mxu2 }
 0x429   :  { %v5503_v57 = vpop.eup %4209  ;;  %v5515_v49 = vadd.f32 %v931_v30, %v731_v17 }
 0x42a   :  { %v5507_v15 = vpop.eup %4211  ;;  %2004 = vmatmul.f32.gmra.mxu0 %v1581_v36  ;;  %2117 = vmatmul.f32.gmra.mxu1 %v1582_v39 }
 0x42b   :  { %v1404_v9 = vadd.f32 %v5507_v15, %v5503_v57  ;;  %v1140_v54 = vmax.f32 %v5515_v49, %v5513_v63 }
 0x42d   :  { %1138 = vmax.xlane.f32.xlu2 %v1137_v62  ;;  %1405 = vadd.xlane.f32.xlu1 %v1404_v9  ;;  %v5519_v24 = vpop.f32.mrf.mxu3 }
 0x430   :  { %v5521_v32 = vpop.f32.mrf.mxu2 }
 0x435   :  { %1141 = vmax.xlane.f32.xlu1 %v1140_v54  ;;  %v5525_v35 = vpop.f32.mrf.mxu3 }
 0x438   :  { %v5527_v8 = vpop.f32.mrf.mxu2 }
 0x468   :  { %v1385_v38 = vpop.xlane.xlu2 %1384 }
 0x469   :  { %4213 = vrcp.f32 %v1385_v38  ;;  %v1594_v53 = vand.u32 2147483648, %v1385_v38  ;;  %v1592_v9 = vand.u32 2147483647, %v1385_v38  ;;  %vm1588_vm4 = vweird.f32 %v1385_v38 }
 0x46b   :  { %vm1593_vm6 = vcmp.eq.f32.partialorder %v1592_v9, 8.507059e+37 }
 0x46f   :  { %v4214_v43 = vpop.eup %4213 }
 0x470   :  { %v1584_v42 = vmul.f32 %v4214_v43, %v1385_v38  ;;  %v1121_v1 = vpop.xlane.xlu2 %1120  ;;  %v1388_v5 = vpop.xlane.xlu1 %1387  ;;  %vm1589_vm3 = vweird.f32 %v4214_v43 }
 0x471   :  { %v1199_v23 = vsub.f32 %v5352_v33, %v1121_v1  ;;  %v1200_v55 = vsub.f32 %v5344_v44, %v1121_v1  ;;  %4215 = vrcp.f32 %v1388_v5  ;;  %v1595_v33 = vor.u32 1.1754944e-38, %v1594_v53  ;;  %vm1590_vm5 = vmor %vm1588_vm4, %vm1589_vm3 }
 0x472   :  { %v1585_v3 = vsub.f32 1.0, %v1584_v42  ;;  %vm1604_vm8 = vweird.f32 %v1388_v5 }
 0x473   :  { %v1295_v36 = vmul.f32 1.442695, %v1199_v23  ;;  %v1297_v39 = vmul.f32 1.442695, %v1200_v55 }
 0x474   :  { %v1586_v62 = vmul.f32 %v4214_v43, %v1585_v3 }
 0x475   :  { %4217 = vpow2.f32 %v1295_v36  ;;  %v1610_v36 = vand.u32 2147483648, %v1388_v5 }
 0x476   :  { %4219 = vpow2.f32 %v1297_v39  ;;  %v1587_v60 = vadd.f32 %v4214_v43, %v1586_v62 }
 0x477   :  { %v4216_v17 = vpop.eup %4215 }
 0x478   :  { %v1600_v44 = vmul.f32 %v4216_v17, %v1388_v5  ;;  %v1591_v30 = vsel %vm1590_vm5, %v4214_v43, %v1587_v60  ;;  %v1124_v54 = vpop.xlane.xlu1 %1123  ;;  %v5529_v42 = vpop.xlane.xlu0 %1390  ;;  %vm1605_vm7 = vweird.f32 %v4216_v17 }
 0x479   :  { %v1596_v1 = vsel %vm1593_vm6, %v1595_v33, %v1591_v30  ;;  %v1201_v55 = vsub.f32 %v5382_v46, %v1124_v54  ;;  %v1202_v3 = vsub.f32 %v5373_v6, %v1124_v54  ;;  %4221 = vrcp.f32 %v5529_v42  ;;  %v5540_v33 = vpop.f32.mrf.mxu3  ;;  %v5544_v30 = vpop.f32.mrf.mxu2  ;;  %vm1606_vm9 = vmor %vm1604_vm8, %vm1605_vm7  ;;  %v733_v54 = vld [vmem:[#allocation9 + $0x180] sm:$0xff] }
 0x47a   :  { %v1601_v23 = vsub.f32 1.0, %v1600_v44  ;;  %v1597_v53 = vmul.f32 %v5336_v11, %v1596_v1  ;;  %v1598_v39 = vmul.f32 %v5340_v41, %v1596_v1  ;;  %v1608_v46 = vand.u32 2147483647, %v1388_v5  ;;  %v734_v44 = vld [vmem:[#allocation9 + $0x188] sm:$0xff] }
 0x47b   :  { %v5534_v38 = vpop.eup %4217  ;;  %v1299_v9 = vmul.f32 1.442695, %v1201_v55  ;;  %v1301_v60 = vmul.f32 1.442695, %v1202_v3  ;;  %v1611_v1 = vor.u32 1.1754944e-38, %v1610_v36  ;;  %v5549_v3 = vadd.f32 %v5519_v24, %v734_v44 }
 0x47c   :  { %v5538_v43 = vpop.eup %4219  ;;  %v1602_v62 = vmul.f32 %v4216_v17, %v1601_v23  ;;  %2007 = vmatmul.f32.gmra.mxu0 %v1597_v53  ;;  %2120 = vmatmul.f32.gmra.mxu1 %v1598_v39  ;;  %vm1609_vm10 = vcmp.eq.f32.partialorder %v1608_v46, 8.507059e+37  ;;  %v736_v46 = vld [vmem:[#allocation9 + $0x198] sm:$0xff]  ;;  %vm1620_vm12 = vweird.f32 %v5529_v42 }
 0x47d   :  { %v1407_v6 = vadd.f32 %v5538_v43, %v5534_v38  ;;  %4223 = vpow2.f32 %v1299_v9 }
 0x47e   :  { %v1603_v11 = vadd.f32 %v4216_v17, %v1602_v62  ;;  %4225 = vpow2.f32 %v1301_v60  ;;  %v5556_v60 = vadd.f32 %v5521_v32, %v733_v54  ;;  %v735_v54 = vld [vmem:[#allocation9 + $0x190] sm:$0xff] }
 0x47f   :  { %1408 = vadd.xlane.f32.xlu0 %v1407_v6  ;;  %v4222_v41 = vpop.eup %4221 }
 0x480   :  { %v5546_v23 = vpop.xlane.xlu2 %1393  ;;  %v1607_v55 = vsel %vm1606_vm9, %v4216_v17, %v1603_v11  ;;  %v1616_v53 = vmul.f32 %v4222_v41, %v5529_v42  ;;  %v1127_v5 = vpop.xlane.xlu0 %1126  ;;  %vm1621_vm11 = vweird.f32 %v4222_v41 }
 0x481   :  { %4227 = vrcp.f32 %v5546_v23  ;;  %v1203_v39 = vsub.f32 %v5410_v40, %v1127_v5  ;;  %v1204_v62 = vsub.f32 %v5402_v0, %v1127_v5  ;;  %v1612_v9 = vsel %vm1609_vm10, %v1611_v1, %v1607_v55  ;;  %v5570_v1 = vpop.f32.mrf.mxu3  ;;  %vm1622_vm13 = vmor %vm1620_vm12, %vm1621_vm11 }
 0x482   :  { %v1617_v36 = vsub.f32 1.0, %v1616_v53  ;;  %v1613_v17 = vmul.f32 %v5354_v18, %v1612_v9  ;;  %v1614_v24 = vmul.f32 %v5360_v12, %v1612_v9  ;;  %v1626_v40 = vand.u32 2147483648, %v5529_v42 }
 0x483   :  { %v5560_v6 = vpop.eup %4223  ;;  %v1303_v44 = vmul.f32 1.442695, %v1203_v39  ;;  %v1305_v11 = vmul.f32 1.442695, %v1204_v62  ;;  %v1143_v0 = vmax.f32 %v5556_v60, %v5549_v3  ;;  %v1624_v12 = vand.u32 2147483647, %v5529_v42  ;;  %v5578_v62 = vpop.f32.mrf.mxu2 }
 0x484   :  { %v5562_v37 = vpop.eup %4225  ;;  %v1618_v34 = vmul.f32 %v4222_v41, %v1617_v36  ;;  %2010 = vmatmul.f32.gmra.mxu0 %v1613_v17  ;;  %2123 = vmatmul.f32.gmra.mxu1 %v1614_v24  ;;  %v5574_v53 = vadd.f32 %v5525_v35, %v736_v46  ;;  %v1627_v9 = vor.u32 1.1754944e-38, %v1626_v40  ;;  %vm1636_vm1 = vweird.f32 %v5546_v23 }
 0x485   :  { %4229 = vpow2.f32 %v1303_v44  ;;  %v1410_v18 = vadd.f32 %v5562_v37, %v5560_v6  ;;  %vm1625_vm14 = vcmp.eq.f32.partialorder %v1624_v12, 8.507059e+37  ;;  %v1642_v44 = vand.u32 2147483648, %v5546_v23 }
 0x486   :  { %4231 = vpow2.f32 %v1305_v11  ;;  %v1619_v55 = vadd.f32 %v4222_v41, %v1618_v34  ;;  %v5585_v34 = vadd.f32 %v5527_v8, %v735_v54  ;;  %v1640_v12 = vand.u32 2147483647, %v5546_v23 }
 0x487   :  { %v4228_v32 = vpop.eup %4227  ;;  %1144 = vmax.xlane.f32.xlu0 %v1143_v0  ;;  %1411 = vadd.xlane.f32.xlu2 %v1410_v18 }
 0x488   :  { %v1632_v5 = vmul.f32 %v4228_v32, %v5546_v23  ;;  %v1130_v39 = vpop.xlane.xlu2 %1129  ;;  %v5582_v42 = vpop.xlane.xlu1 %1396  ;;  %v1623_v24 = vsel %vm1622_vm13, %v4222_v41, %v1619_v55  ;;  %vm1637_vm15 = vweird.f32 %v4228_v32  ;;  %v1146_v8 = vmax.f32 %v5585_v34, %v5574_v53  ;;  %v738_v55 = vld [vmem:[#allocation9 + $0x1a8] sm:$0xff] }
 0x489   :  { %v1205_v36 = vsub.f32 %v5432_v29, %v1130_v39  ;;  %v1206_v17 = vsub.f32 %v5424_v26, %v1130_v39  ;;  %4233 = vrcp.f32 %v5582_v42  ;;  %v1628_v0 = vsel %vm1625_vm14, %v1627_v9, %v1623_v24  ;;  %vm5601_vm2 = vmor %vm1636_vm1, %vm1637_vm15 }
 0x48a   :  { %v1633_v35 = vsub.f32 1.0, %v1632_v5  ;;  %v1629_v26 = vmul.f32 %v5384_v27, %v1628_v0  ;;  %v1630_v18 = vmul.f32 %v5388_v51, %v1628_v0  ;;  %v1643_v39 = vor.u32 1.1754944e-38, %v1642_v44 }
 0x48b   :  { %v1307_v11 = vmul.f32 1.442695, %v1205_v36  ;;  %v1309_v46 = vmul.f32 1.442695, %v1206_v17  ;;  %v5589_v40 = vpop.eup %4229  ;;  %v737_v36 = vld [vmem:[#allocation9 + $0x1a0] sm:$0xff]  ;;  %v5609_v17 = vpop.f32.mrf.mxu3  ;;  %vm1641_vm3 = vcmp.eq.f32.partialorder %v1640_v12, 8.507059e+37  ;;  %vm1652_vm5 = vweird.f32 %v5582_v42 }
 0x48c   :  { %v1634_v29 = vmul.f32 %v4228_v32, %v1633_v35  ;;  %v5593_v41 = vpop.eup %4231  ;;  %2013 = vmatmul.f32.gmra.mxu0 %v1629_v26  ;;  %2126 = vmatmul.f32.gmra.mxu1 %v1630_v18  ;;  %v5627_v12 = vadd.f32 %v5544_v30, %v737_v36 }
 0x48d   :  { %4235 = vpow2.f32 %v1307_v11  ;;  %v1413_v54 = vadd.f32 %v5593_v41, %v5589_v40  ;;  %v5614_v11 = vadd.f32 %v5540_v33, %v738_v55 }
 0x48e   :  { %4237 = vpow2.f32 %v1309_v46  ;;  %v1635_v27 = vadd.f32 %v4228_v32, %v1634_v29 }
 0x48f   :  { %v4234_v5 = vpop.eup %4233  ;;  %1147 = vmax.xlane.f32.xlu2 %v1146_v8  ;;  %1414 = vadd.xlane.f32.xlu1 %v1413_v54 }
 0x490   :  { %v5605_v9 = vpop.xlane.xlu0 %1399  ;;  %v1639_v23 = vsel %vm5601_vm2, %v4228_v32, %v1635_v27  ;;  %v1648_v24 = vmul.f32 %v4234_v5, %v5582_v42  ;;  %v1133_v35 = vpop.xlane.xlu1 %1132  ;;  %vm1653_vm4 = vweird.f32 %v4234_v5 }
 0x491   :  { %4239 = vrcp.f32 %v5605_v9  ;;  %v1207_v44 = vsub.f32 %v5462_v61, %v1133_v35  ;;  %v1208_v46 = vsub.f32 %v5452_v2, %v1133_v35  ;;  %v1644_v0 = vsel %vm1641_vm3, %v1643_v39, %v1639_v23  ;;  %v5620_v32 = vpop.f32.mrf.mxu2  ;;  %v739_v61 = vld [vmem:[#allocation9 + $0x1b0] sm:$0xff]  ;;  %v740_v39 = vld [vmem:[#allocation9 + $0x1b8] sm:$0xff]  ;;  %vm1654_vm6 = vmor %vm1652_vm5, %vm1653_vm4 }
 0x492   :  { %v1649_v26 = vsub.f32 1.0, %v1648_v24  ;;  %v1645_v18 = vmul.f32 %v5407_v21, %v1644_v0  ;;  %v1646_v8 = vmul.f32 %v5414_v58, %v1644_v0  ;;  %v1658_v2 = vand.u32 2147483648, %v5582_v42 }
 0x493   :  { %v5618_v29 = vpop.eup %4235  ;;  %v1311_v33 = vmul.f32 1.442695, %v1207_v44  ;;  %v1313_v27 = vmul.f32 1.442695, %v1208_v46  ;;  %v1149_v21 = vmax.f32 %v5627_v12, %v5614_v11  ;;  %v1656_v58 = vand.u32 2147483647, %v5582_v42 }
 0x494   :  { %v5624_v54 = vpop.eup %4237  ;;  %v1650_v55 = vmul.f32 %v4234_v5, %v1649_v26  ;;  %2016 = vmatmul.f32.gmra.mxu0 %v1645_v18  ;;  %2129 = vmatmul.f32.gmra.mxu1 %v1646_v8  ;;  %v5637_v36 = vadd.f32 %v5578_v62, %v739_v61  ;;  %v2201_v44 = vld [vmem:[#allocation8 + $0x38] sm:$0xff]  ;;  %v5644_v46 = vadd.f32 %v5570_v1, %v740_v39  ;;  %v1659_v0 = vor.u32 1.1754944e-38, %v1658_v2 }
 0x495   :  { %v1416_v51 = vadd.f32 %v5624_v54, %v5618_v29  ;;  %4241 = vpow2.f32 %v1311_v33  ;;  %2310 = vmatpush.msra.mxu2 %v2201_v44  ;;  %vm1657_vm7 = vcmp.eq.f32.partialorder %v1656_v58, 8.507059e+37  ;;  %v5649_v33 = vpop.f32.mrf.mxu3  ;;  %v1672_v1 = vand.u32 2147483647, %v5605_v9 }
 0x496   :  { %4243 = vpow2.f32 %v1313_v27  ;;  %v1651_v23 = vadd.f32 %v4234_v5, %v1650_v55  ;;  %v1674_v27 = vand.u32 2147483648, %v5605_v9  ;;  %v1152_v58 = vmax.f32 %v5637_v36, %v5644_v46 }
 0x497   :  { %v4240_v30 = vpop.eup %4239  ;;  %1417 = vadd.xlane.f32.xlu0 %v1416_v51  ;;  %1150 = vmax.xlane.f32.xlu1 %v1149_v21  ;;  %vm1668_vm9 = vweird.f32 %v5605_v9  ;;  %vm1673_vm11 = vcmp.eq.f32.partialorder %v1672_v1, 8.507059e+37 }
 0x498   :  { %v1664_v24 = vmul.f32 %v4240_v30, %v5605_v9  ;;  %v5640_v35 = vpop.xlane.xlu2 %1402  ;;  %v1136_v42 = vpop.xlane.xlu0 %1135  ;;  %v1655_v26 = vsel %vm1654_vm6, %v4234_v5, %v1651_v23  ;;  %vm1669_vm8 = vweird.f32 %v4240_v30  ;;  %v742_v23 = vld [vmem:[#allocation9 + $0x1c8] sm:$0xff] }
 0x499   :  { %4245 = vrcp.f32 %v5640_v35  ;;  %v1209_v62 = vsub.f32 %v5487_v4, %v1136_v42  ;;  %v1210_v8 = vsub.f32 %v5479_v52, %v1136_v42  ;;  %v1660_v61 = vsel %vm1657_vm7, %v1659_v0, %v1655_v26  ;;  %v5658_v4 = vpop.f32.mrf.mxu2  ;;  %vm1670_vm10 = vmor %vm1668_vm9, %vm1669_vm8 }
 0x49a   :  { %v1665_v18 = vsub.f32 1.0, %v1664_v24  ;;  %v1661_v39 = vmul.f32 %v5434_v59, %v1660_v61  ;;  %v1662_v52 = vmul.f32 %v5438_v20, %v1660_v61  ;;  %v741_v59 = vld [vmem:[#allocation9 + $0x1c0] sm:$0xff]  ;;  %v1675_v42 = vor.u32 1.1754944e-38, %v1674_v27 }
 0x49b   :  { %v5653_v55 = vpop.eup %4241  ;;  %v1315_v51 = vmul.f32 1.442695, %v1209_v62  ;;  %v1317_v5 = vmul.f32 1.442695, %v1210_v8  ;;  %v5669_v9 = vadd.f32 %v5609_v17, %v742_v23  ;;  %vm1684_vm13 = vweird.f32 %v5640_v35 }
 0x49c   :  { %v1666_v2 = vmul.f32 %v4240_v30, %v1665_v18  ;;  %v5656_v21 = vpop.eup %4243  ;;  %2019 = vmatmul.f32.gmra.mxu0 %v1661_v39  ;;  %2132 = vmatmul.f32.gmra.mxu1 %v1662_v52  ;;  %v1688_v52 = vand.u32 2147483647, %v5640_v35 }
 0x49d   :  { %4247 = vpow2.f32 %v1315_v51  ;;  %v1419_v24 = vadd.f32 %v5656_v21, %v5653_v55 }
 0x49e   :  { %v1667_v44 = vadd.f32 %v4240_v30, %v1666_v2  ;;  %4249 = vpow2.f32 %v1317_v5  ;;  %v5676_v2 = vadd.f32 %v5620_v32, %v741_v59  ;;  %v1690_v5 = vand.u32 2147483648, %v5640_v35  ;;  %v1065_v32 = vpop.f32.mrf.mxu3  ;;  %v746_v59 = vld [vmem:[#allocation9 + $0x1e8] sm:$0xff] }
 0x49f   :  { %v4246_v0 = vpop.eup %4245  ;;  %1153 = vmax.xlane.f32.xlu0 %v1152_v58  ;;  %1420 = vadd.xlane.f32.xlu2 %v1419_v24  ;;  %v744_v24 = vld [vmem:[#allocation9 + $0x1d8] sm:$0xff]  ;;  %vm1689_vm15 = vcmp.eq.f32.partialorder %v1688_v52, 8.507059e+37 }
 0x4a0   :  { %v1680_v20 = vmul.f32 %v4246_v0, %v5640_v35  ;;  %v1139_v26 = vpop.xlane.xlu2 %1138  ;;  %v1671_v18 = vsel %vm1670_vm10, %v4240_v30, %v1667_v44  ;;  %v5673_v61 = vpop.xlane.xlu1 %1405  ;;  %vm1685_vm12 = vweird.f32 %v4246_v0  ;;  %v1155_v23 = vmax.f32 %v5676_v2, %v5669_v9 }
 0x4a1   :  { %v1211_v62 = vsub.f32 %v5505_v45, %v1139_v26  ;;  %v1212_v8 = vsub.f32 %v5499_v56, %v1139_v26  ;;  %v1676_v27 = vsel %vm1673_vm11, %v1675_v42, %v1671_v18  ;;  %4251 = vrcp.f32 %v5673_v61  ;;  %vm1686_vm14 = vmor %vm1684_vm13, %vm1685_vm12  ;;  %v743_v26 = vld [vmem:[#allocation9 + $0x1d0] sm:$0xff] }
 0x4a2   :  { %v1681_v51 = vsub.f32 1.0, %v1680_v20  ;;  %v1677_v17 = vmul.f32 %v5465_v14, %v1676_v27  ;;  %v1678_v56 = vmul.f32 %v5469_v50, %v1676_v27  ;;  %v952_v50 = vpop.f32.mrf.mxu2  ;;  %v1691_v42 = vor.u32 1.1754944e-38, %v1690_v5 }
 0x4a3   :  { %v1319_v30 = vmul.f32 1.442695, %v1211_v62  ;;  %v1321_v1 = vmul.f32 1.442695, %v1212_v8  ;;  %v5681_v39 = vpop.eup %4247  ;;  %v745_v62 = vld [vmem:[#allocation9 + $0x1e0] sm:$0xff]  ;;  %v5694_v35 = vadd.f32 %v5649_v33, %v744_v24  ;;  %vm1700_vm2 = vweird.f32 %v5673_v61 }
 0x4a4   :  { %v1682_v45 = vmul.f32 %v4246_v0, %v1681_v51  ;;  %v5685_v58 = vpop.eup %4249  ;;  %2022 = vmatmul.f32.gmra.mxu0 %v1677_v17  ;;  %2135 = vmatmul.f32.gmra.mxu1 %v1678_v56 }
 0x4a5   :  { %4253 = vpow2.f32 %v1319_v30  ;;  %v1422_v14 = vadd.f32 %v5685_v58, %v5681_v39  ;;  %v5697_v30 = vadd.f32 %v1065_v32, %v746_v59  ;;  %v1706_v32 = vand.u32 2147483648, %v5673_v61 }
 0x4a6   :  { %4255 = vpow2.f32 %v1321_v1  ;;  %v1683_v44 = vadd.f32 %v4246_v0, %v1682_v45 }
 0x4a7   :  { %v4252_v20 = vpop.eup %4251  ;;  %1156 = vmax.xlane.f32.xlu2 %v1155_v23  ;;  %1423 = vadd.xlane.f32.xlu1 %v1422_v14  ;;  %v5710_v23 = vadd.f32 %v952_v50, %v745_v62  ;;  %v1068_v50 = vpop.f32.mrf.mxu3 }
 0x4a8   :  { %v1687_v18 = vsel %vm1686_vm14, %v4246_v0, %v1683_v44  ;;  %v1696_v8 = vmul.f32 %v4252_v20, %v5673_v61  ;;  %v1142_v27 = vpop.xlane.xlu1 %1141  ;;  %v5705_v0 = vadd.f32 %v5658_v4, %v743_v26  ;;  %vm1701_vm1 = vweird.f32 %v4252_v20  ;;  %v748_v44 = vld [vmem:[#allocation9 + $0x1f8] sm:$0xff]  ;;  %v747_v26 = vld [vmem:[#allocation9 + $0x1f0] sm:$0xff] }
 0x4a9   :  { %v1692_v51 = vsel %vm1689_vm15, %v1691_v42, %v1687_v18  ;;  %v1213_v5 = vsub.f32 %v5515_v49, %v1142_v27  ;;  %v1214_v1 = vsub.f32 %v5513_v63, %v1142_v27  ;;  %v1704_v63 = vand.u32 2147483647, %v5673_v61  ;;  %vm1702_vm3 = vmor %vm1700_vm2, %vm1701_vm1 }
 0x4aa   :  { %v1693_v17 = vmul.f32 %v5485_v48, %v1692_v51  ;;  %v1697_v56 = vsub.f32 1.0, %v1696_v8  ;;  %v1694_v33 = vmul.f32 %v5490_v47, %v1692_v51  ;;  %v1161_v47 = vmax.f32 %v5710_v23, %v5697_v30  ;;  %v955_v18 = vpop.f32.mrf.mxu2 }
 0x4ab   :  { %v5702_v45 = vpop.eup %4253  ;;  %v1323_v24 = vmul.f32 1.442695, %v1213_v5  ;;  %v1325_v49 = vmul.f32 1.442695, %v1214_v1  ;;  %v1158_v4 = vmax.f32 %v5705_v0, %v5694_v35  ;;  %v1707_v42 = vor.u32 1.1754944e-38, %v1706_v32 }
 0x4ac   :  { %v5708_v52 = vpop.eup %4255  ;;  %v1698_v14 = vmul.f32 %v4252_v20, %v1697_v56  ;;  %2025 = vmatmul.f32.gmra.mxu0 %v1693_v17  ;;  %2138 = vmatmul.f32.gmra.mxu1 %v1694_v33  ;;  %vm1705_vm4 = vcmp.eq.f32.partialorder %v1704_v63, 8.507059e+37  ;;  %v5722_v8 = vadd.f32 %v1068_v50, %v748_v44  ;;  %v5728_v1 = vadd.f32 %v955_v18, %v747_v26  ;;  %v5736_v33 = vpop.f32.mrf.mxu0 }
 0x4ad   :  { %v1425_v48 = vadd.f32 %v5708_v52, %v5702_v45  ;;  %4257 = vpow2.f32 %v1323_v24 }
 0x4ae   :  { %4259 = vpow2.f32 %v1325_v49  ;;  %v1699_v59 = vadd.f32 %v4252_v20, %v1698_v14 }
 0x4af   :  { %1426 = vadd.xlane.f32.xlu0 %v1425_v48  ;;  %1162 = vmax.xlane.f32.xlu2 %v1161_v47 }
 0x4b0   :  { %1159 = vmax.xlane.f32.xlu1 %v1158_v4  ;;  %v1703_v62 = vsel %vm1702_vm3, %v4252_v20, %v1699_v59  ;;  %v1164_v20 = vmax.f32 %v5728_v1, %v5722_v8 }
 0x4b1   :  { %v1708_v27 = vsel %vm1705_vm4, %v1707_v42, %v1703_v62 }
 0x4b2   :  { %v1709_v51 = vmul.f32 %v5503_v57, %v1708_v27  ;;  %v1710_v61 = vmul.f32 %v5507_v15, %v1708_v27  ;;  %v5738_v57 = vpop.f32.mrf.mxu1 }
 0x4b3   :  { %v5726_v5 = vpop.eup %4257 }
 0x4b4   :  { %v5730_v17 = vpop.eup %4259  ;;  %2028 = vmatmul.f32.gmra.mxu0 %v1709_v51  ;;  %2141 = vmatmul.f32.gmra.mxu1 %v1710_v61  ;;  %v5740_v15 = vpop.f32.mrf.mxu0 }
 0x4b5   :  { %v1428_v56 = vadd.f32 %v5730_v17, %v5726_v5 }
 0x4b7   :  { %1429 = vadd.xlane.f32.xlu0 %v1428_v56 }
 0x4b8   :  { %1165 = vmax.xlane.f32.xlu1 %v1164_v20 }
 0x4ba   :  { %v5742_v32 = vpop.f32.mrf.mxu1 }
 0x4bc   :  { %v5744_v14 = vpop.f32.mrf.mxu0 }
 0x4bd   :  { %6569 = vst [vmem:[#allocation38_spill] sm:$0xff] %v5744_v14 }
 0x4c2   :  { %v5746_v4 = vpop.f32.mrf.mxu1 }
 0x4c3   :  { %6570 = vst [vmem:[#allocation39_spill] sm:$0xff] %v5746_v4 }
 0x4f2   :  { %v1409_v24 = vpop.xlane.xlu0 %1408 }
 0x4f3   :  { %4261 = vrcp.f32 %v1409_v24  ;;  %v1722_v50 = vand.u32 2147483648, %v1409_v24  ;;  %v1720_v18 = vand.u32 2147483647, %v1409_v24  ;;  %vm1716_vm6 = vweird.f32 %v1409_v24 }
 0x4f5   :  { %v1723_v61 = vor.u32 1.1754944e-38, %v1722_v50  ;;  %vm1721_vm8 = vcmp.eq.f32.partialorder %v1720_v18, 8.507059e+37 }
 0x4f9   :  { %v4262_v49 = vpop.eup %4261 }
 0x4fa   :  { %v1712_v48 = vmul.f32 %v4262_v49, %v1409_v24  ;;  %v1412_v63 = vpop.xlane.xlu2 %1411  ;;  %v1145_v47 = vpop.xlane.xlu0 %1144  ;;  %vm1717_vm5 = vweird.f32 %v4262_v49 }
 0x4fb   :  { %4263 = vrcp.f32 %v1412_v63  ;;  %v1215_v59 = vsub.f32 %v5556_v60, %v1145_v47  ;;  %v1216_v42 = vsub.f32 %v5549_v3, %v1145_v47  ;;  %vm1718_vm7 = vmor %vm1716_vm6, %vm1717_vm5  ;;  %v5755_v24 = vpop.f32.mrf.mxu0  ;;  %vm1732_vm10 = vweird.f32 %v1412_v63 }
 0x4fc   :  { %v1713_v44 = vsub.f32 1.0, %v1712_v48 }
 0x4fd   :  { %v1327_v62 = vmul.f32 1.442695, %v1215_v59  ;;  %v1329_v27 = vmul.f32 1.442695, %v1216_v42 }
 0x4fe   :  { %v1714_v26 = vmul.f32 %v4262_v49, %v1713_v44 }
 0x4ff   :  { %4265 = vpow2.f32 %v1327_v62 }
 0x500   :  { %v1715_v51 = vadd.f32 %v4262_v49, %v1714_v26  ;;  %4267 = vpow2.f32 %v1329_v27 }
 0x501   :  { %v4264_v56 = vpop.eup %4263 }
 0x502   :  { %v1719_v20 = vsel %vm1718_vm7, %v4262_v49, %v1715_v51  ;;  %v1728_v48 = vmul.f32 %v4264_v56, %v1412_v63  ;;  %v1148_v4 = vpop.xlane.xlu2 %1147  ;;  %v5750_v14 = vpop.xlane.xlu1 %1414  ;;  %vm1733_vm9 = vweird.f32 %v4264_v56 }
 0x503   :  { %v1724_v60 = vsel %vm1721_vm8, %v1723_v61, %v1719_v20  ;;  %v1217_v3 = vsub.f32 %v5585_v34, %v1148_v4  ;;  %v1218_v47 = vsub.f32 %v5574_v53, %v1148_v4  ;;  %4269 = vrcp.f32 %v5750_v14  ;;  %v5759_v49 = vpop.f32.mrf.mxu1  ;;  %vm1734_vm11 = vmor %vm1732_vm10, %vm1733_vm9 }
 0x504   :  { %v1729_v44 = vsub.f32 1.0, %v1728_v48  ;;  %v1725_v50 = vmul.f32 %v5534_v38, %v1724_v60  ;;  %v1726_v59 = vmul.f32 %v5538_v43, %v1724_v60  ;;  %v1738_v53 = vand.u32 2147483648, %v1412_v63 }
 0x505   :  { %v1331_v42 = vmul.f32 1.442695, %v1217_v3  ;;  %v1333_v26 = vmul.f32 1.442695, %v1218_v47  ;;  %v5761_v18 = vpop.eup %4265  ;;  %v1736_v43 = vand.u32 2147483647, %v1412_v63  ;;  %vm1748_vm14 = vweird.f32 %v5750_v14 }
 0x506   :  { %v1730_v62 = vmul.f32 %v4264_v56, %v1729_v44  ;;  %2031 = vmatmul.f32.gmra.mxu0 %v1725_v50  ;;  %2144 = vmatmul.f32.gmra.mxu1 %v1726_v59  ;;  %v5763_v34 = vpop.eup %4267  ;;  %v1739_v20 = vor.u32 1.1754944e-38, %v1738_v53  ;;  %v1754_v63 = vand.u32 2147483648, %v5750_v14 }
 0x507   :  { %4271 = vpow2.f32 %v1331_v42  ;;  %v1431_v38 = vadd.f32 %v5763_v34, %v5761_v18  ;;  %vm1737_vm12 = vcmp.eq.f32.partialorder %v1736_v43, 8.507059e+37  ;;  %v2200_v42 = vld [vmem:[#allocation8 + $0x30] sm:$0xff] }
 0x508   :  { %4273 = vpow2.f32 %v1333_v26  ;;  %v1731_v4 = vadd.f32 %v4264_v56, %v1730_v62  ;;  %v5778_v62 = vpop.f32.mrf.mxu0  ;;  %2311 = vmatpush.msra.mxu2 %v2200_v42 }
 0x509   :  { %v4270_v27 = vpop.eup %4269  ;;  %1432 = vadd.xlane.f32.xlu2 %v1431_v38 }
 0x50a   :  { %v5767_v51 = vpop.xlane.xlu0 %1417  ;;  %v1744_v61 = vmul.f32 %v4270_v27, %v5750_v14  ;;  %v1151_v48 = vpop.xlane.xlu1 %1150  ;;  %v1735_v60 = vsel %vm1734_vm11, %v4264_v56, %v1731_v4  ;;  %vm1749_vm13 = vweird.f32 %v4270_v27 }
 0x50b   :  { %4275 = vrcp.f32 %v5767_v51  ;;  %v1219_v47 = vsub.f32 %v5627_v12, %v1151_v48  ;;  %v1220_v44 = vsub.f32 %v5614_v11, %v1151_v48  ;;  %v1740_v59 = vsel %vm1737_vm12, %v1739_v20, %v1735_v60  ;;  %v5781_v12 = vpop.f32.mrf.mxu1  ;;  %vm1750_vm15 = vmor %vm1748_vm14, %vm1749_vm13 }
 0x50c   :  { %v1745_v3 = vsub.f32 1.0, %v1744_v61  ;;  %v1741_v4 = vmul.f32 %v5560_v6, %v1740_v59  ;;  %v1742_v11 = vmul.f32 %v5562_v37, %v1740_v59  ;;  %v1752_v61 = vand.u32 2147483647, %v5750_v14 }
 0x50d   :  { %v5773_v50 = vpop.eup %4271  ;;  %v1335_v38 = vmul.f32 1.442695, %v1219_v47  ;;  %v1337_v56 = vmul.f32 1.442695, %v1220_v44  ;;  %v1755_v37 = vor.u32 1.1754944e-38, %v1754_v63  ;;  %v1770_v42 = vand.u32 2147483648, %v5767_v51 }
 0x50e   :  { %v5776_v26 = vpop.eup %4273  ;;  %v1746_v53 = vmul.f32 %v4270_v27, %v1745_v3  ;;  %2034 = vmatmul.f32.gmra.mxu0 %v1741_v4  ;;  %2147 = vmatmul.f32.gmra.mxu1 %v1742_v11  ;;  %vm1753_vm1 = vcmp.eq.f32.partialorder %v1752_v61, 8.507059e+37  ;;  %v1768_v4 = vand.u32 2147483647, %v5767_v51  ;;  %vm1764_vm3 = vweird.f32 %v5767_v51 }
 0x50f   :  { %v1434_v43 = vadd.f32 %v5776_v26, %v5773_v50  ;;  %4277 = vpow2.f32 %v1335_v38 }
 0x510   :  { %v1747_v48 = vadd.f32 %v4270_v27, %v1746_v53  ;;  %4279 = vpow2.f32 %v1337_v56  ;;  %v5804_v61 = vpop.f32.mrf.mxu0  ;;  %vm1769_vm5 = vcmp.eq.f32.partialorder %v1768_v4, 8.507059e+37 }
 0x511   :  { %v4276_v20 = vpop.eup %4275  ;;  %1435 = vadd.xlane.f32.xlu0 %v1434_v43 }
 0x512   :  { %v1760_v60 = vmul.f32 %v4276_v20, %v5767_v51  ;;  %v1154_v6 = vpop.xlane.xlu0 %1153  ;;  %v5790_v3 = vpop.xlane.xlu2 %1420  ;;  %v1751_v59 = vsel %vm1750_vm15, %v4270_v27, %v1747_v48  ;;  %vm1765_vm2 = vweird.f32 %v4276_v20  ;;  %v1771_v48 = vor.u32 1.1754944e-38, %v1770_v42 }
 0x513   :  { %v1221_v47 = vsub.f32 %v5637_v36, %v1154_v6  ;;  %v1222_v44 = vsub.f32 %v5644_v46, %v1154_v6  ;;  %4281 = vrcp.f32 %v5790_v3  ;;  %v1756_v56 = vsel %vm1753_vm1, %v1755_v37, %v1751_v59  ;;  %vm1766_vm4 = vmor %vm1764_vm3, %vm1765_vm2 }
 0x514   :  { %v1761_v14 = vsub.f32 1.0, %v1760_v60  ;;  %v1757_v63 = vmul.f32 %v5589_v40, %v1756_v56  ;;  %v1758_v43 = vmul.f32 %v5593_v41, %v1756_v56  ;;  %v5808_v41 = vpop.f32.mrf.mxu1  ;;  %v1786_v56 = vand.u32 2147483648, %v5790_v3 }
 0x515   :  { %v1339_v53 = vmul.f32 1.442695, %v1221_v47  ;;  %v1341_v38 = vmul.f32 1.442695, %v1222_v44  ;;  %v5799_v36 = vpop.eup %4277  ;;  %vm1780_vm7 = vweird.f32 %v5790_v3 }
 0x516   :  { %v1762_v11 = vmul.f32 %v4276_v20, %v1761_v14  ;;  %v5801_v46 = vpop.eup %4279  ;;  %2037 = vmatmul.f32.gmra.mxu0 %v1757_v63  ;;  %2150 = vmatmul.f32.gmra.mxu1 %v1758_v43  ;;  %v1784_v43 = vand.u32 2147483647, %v5790_v3 }
 0x517   :  { %4283 = vpow2.f32 %v1339_v53  ;;  %v1437_v60 = vadd.f32 %v5801_v46, %v5799_v36 }
 0x518   :  { %4285 = vpow2.f32 %v1341_v38  ;;  %v1763_v27 = vadd.f32 %v4276_v20, %v1762_v11  ;;  %vm1785_vm9 = vcmp.eq.f32.partialorder %v1784_v43, 8.507059e+37 }
 0x519   :  { %v4282_v40 = vpop.eup %4281  ;;  %1438 = vadd.xlane.f32.xlu1 %v1437_v60 }
 0x51a   :  { %v1767_v6 = vsel %vm1766_vm4, %v4276_v20, %v1763_v27  ;;  %v1776_v37 = vmul.f32 %v4282_v40, %v5790_v3  ;;  %v1157_v51 = vpop.xlane.xlu2 %1156  ;;  %v5813_v14 = vpop.xlane.xlu1 %1423  ;;  %vm1781_vm6 = vweird.f32 %v4282_v40  ;;  %v1787_v27 = vor.u32 1.1754944e-38, %v1786_v56 }
 0x51b   :  { %v1772_v47 = vsel %vm1769_vm5, %v1771_v48, %v1767_v6  ;;  %v1223_v44 = vsub.f32 %v5676_v2, %v1157_v51  ;;  %v1224_v59 = vsub.f32 %v5669_v9, %v1157_v51  ;;  %4287 = vrcp.f32 %v5813_v14  ;;  %vm1782_vm8 = vmor %vm1780_vm7, %vm1781_vm6  ;;  %v5829_v6 = vpop.f32.mrf.mxu0 }
 0x51c   :  { %v1777_v53 = vsub.f32 1.0, %v1776_v37  ;;  %v1773_v38 = vmul.f32 %v5618_v29, %v1772_v47  ;;  %v1774_v63 = vmul.f32 %v5624_v54, %v1772_v47  ;;  %v2199_v54 = vld [vmem:[#allocation8 + $0x28] sm:$0xff]  ;;  %v5832_v3 = vpop.f32.mrf.mxu1  ;;  %vm1796_vm11 = vweird.f32 %v5813_v14 }
 0x51d   :  { %v5815_v42 = vpop.eup %4283  ;;  %v1343_v4 = vmul.f32 1.442695, %v1223_v44  ;;  %v1345_v11 = vmul.f32 1.442695, %v1224_v59  ;;  %2312 = vmatpush.msra.mxu2 %v2199_v54 }
 0x51e   :  { %v5819_v20 = vpop.eup %4285  ;;  %v1778_v2 = vmul.f32 %v4282_v40, %v1777_v53  ;;  %2040 = vmatmul.f32.gmra.mxu0 %v1773_v38  ;;  %2153 = vmatmul.f32.gmra.mxu1 %v1774_v63 }
 0x51f   :  { %v1440_v9 = vadd.f32 %v5819_v20, %v5815_v42  ;;  %4289 = vpow2.f32 %v1343_v4 }
 0x520   :  { %4291 = vpow2.f32 %v1345_v11  ;;  %v1779_v29 = vadd.f32 %v4282_v40, %v1778_v2 }
 0x521   :  { %1441 = vadd.xlane.f32.xlu2 %v1440_v9  ;;  %v4288_v60 = vpop.eup %4287 }
 0x522   :  { %v5827_v48 = vpop.xlane.xlu0 %1426  ;;  %v1163_v37 = vpop.xlane.xlu2 %1162  ;;  %v1783_v51 = vsel %vm1782_vm8, %v4282_v40, %v1779_v29  ;;  %v1792_v47 = vmul.f32 %v4288_v60, %v5813_v14  ;;  %v1802_v29 = vand.u32 2147483648, %v5813_v14  ;;  %vm1797_vm10 = vweird.f32 %v4288_v60 }
 0x523   :  { %4293 = vrcp.f32 %v5827_v48  ;;  %v1227_v44 = vsub.f32 %v5710_v23, %v1163_v37  ;;  %v1228_v59 = vsub.f32 %v5697_v30, %v1163_v37  ;;  %v1160_v53 = vpop.xlane.xlu1 %1159  ;;  %v1788_v38 = vsel %vm1785_vm9, %v1787_v27, %v1783_v51  ;;  %vm1798_vm12 = vmor %vm1796_vm11, %vm1797_vm10 }
 0x524   :  { %v1225_v56 = vsub.f32 %v5705_v0, %v1160_v53  ;;  %v1226_v4 = vsub.f32 %v5694_v35, %v1160_v53  ;;  %v1793_v63 = vsub.f32 1.0, %v1792_v47  ;;  %v1789_v9 = vmul.f32 %v5653_v55, %v1788_v38 }
 0x525   :  { %v5839_v11 = vpop.eup %4289  ;;  %v1351_v40 = vmul.f32 1.442695, %v1227_v44  ;;  %v1353_v2 = vmul.f32 1.442695, %v1228_v59  ;;  %v1790_v30 = vmul.f32 %v5656_v21, %v1788_v38  ;;  %v1800_v0 = vand.u32 2147483647, %v5813_v14  ;;  %v5859_v14 = vpop.f32.mrf.mxu0 }
 0x526   :  { %v5842_v43 = vpop.eup %4291  ;;  %v1347_v23 = vmul.f32 1.442695, %v1225_v56  ;;  %v1349_v54 = vmul.f32 1.442695, %v1226_v4  ;;  %v1794_v27 = vmul.f32 %v4288_v60, %v1793_v63  ;;  %2043 = vmatmul.f32.gmra.mxu0 %v1789_v9  ;;  %v1803_v47 = vor.u32 1.1754944e-38, %v1802_v29 }
 0x527   :  { %4295 = vpow2.f32 %v1351_v40  ;;  %v1443_v35 = vadd.f32 %v5842_v43, %v5839_v11  ;;  %2156 = vmatmul.f32.gmra.mxu1 %v1790_v30  ;;  %vm1801_vm13 = vcmp.eq.f32.partialorder %v1800_v0, 8.507059e+37  ;;  %v1818_v53 = vand.u32 2147483648, %v5827_v48  ;;  %v5861_v40 = vpop.f32.mrf.mxu1 }
 0x528   :  { %4297 = vpow2.f32 %v1353_v2  ;;  %v1795_v51 = vadd.f32 %v4288_v60, %v1794_v27  ;;  %v1816_v29 = vand.u32 2147483647, %v5827_v48  ;;  %vm1812_vm15 = vweird.f32 %v5827_v48 }
 0x529   :  { %v4294_v37 = vpop.eup %4293  ;;  %4299 = vpow2.f32 %v1347_v23  ;;  %1444 = vadd.xlane.f32.xlu0 %v1443_v35 }
 0x52a   :  { %v1808_v55 = vmul.f32 %v4294_v37, %v5827_v48  ;;  %4301 = vpow2.f32 %v1349_v54  ;;  %v5851_v21 = vpop.xlane.xlu0 %1429  ;;  %v1799_v4 = vsel %vm1798_vm12, %v4288_v60, %v1795_v51  ;;  %vm1813_vm14 = vweird.f32 %v4294_v37 }
 0x52b   :  { %v1166_v59 = vpop.xlane.xlu1 %1165  ;;  %4303 = vrcp.f32 %v5851_v21  ;;  %v1804_v9 = vsel %vm1801_vm13, %v1803_v47, %v1799_v4  ;;  %vm1814_vm1 = vmor %vm1812_vm15, %vm1813_vm14  ;;  %vm1817_vm2 = vcmp.eq.f32.partialorder %v1816_v29, 8.507059e+37  ;;  %vm1828_vm4 = vweird.f32 %v5851_v21 }
 0x52c   :  { %v1809_v44 = vsub.f32 1.0, %v1808_v55  ;;  %v1229_v38 = vsub.f32 %v5728_v1, %v1166_v59  ;;  %v1230_v56 = vsub.f32 %v5722_v8, %v1166_v59  ;;  %v1805_v1 = vmul.f32 %v5681_v39, %v1804_v9 }
 0x52d   :  { %v5857_v63 = vpop.eup %4295  ;;  %v1806_v8 = vmul.f32 %v5685_v58, %v1804_v9  ;;  %v1819_v55 = vor.u32 1.1754944e-38, %v1818_v53  ;;  %v5880_v53 = vpop.f32.mrf.mxu0 }
 0x52e   :  { %v1810_v2 = vmul.f32 %v4294_v37, %v1809_v44  ;;  %v5864_v23 = vpop.eup %4297  ;;  %v1355_v54 = vmul.f32 1.442695, %v1229_v38  ;;  %v1357_v30 = vmul.f32 1.442695, %v1230_v56  ;;  %2046 = vmatmul.f32.gmra.mxu0 %v1805_v1  ;;  %v1834_v56 = vand.u32 2147483648, %v5851_v21 }
 0x52f   :  { %v5868_v60 = vpop.eup %4299  ;;  %v1449_v27 = vadd.f32 %v5864_v23, %v5857_v63  ;;  %2159 = vmatmul.f32.gmra.mxu1 %v1806_v8  ;;  %v5882_v38 = vpop.f32.mrf.mxu1 }
 0x530   :  { %v1811_v35 = vadd.f32 %v4294_v37, %v1810_v2  ;;  %v5873_v0 = vpop.eup %4301  ;;  %4305 = vpow2.f32 %v1355_v54 }
 0x531   :  { %v4304_v51 = vpop.eup %4303  ;;  %4307 = vpow2.f32 %v1357_v30  ;;  %v1446_v39 = vadd.f32 %v5873_v0, %v5868_v60  ;;  %1450 = vadd.xlane.f32.xlu2 %v1449_v27  ;;  %v1835_v30 = vor.u32 1.1754944e-38, %v1834_v56 }
 0x532   :  { %v1815_v58 = vsel %vm1814_vm1, %v4294_v37, %v1811_v35  ;;  %v1824_v48 = vmul.f32 %v4304_v51, %v5851_v21  ;;  %vm1829_vm3 = vweird.f32 %v4304_v51  ;;  %v1832_v37 = vand.u32 2147483647, %v5851_v21 }
 0x533   :  { %v1820_v47 = vsel %vm1817_vm2, %v1819_v55, %v1815_v58  ;;  %1447 = vadd.xlane.f32.xlu1 %v1446_v39  ;;  %vm1830_vm5 = vmor %vm1828_vm4, %vm1829_vm3 }
 0x534   :  { %v1825_v44 = vsub.f32 1.0, %v1824_v48  ;;  %v1821_v59 = vmul.f32 %v5702_v45, %v1820_v47  ;;  %v1822_v4 = vmul.f32 %v5708_v52, %v1820_v47  ;;  %vm1833_vm6 = vcmp.eq.f32.partialorder %v1832_v37, 8.507059e+37 }
 0x535   :  { %v5896_v35 = vpop.f32.mrf.mxu0 }
 0x536   :  { %v5886_v2 = vpop.eup %4305  ;;  %v1826_v9 = vmul.f32 %v4304_v51, %v1825_v44  ;;  %2049 = vmatmul.f32.gmra.mxu0 %v1821_v59  ;;  %v2661_v44 = vld [vmem:[%s6514_s6 + $0x38] sm:$0xff]  ;;  %v2198_v59 = vld [vmem:[#allocation8 + $0x20] sm:$0xff] }
 0x537   :  { %v5889_v29 = vpop.eup %4307  ;;  %2162 = vmatmul.f32.gmra.mxu1 %v1822_v4  ;;  %v5898_v55 = vpop.f32.mrf.mxu1  ;;  %2768 = vmatpush.msra.mxu0 %v2661_v44 }
 0x538   :  { %v1452_v45 = vadd.f32 %v5889_v29, %v5886_v2  ;;  %v1827_v54 = vadd.f32 %v4304_v51, %v1826_v9  ;;  %2313 = vmatpush.msra.mxu2 %v2198_v59  ;;  %v2660_v59 = vld [vmem:[%s6514_s6 + $0x30] sm:$0xff] }
 0x539   :  { %2769 = vmatpush.msra.mxu0 %v2660_v59 }
 0x53a   :  { %1453 = vadd.xlane.f32.xlu0 %v1452_v45  ;;  %v1831_v52 = vsel %vm1830_vm5, %v4304_v51, %v1827_v54 }
 0x53b   :  { %v1836_v1 = vsel %vm1833_vm6, %v1835_v30, %v1831_v52 }
 0x53c   :  { %v1837_v8 = vmul.f32 %v5726_v5, %v1836_v1  ;;  %v1838_v27 = vmul.f32 %v5730_v17, %v1836_v1 }
 0x53d   :  { %v5900_v21 = vpop.f32.mrf.mxu0 }
 0x53e   :  { %2052 = vmatmul.f32.gmra.mxu0 %v1837_v8  ;;  %6571 = vst [vmem:[#allocation40_spill] sm:$0xff] %v5900_v21 }
 0x53f   :  { %2165 = vmatmul.f32.gmra.mxu1 %v1838_v27  ;;  %v5902_v39 = vpop.f32.mrf.mxu1 }
 0x540   :  { %6572 = vst [vmem:[#allocation41_spill] sm:$0xff] %v5902_v39 }
 0x545   :  { %v5904_v58 = vpop.f32.mrf.mxu0 }
 0x546   :  { %6573 = vst [vmem:[#allocation42_spill] sm:$0xff] %v5904_v58 }
 0x547   :  { %v5906_v48 = vpop.f32.mrf.mxu1 }
 0x548   :  { %6574 = vst [vmem:[#allocation43_spill] sm:$0xff] %v5906_v48 }
 0x54d   :  { %v5908_v51 = vpop.f32.mrf.mxu0 }
 0x54e   :  { %6575 = vst [vmem:[#allocation44_spill] sm:$0xff] %v5908_v51 }
 0x54f   :  { %v5910_v47 = vpop.f32.mrf.mxu1 }
 0x550   :  { %6576 = vst [vmem:[#allocation45_spill] sm:$0xff] %v5910_v47 }
 0x555   :  { %v5912_v5 = vpop.f32.mrf.mxu0 }
 0x556   :  { %6577 = vst [vmem:[#allocation46_spill] sm:$0xff] %v5912_v5 }
 0x557   :  { %v5914_v17 = vpop.f32.mrf.mxu1 }
 0x558   :  { %6578 = vst [vmem:[#allocation47_spill] sm:$0xff] %v5914_v17 }
 0x55d   :  { %v5919_v56 = vpop.f32.mrf.mxu0 }
 0x55e   :  { %6579 = vst [vmem:[#allocation48_spill] sm:$0xff] %v5919_v56 }
 0x55f   :  { %v5921_v4 = vpop.f32.mrf.mxu1 }
 0x560   :  { %6580 = vst [vmem:[#allocation49_spill] sm:$0xff] %v5921_v4 }
 0x565   :  { %v5923_v9 = vpop.f32.mrf.mxu0 }
 0x566   :  { %6581 = vst [vmem:[#allocation50_spill] sm:$0xff] %v5923_v9 }
 0x567   :  { %v5925_v37 = vpop.f32.mrf.mxu1 }
 0x568   :  { %6582 = vst [vmem:[#allocation51_spill] sm:$0xff] %v5925_v37 }
 0x57c   :  { %v1433_v45 = vpop.xlane.xlu2 %1432 }
 0x57d   :  { %4309 = vrcp.f32 %v1433_v45  ;;  %v1850_v9 = vand.u32 2147483648, %v1433_v45  ;;  %v1848_v37 = vand.u32 2147483647, %v1433_v45  ;;  %vm1844_vm8 = vweird.f32 %v1433_v45 }
 0x57f   :  { %vm1849_vm10 = vcmp.eq.f32.partialorder %v1848_v37, 8.507059e+37 }
 0x583   :  { %v2032_v54 = vpop.f32.mrf.mxu0  ;;  %v2145_v30 = vpop.f32.mrf.mxu1 }
 0x584   :  { %v4310_v52 = vpop.eup %4309  ;;  %v2146_v1 = vadd.f32 %v2145_v30, %v2032_v54  ;;  %v1436_v8 = vpop.xlane.xlu0 %1435  ;;  %v1851_v54 = vor.u32 1.1754944e-38, %v1850_v9 }
 0x585   :  { %v1840_v27 = vmul.f32 %v4310_v52, %v1433_v45  ;;  %4311 = vrcp.f32 %v1436_v8  ;;  %vm1845_vm7 = vweird.f32 %v4310_v52  ;;  %v1866_v48 = vand.u32 2147483648, %v1436_v8 }
 0x586   :  { %3945 = vmatmul.msk.f32.vlgmr.msra.gmra.mxu2 %vm228_vm0, %v2146_v1  ;;  %vm1846_vm9 = vmor %vm1844_vm8, %vm1845_vm7  ;;  %v1864_v39 = vand.u32 2147483647, %v1436_v8  ;;  %vm1860_vm12 = vweird.f32 %v1436_v8 }
 0x587   :  { %v1841_v44 = vsub.f32 1.0, %v1840_v27 }
 0x588   :  { %vm1865_vm14 = vcmp.eq.f32.partialorder %v1864_v39, 8.507059e+37 }
 0x589   :  { %v1842_v4 = vmul.f32 %v4310_v52, %v1841_v44 }
 0x58b   :  { %v4312_v56 = vpop.eup %4311  ;;  %v1843_v17 = vadd.f32 %v4310_v52, %v1842_v4  ;;  %v2035_v47 = vpop.f32.mrf.mxu0 }
 0x58c   :  { %v1856_v5 = vmul.f32 %v4312_v56, %v1436_v8  ;;  %v1439_v30 = vpop.xlane.xlu1 %1438  ;;  %v2148_v27 = vpop.f32.mrf.mxu1  ;;  %vm1861_vm11 = vweird.f32 %v4312_v56 }
 0x58d   :  { %v1847_v51 = vsel %vm1846_vm9, %v4310_v52, %v1843_v17  ;;  %4313 = vrcp.f32 %v1439_v30  ;;  %v2149_v58 = vadd.f32 %v2148_v27, %v2035_v47  ;;  %vm1862_vm13 = vmor %vm1860_vm12, %vm1861_vm11  ;;  %v1882_v27 = vand.u32 2147483648, %v1439_v30 }
 0x58e   :  { %v1857_v1 = vsub.f32 1.0, %v1856_v5  ;;  %v1852_v44 = vsel %vm1849_vm10, %v1851_v54, %v1847_v51  ;;  %v1867_v5 = vor.u32 1.1754944e-38, %v1866_v48  ;;  %v1880_v48 = vand.u32 2147483647, %v1439_v30 }
 0x58f   :  { %v1853_v59 = vmul.f32 %v5761_v18, %v1852_v44  ;;  %v1854_v45 = vmul.f32 %v5763_v34, %v1852_v44  ;;  %3946 = vmatmul.msk.f32.gmra.mxu2 %vm228_vm0, %v2149_v58  ;;  %vm1876_vm1 = vweird.f32 %v1439_v30 }
 0x590   :  { %v1858_v21 = vmul.f32 %v4312_v56, %v1857_v1  ;;  %vm1881_vm3 = vcmp.eq.f32.partialorder %v1880_v48, 8.507059e+37 }
 0x591   :  { %2055 = vmatmul.f32.gmra.mxu0 %v1853_v59  ;;  %2168 = vmatmul.f32.gmra.mxu1 %v1854_v45  ;;  %v1883_v59 = vor.u32 1.1754944e-38, %v1882_v27  ;;  %v2195_v27 = vld [vmem:[#allocation8 + $0x10] sm:$0xff] }
 0x592   :  { %v1859_v17 = vadd.f32 %v4312_v56, %v1858_v21 }
 0x593   :  { %v4314_v9 = vpop.eup %4313  ;;  %v2038_v37 = vpop.f32.mrf.mxu0 }
 0x594   :  { %v1442_v4 = vpop.xlane.xlu2 %1441  ;;  %v1863_v47 = vsel %vm1862_vm13, %v4312_v56, %v1859_v17  ;;  %v1872_v51 = vmul.f32 %v4314_v9, %v1439_v30  ;;  %v2151_v18 = vpop.f32.mrf.mxu1  ;;  %vm1877_vm15 = vweird.f32 %v4314_v9 }
 0x595   :  { %4315 = vrcp.f32 %v1442_v4  ;;  %v1868_v52 = vsel %vm1865_vm14, %v1867_v5, %v1863_v47  ;;  %v2152_v8 = vadd.f32 %v2151_v18, %v2038_v37  ;;  %vm1878_vm2 = vmor %vm1876_vm1, %vm1877_vm15  ;;  %v1896_v47 = vand.u32 2147483647, %v1442_v4 }
 0x596   :  { %v1869_v34 = vmul.f32 %v5773_v50, %v1868_v52  ;;  %v1870_v54 = vmul.f32 %v5776_v26, %v1868_v52  ;;  %v1873_v58 = vsub.f32 1.0, %v1872_v51  ;;  %v1898_v26 = vand.u32 2147483648, %v1442_v4 }
 0x597   :  { %3947 = vmatmul.msk.f32.gmra.mxu2 %vm228_vm0, %v2152_v8  ;;  %vm1892_vm5 = vweird.f32 %v1442_v4  ;;  %vm1897_vm7 = vcmp.eq.f32.partialorder %v1896_v47, 8.507059e+37  ;;  %v2659_v8 = vld [vmem:[%s6514_s6 + $0x28] sm:$0xff] }
 0x598   :  { %v1874_v1 = vmul.f32 %v4314_v9, %v1873_v58  ;;  %2770 = vmatpush.msra.mxu0 %v2659_v8 }
 0x599   :  { %2058 = vmatmul.f32.gmra.mxu0 %v1869_v34  ;;  %2171 = vmatmul.f32.gmra.mxu1 %v1870_v54  ;;  %v1899_v54 = vor.u32 1.1754944e-38, %v1898_v26 }
 0x59a   :  { %v1875_v56 = vadd.f32 %v4314_v9, %v1874_v1  ;;  %v2196_v1 = vld [vmem:[#allocation8 + $0x18] sm:$0xff] }
 0x59b   :  { %v4316_v21 = vpop.eup %4315  ;;  %v2041_v45 = vpop.f32.mrf.mxu0  ;;  %2423 = vmatpush.msrb.mxu3 %v2196_v1 }
 0x59c   :  { %v1888_v39 = vmul.f32 %v4316_v21, %v1442_v4  ;;  %v5937_v44 = vpop.xlane.xlu0 %1444  ;;  %v2154_v17 = vpop.f32.mrf.mxu1  ;;  %v1879_v5 = vsel %vm1878_vm2, %v4314_v9, %v1875_v56  ;;  %vm1893_vm4 = vweird.f32 %v4316_v21 }
 0x59d   :  { %4317 = vrcp.f32 %v5937_v44  ;;  %v2155_v37 = vadd.f32 %v2154_v17, %v2041_v45  ;;  %v1884_v52 = vsel %vm1881_vm3, %v1883_v59, %v1879_v5  ;;  %vm1894_vm6 = vmor %vm1892_vm5, %vm1893_vm4  ;;  %2424 = vmatpush.msrb.mxu3 %v2195_v27  ;;  %v1914_v45 = vand.u32 2147483648, %v5937_v44 }
 0x59e   :  { %v1889_v50 = vsub.f32 1.0, %v1888_v39  ;;  %v1885_v18 = vmul.f32 %v5799_v36, %v1884_v52  ;;  %v1886_v30 = vmul.f32 %v5801_v46, %v1884_v52  ;;  %v2194_v39 = vld [vmem:[#allocation8 + $0x8] sm:$0xff]  ;;  %v1912_v47 = vand.u32 2147483647, %v5937_v44 }
 0x59f   :  { %3948 = vmatmul.msk.f32.gmra.mxu2 %vm228_vm0, %v2155_v37  ;;  %2425 = vmatpush.msrb.mxu3 %v2194_v39  ;;  %vm1908_vm9 = vweird.f32 %v5937_v44  ;;  %v1915_v52 = vor.u32 1.1754944e-38, %v1914_v45 }
 0x5a0   :  { %v1890_v51 = vmul.f32 %v4316_v21, %v1889_v50  ;;  %vm1913_vm11 = vcmp.eq.f32.partialorder %v1912_v47, 8.507059e+37 }
 0x5a1   :  { %2061 = vmatmul.f32.gmra.mxu0 %v1885_v18  ;;  %2174 = vmatmul.f32.gmra.mxu1 %v1886_v30 }
 0x5a2   :  { %v1891_v34 = vadd.f32 %v4316_v21, %v1890_v51  ;;  %v2193_v51 = vld [vmem:[#allocation8] sm:$0xff] }
 0x5a3   :  { %v4318_v58 = vpop.eup %4317  ;;  %v2044_v48 = vpop.f32.mrf.mxu0  ;;  %2426 = vmatpush.msrb.mxu3 %v2193_v51 }
 0x5a4   :  { %v1895_v9 = vsel %vm1894_vm6, %v4316_v21, %v1891_v34  ;;  %v1904_v36 = vmul.f32 %v4318_v58, %v5937_v44  ;;  %v5947_v46 = vpop.xlane.xlu2 %1450  ;;  %v2157_v59 = vpop.f32.mrf.mxu1  ;;  %vm1909_vm8 = vweird.f32 %v4318_v58 }
 0x5a5   :  { %v1900_v4 = vsel %vm1897_vm7, %v1899_v54, %v1895_v9  ;;  %4319 = vrcp.f32 %v5947_v46  ;;  %v2158_v5 = vadd.f32 %v2157_v59, %v2044_v48  ;;  %vm1910_vm10 = vmor %vm1908_vm9, %vm1909_vm8  ;;  %v1944_v27 = vand.u32 2147483647, %v5947_v46 }
 0x5a6   :  { %v1905_v56 = vsub.f32 1.0, %v1904_v36  ;;  %v1448_v21 = vpop.xlane.xlu1 %1447  ;;  %v1901_v50 = vmul.f32 %v5815_v42, %v1900_v4  ;;  %v1902_v26 = vmul.f32 %v5819_v20, %v1900_v4  ;;  %v1946_v36 = vand.u32 2147483648, %v5947_v46 }
 0x5a7   :  { %4321 = vrcp.f32 %v1448_v21  ;;  %3949 = vmatmul.msk.f32.gmra.mxu2 %vm228_vm0, %v2158_v5  ;;  %v1930_v59 = vand.u32 2147483648, %v1448_v21  ;;  %vm1940_vm13 = vweird.f32 %v5947_v46  ;;  %v1928_v45 = vand.u32 2147483647, %v1448_v21 }
 0x5a8   :  { %v1906_v17 = vmul.f32 %v4318_v58, %v1905_v56  ;;  %vm1924_vm1 = vweird.f32 %v1448_v21  ;;  %vm1945_vm2 = vcmp.eq.f32.partialorder %v1944_v27, 8.507059e+37 }
 0x5a9   :  { %2064 = vmatmul.f32.gmra.mxu0 %v1901_v50  ;;  %2177 = vmatmul.f32.gmra.mxu1 %v1902_v26  ;;  %vm1929_vm4 = vcmp.eq.f32.partialorder %v1928_v45, 8.507059e+37 }
 0x5aa   :  { %v1907_v37 = vadd.f32 %v4318_v58, %v1906_v17  ;;  %v1947_v17 = vor.u32 1.1754944e-38, %v1946_v36  ;;  %v2658_v36 = vld [vmem:[%s6514_s6 + $0x20] sm:$0xff] }
 0x5ab   :  { %v4320_v42 = vpop.eup %4319  ;;  %v2047_v34 = vpop.f32.mrf.mxu0  ;;  %2771 = vmatpush.msra.mxu0 %v2658_v36 }
 0x5ac   :  { %v1936_v20 = vmul.f32 %v4320_v42, %v5947_v46  ;;  %v1911_v18 = vsel %vm1910_vm10, %v4318_v58, %v1907_v37  ;;  %v2160_v44 = vpop.f32.mrf.mxu1  ;;  %vm1941_vm12 = vweird.f32 %v4320_v42  ;;  %vm2663_vm10 = vcmask 523264  }
 0x5ad   :  { %v4322_v30 = vpop.eup %4321  ;;  %v1454_v54 = vpop.xlane.xlu0 %1453  ;;  %v1916_v9 = vsel %vm1913_vm11, %v1915_v52, %v1911_v18  ;;  %v2161_v4 = vadd.f32 %v2160_v44, %v2047_v34  ;;  %vm1942_vm15 = vmor %vm1940_vm13, %vm1941_vm12 }
 0x5ae   :  { %v1920_v8 = vmul.f32 %v4322_v30, %v1448_v21  ;;  %v1937_v1 = vsub.f32 1.0, %v1936_v20  ;;  %4323 = vrcp.f32 %v1454_v54  ;;  %v1917_v56 = vmul.f32 %v5839_v11, %v1916_v9 }
 0x5af   :  { %v1918_v58 = vmul.f32 %v5842_v43, %v1916_v9  ;;  %vm1925_vm14 = vweird.f32 %v4322_v30  ;;  %3950 = vmatmul.msk.f32.gmra.mxu2 %vm228_vm0, %v2161_v4  ;;  %v1931_v43 = vor.u32 1.1754944e-38, %v1930_v59  ;;  %v1960_v27 = vand.u32 2147483647, %v1454_v54  ;;  %v2974_v59 = vld [vmem:[#allocation6 + $0x58] sm:$0xff] }
 0x5b0   :  { %v1921_v48 = vsub.f32 1.0, %v1920_v8  ;;  %v1938_v39 = vmul.f32 %v4320_v42, %v1937_v1  ;;  %vm1926_vm3 = vmor %vm1924_vm1, %vm1925_vm14  ;;  %v1962_v1 = vand.u32 2147483648, %v1454_v54  ;;  %vm1956_vm6 = vweird.f32 %v1454_v54  ;;  %3084 = vmatpush.msra.mxu1 %v2974_v59 }
 0x5b1   :  { %2067 = vmatmul.f32.gmra.mxu0 %v1917_v56  ;;  %2180 = vmatmul.f32.gmra.mxu1 %v1918_v58  ;;  %vm1961_vm8 = vcmp.eq.f32.partialorder %v1960_v27, 8.507059e+37  ;;  %v6589_v27 = vld [vmem:[#allocation17_spill] sm:$0xff] }
 0x5b2   :  { %v1922_v50 = vmul.f32 %v4322_v30, %v1921_v48  ;;  %v1939_v26 = vadd.f32 %v4320_v42, %v1938_v39 }
 0x5b3   :  { %v2050_v37 = vpop.f32.mrf.mxu0 }
 0x5b4   :  { %v4324_v5 = vpop.eup %4323  ;;  %v1923_v47 = vadd.f32 %v4322_v30, %v1922_v50  ;;  %v1943_v11 = vsel %vm1942_vm15, %v4320_v42, %v1939_v26  ;;  %v2163_v20 = vpop.f32.mrf.mxu1  ;;  %v2973_v50 = vld [vmem:[#allocation6 + $0x50] sm:$0xff] }
 0x5b5   :  { %v1948_v51 = vsel %vm1945_vm2, %v1947_v17, %v1943_v11  ;;  %v1952_v46 = vmul.f32 %v4324_v5, %v1454_v54  ;;  %v2164_v9 = vadd.f32 %v2163_v20, %v2050_v37  ;;  %vm1957_vm5 = vweird.f32 %v4324_v5  ;;  %3085 = vmatpush.msra.mxu1 %v2973_v50  ;;  %v6585_v17 = vld [vmem:[#allocation18_spill] sm:$0xff]  ;;  %v2654_v20 = vld [vmem:[%s6514_s6] sm:$0xff] }
 0x5b6   :  { %v1949_v52 = vmul.f32 %v5857_v63, %v1948_v51  ;;  %v1927_v18 = vsel %vm1926_vm3, %v4322_v30, %v1923_v47  ;;  %vm1958_vm7 = vmor %vm1956_vm6, %vm1957_vm5  ;;  %v1963_v30 = vor.u32 1.1754944e-38, %v1962_v1  ;;  %v1950_v58 = vmul.f32 %v5864_v23, %v1948_v51  ;;  %v2657_v23 = vld [vmem:[%s6514_s6 + $0x18] sm:$0xff] }
 0x5b7   :  { %v1953_v34 = vsub.f32 1.0, %v1952_v46  ;;  %v1932_v8 = vsel %vm1929_vm4, %v1931_v43, %v1927_v18  ;;  %3951 = vmatmul.msk.f32.gmra.mxu2 %vm228_vm0, %v2164_v9  ;;  %2772 = vmatpush.msra.mxu0 %v2657_v23  ;;  %v6586_v43 = vld [vmem:[#allocation21_spill] sm:$0xff]  ;;  %v6591_v23 = vld [vmem:[#allocation24_spill] sm:$0xff] }
 0x5b8   :  { %v1933_v44 = vmul.f32 %v5868_v60, %v1932_v8  ;;  %2073 = vmatmul.f32.vlgmr.msra.gmra.mxu3 %v1949_v52  ;;  %v1934_v21 = vmul.f32 %v5873_v0, %v1932_v8  ;;  %v6587_v52 = vld [vmem:[#allocation20_spill] sm:$0xff]  ;;  %v6588_v8 = vld [vmem:[#allocation19_spill] sm:$0xff] }
 0x5b9   :  { %v1954_v42 = vmul.f32 %v4324_v5, %v1953_v34 }
 0x5ba   :  { %2070 = vmatmul.f32.gmra.mxu0 %v1933_v44  ;;  %2183 = vmatmul.f32.gmra.mxu1 %v1934_v21 }
 0x5bb   :  { %v1955_v63 = vadd.f32 %v4324_v5, %v1954_v42  ;;  %v2053_v60 = vpop.f32.mrf.mxu0 }
 0x5bc   :  { %v2166_v0 = vpop.f32.mrf.mxu1 }
 0x5bd   :  { %v1959_v4 = vsel %vm1958_vm7, %v4324_v5, %v1955_v63  ;;  %v2167_v39 = vadd.f32 %v2166_v0, %v2053_v60  ;;  %v6032_v0 = vld [vmem:[%s6516_s8 + $0x2] ss:$0 sm:$0xff] }
 0x5be   :  { %v1964_v48 = vsel %vm1961_vm8, %v1963_v30, %v1959_v4  ;;  %v6590_v4 = vld [vmem:[#allocation22_spill] sm:$0xff] }
 0x5bf   :  { %v1965_v56 = vmul.f32 %v5886_v2, %v1964_v48  ;;  %3952 = vmatmul.msk.f32.gmra.mxu2 %vm228_vm0, %v2167_v39  ;;  %v1966_v54 = vmul.f32 %v5889_v29, %v1964_v48  ;;  %v6584_v29 = vld [vmem:[#allocation16_spill] sm:$0xff] }
 0x5c1   :  { %2076 = vmatmul.f32.gmra.mxu3 %v1965_v56  ;;  %v6034_v56 = vstv %s120_s9 }
 0x5c2   :  { %2186 = vmatmul.f32.gmra.mxu1 %v1950_v58 }
 0x5c9   :  { %3977 = vmatmul.msk.f32.vlgmr.msrb.gmra.mxu3 %vm228_vm0, %v4529_v7  ;;  %v2656_v7 = vld [vmem:[%s6514_s6 + $0x10] sm:$0xff] }
 0x5ca   :  { %2189 = vmatmul.f32.gmra.mxu1 %v1966_v54  ;;  %2773 = vmatpush.msra.mxu0 %v2656_v7  ;;  %v2098_v54 = vadd.f32 %v5738_v57, %v5736_v33  ;;  %v2101_v33 = vadd.f32 %v5742_v32, %v5740_v15  ;;  %v6595_v32 = vld [vmem:[#allocation28_spill] sm:$0xff] }
 0x5d1   :  { %3978 = vmatmul.msk.f32.gmra.mxu3 %vm228_vm0, %v4537_v10 }
 0x5d9   :  { %3979 = vmatmul.msk.f32.gmra.mxu3 %vm228_vm0, %v4545_v13 }
 0x5e1   :  { %3980 = vmatmul.msk.f32.gmra.mxu3 %vm228_vm0, %v4553_v16 }
 0x5e9   :  { %3981 = vmatmul.msk.f32.gmra.mxu3 %vm228_vm0, %v4561_v19  ;;  %v6583_v19 = vld [vmem:[#allocation15_spill] sm:$0xff] }
 0x5f1   :  { %3982 = vmatmul.msk.f32.gmra.mxu3 %vm228_vm0, %v4569_v22 }
 0x5f9   :  { %3983 = vmatmul.msk.f32.gmra.mxu3 %vm228_vm0, %v4577_v25 }
 0x601   :  { %3984 = vmatmul.msk.f32.gmra.mxu3 %vm228_vm0, %v4585_v28  ;;  %v2655_v28 = vld [vmem:[%s6514_s6 + $0x8] sm:$0xff] }
 0x602   :  { %2774 = vmatpush.msra.mxu0 %v2655_v28 }
 0x604   :  { %2775 = vmatpush.msra.mxu0 %v2654_v20 }
 0x609   :  { %3985 = vmatmul.msk.f32.gmra.mxu3 %vm228_vm0, %v4593_v31  ;;  %v2315_v44 = vpop.f32.mrf.mxu2 }
 0x60e   :  { %v2056_v10 = vpop.f32.mrf.mxu0  ;;  %v2169_v13 = vpop.f32.mrf.mxu1 }
 0x60f   :  { %v2170_v16 = vadd.f32 %v2169_v13, %v2056_v10 }
 0x611   :  { %3986 = vmatmul.msk.f32.gmra.mxu3 %vm228_vm0, %v6583_v19  ;;  %3953 = vmatmul.msk.f32.gmra.mxu2 %vm228_vm0, %v2170_v16 }
 0x612   :  { %v2318_v63 = vpop.f32.mrf.mxu2 }
 0x616   :  { %v2059_v22 = vpop.f32.mrf.mxu0  ;;  %v2172_v25 = vpop.f32.mrf.mxu1 }
 0x617   :  { %v2173_v2 = vadd.f32 %v2172_v25, %v2059_v22  ;;  %v2972_v22 = vld [vmem:[#allocation6 + $0x48] sm:$0xff]  ;;  %v6592_v25 = vld [vmem:[#allocation26_spill] sm:$0xff] }
 0x618   :  { %3086 = vmatpush.msra.mxu1 %v2972_v22  ;;  %v6601_v22 = vld [vmem:[#allocation31_spill] sm:$0xff] }
 0x619   :  { %3987 = vmatmul.msk.f32.gmra.mxu3 %vm228_vm0, %v6584_v29  ;;  %3954 = vmatmul.msk.f32.gmra.mxu2 %vm228_vm0, %v2173_v2 }
 0x61a   :  { %v2321_v7 = vpop.f32.mrf.mxu2 }
 0x61e   :  { %v2062_v31 = vpop.f32.mrf.mxu0  ;;  %v2175_v45 = vpop.f32.mrf.mxu1 }
 0x61f   :  { %v2176_v26 = vadd.f32 %v2175_v45, %v2062_v31  ;;  %v6593_v45 = vld [vmem:[#allocation38_spill] sm:$0xff] }
 0x621   :  { %3988 = vmatmul.msk.f32.gmra.mxu3 %vm228_vm0, %v6585_v17  ;;  %3955 = vmatmul.msk.f32.gmra.mxu2 %vm228_vm0, %v2176_v26  ;;  %v6594_v26 = vld [vmem:[#allocation39_spill] sm:$0xff] }
 0x622   :  { %v2324_v29 = vpop.f32.mrf.mxu2  ;;  %v2104_v17 = vadd.f32 %v6594_v26, %v6593_v45  ;;  %v6603_v26 = vld [vmem:[#allocation40_spill] sm:$0xff] }
 0x626   :  { %v2065_v5 = vpop.f32.mrf.mxu0  ;;  %v2178_v47 = vpop.f32.mrf.mxu1 }
 0x627   :  { %v2179_v11 = vadd.f32 %v2178_v47, %v2065_v5 }
 0x629   :  { %3989 = vmatmul.msk.f32.gmra.mxu3 %vm228_vm0, %v6586_v43  ;;  %3956 = vmatmul.msk.f32.gmra.mxu2 %vm228_vm0, %v2179_v11 }
 0x62a   :  { %v2327_v43 = vpop.f32.mrf.mxu2 }
 0x62e   :  { %v2068_v51 = vpop.f32.mrf.mxu0  ;;  %v2181_v46 = vpop.f32.mrf.mxu1 }
 0x62f   :  { %v2182_v37 = vadd.f32 %v2181_v46, %v2068_v51  ;;  %v2107_v46 = vadd.f32 %v5759_v49, %v5755_v24  ;;  %v6597_v49 = vld [vmem:[#allocation23_spill] sm:$0xff] }
 0x631   :  { %3990 = vmatmul.msk.f32.gmra.mxu3 %vm228_vm0, %v6587_v52  ;;  %3957 = vmatmul.msk.f32.gmra.mxu2 %vm228_vm0, %v2182_v37  ;;  %v6596_v52 = vld [vmem:[#allocation30_spill] sm:$0xff] }
 0x637   :  { %v2071_v18 = vpop.f32.mrf.mxu0  ;;  %v2184_v34 = vpop.f32.mrf.mxu1 }
 0x638   :  { %v2185_v9 = vadd.f32 %v2184_v34, %v2071_v18 }
 0x639   :  { %3991 = vmatmul.msk.f32.gmra.mxu3 %vm228_vm0, %v6588_v8  ;;  %v2330_v8 = vpop.f32.mrf.mxu2 }
 0x63a   :  { %3958 = vmatmul.msk.f32.gmra.mxu2 %vm228_vm0, %v2185_v9 }
 0x63b   :  { %v2074_v1 = vpop.f32.mrf.mxu3 }
 0x63f   :  { %v2187_v21 = vpop.f32.mrf.mxu1 }
 0x640   :  { %v2188_v42 = vadd.f32 %v2187_v21, %v2074_v1  ;;  %v2110_v1 = vadd.f32 %v5781_v12, %v5778_v62  ;;  %v6598_v12 = vld [vmem:[#allocation25_spill] sm:$0xff] }
 0x641   :  { %3992 = vmatmul.msk.f32.gmra.mxu3 %vm228_vm0, %v6589_v27 }
 0x642   :  { %3959 = vmatmul.msk.f32.gmra.mxu2 %vm228_vm0, %v2188_v42 }
 0x644   :  { %v2077_v36 = vpop.f32.mrf.mxu3 }
 0x647   :  { %v2190_v30 = vpop.f32.mrf.mxu1 }
 0x648   :  { %v2191_v60 = vadd.f32 %v2190_v30, %v2077_v36  ;;  %v2113_v36 = vadd.f32 %v5808_v41, %v5804_v61  ;;  %v6599_v41 = vld [vmem:[#allocation27_spill] sm:$0xff] }
 0x649   :  { %3993 = vmatmul.msk.f32.gmra.mxu3 %vm228_vm0, %v6590_v4 }
 0x64a   :  { %3960 = vmatmul.msk.f32.gmra.mxu2 %vm228_vm0, %v2191_v60 }
 0x64c   :  { %v2428_v48 = vpop.f32.mrf.mxu3 }
 0x64d   :  { %v2429_v39 = vadd.f32 %v2428_v48, %v2315_v44 }
 0x64f   :  { %v2525_v58 = vadd.f32 %v6032_v0, %v2429_v39  ;;  %v2116_v39 = vadd.f32 %v5832_v3, %v5829_v6  ;;  %v6600_v3 = vld [vmem:[#allocation29_spill] sm:$0xff] }
 0x651   :  { %vm2557_vm9 = vcmp.gt.f32.partialorder %v2525_v58, 0.0  ;;  %v2590_v59 = vmul.f32 %v6034_v56, %v2525_v58  ;;  %3994 = vmatmul.msk.f32.gmra.mxu3 %vm228_vm0, %v6591_v23 }
 0x652   :  { %3961 = vmatmul.msk.f32.gmra.mxu2 %vm228_vm0, %v2098_v54 }
 0x653   :  { %v2622_v10 = vsel %vm2557_vm9, %v2525_v58, %v2590_v59 }
 0x654   :  { %v2431_v13 = vpop.f32.mrf.mxu3  ;;  %4009 = vmatmul.msk.f32.vlgmr.msra.gmra.mxu0 %vm2663_vm10, %v2622_v10  ;;  %v2119_v10 = vadd.f32 %v5861_v40, %v5859_v14 }
 0x655   :  { %v2432_v16 = vadd.f32 %v2431_v13, %v2318_v63  ;;  %v2333_v63 = vpop.f32.mrf.mxu2 }
 0x657   :  { %v2526_v19 = vadd.f32 %v6032_v0, %v2432_v16 }
 0x659   :  { %vm2558_vm11 = vcmp.gt.f32.partialorder %v2526_v19, 0.0  ;;  %v2591_v57 = vmul.f32 %v6034_v56, %v2526_v19  ;;  %3995 = vmatmul.msk.f32.gmra.mxu3 %vm228_vm0, %v6592_v25  ;;  %v2125_v25 = vadd.f32 %v5898_v55, %v5896_v35  ;;  %v6604_v35 = vld [vmem:[#allocation41_spill] sm:$0xff] }
 0x65a   :  { %3962 = vmatmul.msk.f32.gmra.mxu2 %vm228_vm0, %v2101_v33  ;;  %v2128_v55 = vadd.f32 %v6604_v35, %v6603_v26 }
 0x65b   :  { %v2623_v2 = vsel %vm2558_vm11, %v2526_v19, %v2591_v57  ;;  %v2122_v19 = vadd.f32 %v5882_v38, %v5880_v53  ;;  %v2971_v53 = vld [vmem:[#allocation6 + $0x40] sm:$0xff] }
 0x65c   :  { %v2434_v50 = vpop.f32.mrf.mxu3  ;;  %4010 = vmatmul.msk.f32.gmra.mxu0 %vm2663_vm10, %v2623_v2  ;;  %v6602_v2 = vld [vmem:[#allocation32_spill] sm:$0xff]  ;;  %3087 = vmatpush.msra.mxu1 %v2971_v53 }
 0x65d   :  { %v2435_v28 = vadd.f32 %v2434_v50, %v2321_v7  ;;  %v2336_v54 = vpop.f32.mrf.mxu2 }
 0x65f   :  { %v2527_v31 = vadd.f32 %v6032_v0, %v2435_v28 }
 0x661   :  { %vm2559_vm12 = vcmp.gt.f32.partialorder %v2527_v31, 0.0  ;;  %v2592_v15 = vmul.f32 %v6034_v56, %v2527_v31  ;;  %3996 = vmatmul.msk.f32.gmra.mxu3 %vm228_vm0, %v6595_v32 }
 0x662   :  { %3963 = vmatmul.msk.f32.gmra.mxu2 %vm228_vm0, %v2104_v17  ;;  %v6605_v17 = vld [vmem:[#allocation33_spill] sm:$0xff] }
 0x663   :  { %v2624_v5 = vsel %vm2559_vm12, %v2527_v31, %v2592_v15 }
 0x664   :  { %v2437_v47 = vpop.f32.mrf.mxu3  ;;  %4011 = vmatmul.msk.f32.gmra.mxu0 %vm2663_vm10, %v2624_v5 }
 0x665   :  { %v2438_v11 = vadd.f32 %v2437_v47, %v2324_v29 }
 0x667   :  { %v2528_v51 = vadd.f32 %v6032_v0, %v2438_v11 }
 0x669   :  { %vm2560_vm13 = vcmp.gt.f32.partialorder %v2528_v51, 0.0  ;;  %v2593_v37 = vmul.f32 %v6034_v56, %v2528_v51  ;;  %3997 = vmatmul.msk.f32.gmra.mxu3 %vm228_vm0, %v6596_v52  ;;  %v6608_v52 = vld [vmem:[#allocation34_spill] sm:$0xff] }
 0x66a   :  { %3964 = vmatmul.msk.f32.gmra.mxu2 %vm228_vm0, %v2107_v46  ;;  %v6607_v46 = vld [vmem:[#allocation43_spill] sm:$0xff] }
 0x66b   :  { %v2625_v20 = vsel %vm2560_vm13, %v2528_v51, %v2593_v37  ;;  %v6606_v51 = vld [vmem:[#allocation42_spill] sm:$0xff] }
 0x66c   :  { %v2440_v18 = vpop.f32.mrf.mxu3  ;;  %4012 = vmatmul.msk.f32.gmra.mxu0 %vm2663_vm10, %v2625_v20  ;;  %v2131_v37 = vadd.f32 %v6607_v46, %v6606_v51 }
 0x66d   :  { %v2441_v34 = vadd.f32 %v2440_v18, %v2327_v43 }
 0x66f   :  { %v2529_v9 = vadd.f32 %v6032_v0, %v2441_v34 }
 0x671   :  { %vm2561_vm14 = vcmp.gt.f32.partialorder %v2529_v9, 0.0  ;;  %v2594_v24 = vmul.f32 %v6034_v56, %v2529_v9  ;;  %3998 = vmatmul.msk.f32.gmra.mxu3 %vm228_vm0, %v6597_v49 }
 0x672   :  { %3965 = vmatmul.msk.f32.gmra.mxu2 %vm228_vm0, %v2110_v1  ;;  %v6609_v1 = vld [vmem:[#allocation44_spill] sm:$0xff] }
 0x673   :  { %v2626_v44 = vsel %vm2561_vm14, %v2529_v9, %v2594_v24  ;;  %v6610_v24 = vld [vmem:[#allocation45_spill] sm:$0xff] }
 0x674   :  { %v2443_v21 = vpop.f32.mrf.mxu3  ;;  %4013 = vmatmul.msk.f32.gmra.mxu0 %vm2663_vm10, %v2626_v44  ;;  %v2134_v49 = vadd.f32 %v6610_v24, %v6609_v1 }
 0x675   :  { %v2444_v42 = vadd.f32 %v2443_v21, %v2330_v8  ;;  %v6611_v21 = vld [vmem:[#allocation35_spill] sm:$0xff] }
 0x677   :  { %v2530_v27 = vadd.f32 %v6032_v0, %v2444_v42 }
 0x679   :  { %vm2562_vm15 = vcmp.gt.f32.partialorder %v2530_v27, 0.0  ;;  %v2595_v62 = vmul.f32 %v6034_v56, %v2530_v27  ;;  %3999 = vmatmul.msk.f32.gmra.mxu3 %vm228_vm0, %v6598_v12 }
 0x67a   :  { %3966 = vmatmul.msk.f32.gmra.mxu2 %vm228_vm0, %v2113_v36 }
 0x67b   :  { %v2627_v30 = vsel %vm2562_vm15, %v2530_v27, %v2595_v62 }
 0x67c   :  { %v2446_v60 = vpop.f32.mrf.mxu3  ;;  %4014 = vmatmul.msk.f32.gmra.mxu0 %vm2663_vm10, %v2627_v30  ;;  %v6613_v30 = vld [vmem:[#allocation47_spill] sm:$0xff] }
 0x67d   :  { %v2447_v4 = vadd.f32 %v2446_v60, %v2333_v63  ;;  %v6612_v63 = vld [vmem:[#allocation46_spill] sm:$0xff] }
 0x67e   :  { %v2137_v60 = vadd.f32 %v6613_v30, %v6612_v63 }
 0x67f   :  { %v2531_v48 = vadd.f32 %v6032_v0, %v2447_v4 }
 0x681   :  { %vm2563_vm1 = vcmp.gt.f32.partialorder %v2531_v48, 0.0  ;;  %v2596_v61 = vmul.f32 %v6034_v56, %v2531_v48  ;;  %4000 = vmatmul.msk.f32.gmra.mxu3 %vm228_vm0, %v6599_v41 }
 0x682   :  { %3967 = vmatmul.msk.f32.gmra.mxu2 %vm228_vm0, %v2116_v39 }
 0x683   :  { %v2628_v58 = vsel %vm2563_vm1, %v2531_v48, %v2596_v61  ;;  %v6614_v48 = vld [vmem:[#allocation36_spill] sm:$0xff] }
 0x684   :  { %v2449_v59 = vpop.f32.mrf.mxu3  ;;  %4015 = vmatmul.msk.f32.gmra.mxu0 %vm2663_vm10, %v2628_v58 }
 0x685   :  { %v2450_v23 = vadd.f32 %v2449_v59, %v2336_v54  ;;  %v6615_v59 = vld [vmem:[#allocation48_spill] sm:$0xff] }
 0x687   :  { %v2532_v7 = vadd.f32 %v6032_v0, %v2450_v23  ;;  %v6616_v23 = vld [vmem:[#allocation49_spill] sm:$0xff] }
 0x689   :  { %vm2564_vm2 = vcmp.gt.f32.partialorder %v2532_v7, 0.0  ;;  %v2597_v6 = vmul.f32 %v6034_v56, %v2532_v7  ;;  %4001 = vmatmul.msk.f32.gmra.mxu3 %vm228_vm0, %v6600_v3 }
 0x68a   :  { %3968 = vmatmul.msk.f32.gmra.mxu2 %vm228_vm0, %v2119_v10 }
 0x68b   :  { %v2629_v13 = vsel %vm2564_vm2, %v2532_v7, %v2597_v6  ;;  %v2140_v7 = vadd.f32 %v6616_v23, %v6615_v59  ;;  %v6617_v6 = vld [vmem:[#allocation37_spill] sm:$0xff] }
 0x68c   :  { %4016 = vmatmul.msk.f32.gmra.mxu0 %vm2663_vm10, %v2629_v13  ;;  %v2452_v16 = vpop.f32.mrf.mxu3 }
 0x691   :  { %4002 = vmatmul.msk.f32.gmra.mxu3 %vm228_vm0, %v6601_v22 }
 0x692   :  { %3969 = vmatmul.msk.f32.gmra.mxu2 %vm228_vm0, %v2122_v19 }
 0x694   :  { %v2455_v14 = vpop.f32.mrf.mxu3  ;;  %v2339_v40 = vpop.f32.mrf.mxu2 }
 0x695   :  { %v2453_v33 = vadd.f32 %v2452_v16, %v2339_v40  ;;  %v6619_v40 = vld [vmem:[#allocation51_spill] sm:$0xff] }
 0x697   :  { %v2533_v57 = vadd.f32 %v6032_v0, %v2453_v33 }
 0x699   :  { %4003 = vmatmul.msk.f32.gmra.mxu3 %vm228_vm0, %v6602_v2  ;;  %vm2565_vm3 = vcmp.gt.f32.partialorder %v2533_v57, 0.0  ;;  %v2598_v29 = vmul.f32 %v6034_v56, %v2533_v57 }
 0x69a   :  { %3970 = vmatmul.msk.f32.gmra.mxu2 %vm228_vm0, %v2125_v25 }
 0x69b   :  { %v2630_v38 = vsel %vm2565_vm3, %v2533_v57, %v2598_v29 }
 0x69c   :  { %v2458_v50 = vpop.f32.mrf.mxu3  ;;  %v2342_v28 = vpop.f32.mrf.mxu2  ;;  %4017 = vmatmul.msk.f32.gmra.mxu0 %vm2663_vm10, %v2630_v38  ;;  %v6162_v38 = vld [vmem:[%s6516_s8 + $0x3] ss:$0 sm:$0xff] }
 0x69d   :  { %v2456_v31 = vadd.f32 %v2455_v14, %v2342_v28  ;;  %v6618_v14 = vld [vmem:[#allocation50_spill] sm:$0xff] }
 0x69e   :  { %v2143_v33 = vadd.f32 %v6619_v40, %v6618_v14 }
 0x69f   :  { %v2534_v45 = vadd.f32 %v6032_v0, %v2456_v31 }
 0x6a1   :  { %4004 = vmatmul.msk.f32.gmra.mxu3 %vm228_vm0, %v6605_v17  ;;  %vm2566_vm4 = vcmp.gt.f32.partialorder %v2534_v45, 0.0  ;;  %v2599_v15 = vmul.f32 %v6034_v56, %v2534_v45 }
 0x6a2   :  { %3971 = vmatmul.msk.f32.gmra.mxu2 %vm228_vm0, %v2128_v55 }
 0x6a3   :  { %v2631_v32 = vsel %vm2566_vm4, %v2534_v45, %v2599_v15  ;;  %v6165_v45 = vstv %s3780_s20 }
 0x6a4   :  { %v2461_v5 = vpop.f32.mrf.mxu3  ;;  %v2345_v47 = vpop.f32.mrf.mxu2  ;;  %4018 = vmatmul.msk.f32.gmra.mxu0 %vm2663_vm10, %v2631_v32 }
 0x6a5   :  { %v2459_v11 = vadd.f32 %v2458_v50, %v2345_v47 }
 0x6a7   :  { %v2535_v43 = vadd.f32 %v6032_v0, %v2459_v11 }
 0x6a9   :  { %4005 = vmatmul.msk.f32.gmra.mxu3 %vm228_vm0, %v6608_v52  ;;  %vm2567_vm5 = vcmp.gt.f32.partialorder %v2535_v43, 0.0  ;;  %v2600_v20 = vmul.f32 %v6034_v56, %v2535_v43 }
 0x6aa   :  { %3972 = vmatmul.msk.f32.gmra.mxu2 %vm228_vm0, %v2131_v37 }
 0x6ab   :  { %v2632_v18 = vsel %vm2567_vm5, %v2535_v43, %v2600_v20 }
 0x6ac   :  { %v2464_v34 = vpop.f32.mrf.mxu3  ;;  %4019 = vmatmul.msk.f32.gmra.mxu0 %vm2663_vm10, %v2632_v18  ;;  %v2348_v9 = vpop.f32.mrf.mxu2 }
 0x6ad   :  { %v2462_v8 = vadd.f32 %v2461_v5, %v2348_v9 }
 0x6af   :  { %v2536_v44 = vadd.f32 %v6032_v0, %v2462_v8 }
 0x6b1   :  { %4006 = vmatmul.msk.f32.gmra.mxu3 %vm228_vm0, %v6611_v21  ;;  %vm2568_vm6 = vcmp.gt.f32.partialorder %v2536_v44, 0.0  ;;  %v2601_v42 = vmul.f32 %v6034_v56, %v2536_v44 }
 0x6b2   :  { %3973 = vmatmul.msk.f32.gmra.mxu2 %vm228_vm0, %v2134_v49 }
 0x6b3   :  { %v2633_v36 = vsel %vm2568_vm6, %v2536_v44, %v2601_v42 }
 0x6b4   :  { %v2467_v27 = vpop.f32.mrf.mxu3  ;;  %v2351_v62 = vpop.f32.mrf.mxu2  ;;  %4020 = vmatmul.msk.f32.gmra.mxu0 %vm2663_vm10, %v2633_v36 }
 0x6b5   :  { %v2465_v12 = vadd.f32 %v2464_v34, %v2351_v62 }
 0x6b7   :  { %v2537_v4 = vadd.f32 %v6032_v0, %v2465_v12 }
 0x6b9   :  { %4007 = vmatmul.msk.f32.gmra.mxu3 %vm228_vm0, %v6614_v48  ;;  %v2602_v39 = vmul.f32 %v6034_v56, %v2537_v4  ;;  %vm2569_vm7 = vcmp.gt.f32.partialorder %v2537_v4, 0.0 }
 0x6ba   :  { %3974 = vmatmul.msk.f32.gmra.mxu2 %vm228_vm0, %v2137_v60 }
 0x6bb   :  { %v2634_v41 = vsel %vm2569_vm7, %v2537_v4, %v2602_v39 }
 0x6bc   :  { %v2470_v61 = vpop.f32.mrf.mxu3  ;;  %4021 = vmatmul.msk.f32.gmra.mxu0 %vm2663_vm10, %v2634_v41 }
 0x6bd   :  { %v2354_v58 = vpop.f32.mrf.mxu2 }
 0x6be   :  { %v2468_v54 = vadd.f32 %v2467_v27, %v2354_v58 }
 0x6c0   :  { %v2538_v10 = vadd.f32 %v6032_v0, %v2468_v54 }
 0x6c1   :  { %4008 = vmatmul.msk.f32.gmra.mxu3 %vm228_vm0, %v6617_v6 }
 0x6c2   :  { %v2603_v3 = vmul.f32 %v6034_v56, %v2538_v10  ;;  %3975 = vmatmul.msk.f32.gmra.mxu2 %vm228_vm0, %v2140_v7  ;;  %vm2570_vm8 = vcmp.gt.f32.partialorder %v2538_v10, 0.0 }
 0x6c4   :  { %v2473_v13 = vpop.f32.mrf.mxu3  ;;  %v2635_v16 = vsel %vm2570_vm8, %v2538_v10, %v2603_v3 }
 0x6c5   :  { %v2357_v19 = vpop.f32.mrf.mxu2  ;;  %4022 = vmatmul.msk.f32.gmra.mxu0 %vm2663_vm10, %v2635_v16 }
 0x6c6   :  { %v2471_v22 = vadd.f32 %v2470_v61, %v2357_v19 }
 0x6c8   :  { %v2539_v57 = vadd.f32 %v6032_v0, %v2471_v22 }
 0x6ca   :  { %v2604_v25 = vmul.f32 %v6034_v56, %v2539_v57  ;;  %3976 = vmatmul.msk.f32.gmra.mxu2 %vm228_vm0, %v2143_v33  ;;  %vm2571_vm9 = vcmp.gt.f32.partialorder %v2539_v57, 0.0 }
 0x6cc   :  { %v2476_v2 = vpop.f32.mrf.mxu3  ;;  %v2636_v29 = vsel %vm2571_vm9, %v2539_v57, %v2604_v25 }
 0x6cd   :  { %v2360_v53 = vpop.f32.mrf.mxu2  ;;  %4023 = vmatmul.msk.f32.gmra.mxu0 %vm2663_vm10, %v2636_v29 }
 0x6ce   :  { %v2474_v50 = vadd.f32 %v2473_v13, %v2360_v53 }
 0x6d0   :  { %v2540_v28 = vadd.f32 %v6032_v0, %v2474_v50 }
 0x6d1   :  { %v2777_v31 = vpop.f32.mrf.mxu0 }
 0x6d2   :  { %v2778_v26 = vadd.f32 %v6162_v38, %v2777_v31  ;;  %v2605_v35 = vmul.f32 %v6034_v56, %v2540_v28  ;;  %vm2572_vm11 = vcmp.gt.f32.partialorder %v2540_v28, 0.0 }
 0x6d4   :  { %vm2873_vm12 = vcmp.gt.f32.partialorder %v2778_v26, 0.0  ;;  %v2906_v55 = vmul.f32 %v6165_v45, %v2778_v26  ;;  %v2479_v17 = vpop.f32.mrf.mxu3  ;;  %v2637_v15 = vsel %vm2572_vm11, %v2540_v28, %v2605_v35 }
 0x6d5   :  { %v2363_v5 = vpop.f32.mrf.mxu2  ;;  %4024 = vmatmul.msk.f32.gmra.mxu0 %vm2663_vm10, %v2637_v15 }
 0x6d6   :  { %v2938_v32 = vsel %vm2873_vm12, %v2778_v26, %v2906_v55  ;;  %v2477_v47 = vadd.f32 %v2476_v2, %v2363_v5 }
 0x6d7   :  { %4041 = vmatmul.msk.f32.vlgmr.msra.gmra.mxu1 %vm228_vm0, %v2938_v32 }
 0x6d8   :  { %v2541_v11 = vadd.f32 %v6032_v0, %v2477_v47 }
 0x6d9   :  { %v2780_v43 = vpop.f32.mrf.mxu0 }
 0x6da   :  { %v2781_v51 = vadd.f32 %v6162_v38, %v2780_v43  ;;  %v2606_v46 = vmul.f32 %v6034_v56, %v2541_v11  ;;  %vm2573_vm13 = vcmp.gt.f32.partialorder %v2541_v11, 0.0 }
 0x6dc   :  { %v2907_v37 = vmul.f32 %v6165_v45, %v2781_v51  ;;  %vm2874_vm14 = vcmp.gt.f32.partialorder %v2781_v51, 0.0  ;;  %v2482_v52 = vpop.f32.mrf.mxu3  ;;  %v2638_v20 = vsel %vm2573_vm13, %v2541_v11, %v2606_v46 }
 0x6dd   :  { %v2366_v18 = vpop.f32.mrf.mxu2  ;;  %4025 = vmatmul.msk.f32.gmra.mxu0 %vm2663_vm10, %v2638_v20 }
 0x6de   :  { %v2939_v34 = vsel %vm2874_vm14, %v2781_v51, %v2907_v37  ;;  %v2480_v9 = vadd.f32 %v2479_v17, %v2366_v18 }
 0x6df   :  { %4042 = vmatmul.msk.f32.gmra.mxu1 %vm228_vm0, %v2939_v34 }
 0x6e0   :  { %v2542_v8 = vadd.f32 %v6032_v0, %v2480_v9 }
 0x6e1   :  { %v2783_v1 = vpop.f32.mrf.mxu0 }
 0x6e2   :  { %v2784_v24 = vadd.f32 %v6162_v38, %v2783_v1  ;;  %v2607_v49 = vmul.f32 %v6034_v56, %v2542_v8  ;;  %vm2574_vm15 = vcmp.gt.f32.partialorder %v2542_v8, 0.0 }
 0x6e4   :  { %v2908_v44 = vmul.f32 %v6165_v45, %v2784_v24  ;;  %vm2875_vm1 = vcmp.gt.f32.partialorder %v2784_v24, 0.0  ;;  %v2485_v21 = vpop.f32.mrf.mxu3  ;;  %v2639_v42 = vsel %vm2574_vm15, %v2542_v8, %v2607_v49 }
 0x6e5   :  { %v2369_v27 = vpop.f32.mrf.mxu2  ;;  %4026 = vmatmul.msk.f32.gmra.mxu0 %vm2663_vm10, %v2639_v42 }
 0x6e6   :  { %v2940_v36 = vsel %vm2875_vm1, %v2784_v24, %v2908_v44  ;;  %v2483_v62 = vadd.f32 %v2482_v52, %v2369_v27 }
 0x6e7   :  { %4043 = vmatmul.msk.f32.gmra.mxu1 %vm228_vm0, %v2940_v36 }
 0x6e8   :  { %v2543_v12 = vadd.f32 %v6032_v0, %v2483_v62 }
 0x6e9   :  { %v2786_v63 = vpop.f32.mrf.mxu0 }
 0x6ea   :  { %v2787_v30 = vadd.f32 %v6162_v38, %v2786_v63  ;;  %v2608_v60 = vmul.f32 %v6034_v56, %v2543_v12  ;;  %vm2575_vm2 = vcmp.gt.f32.partialorder %v2543_v12, 0.0 }
 0x6ec   :  { %v2909_v4 = vmul.f32 %v6165_v45, %v2787_v30  ;;  %vm2876_vm3 = vcmp.gt.f32.partialorder %v2787_v30, 0.0  ;;  %v2488_v48 = vpop.f32.mrf.mxu3  ;;  %v2640_v39 = vsel %vm2575_vm2, %v2543_v12, %v2608_v60 }
 0x6ed   :  { %v2372_v61 = vpop.f32.mrf.mxu2  ;;  %4027 = vmatmul.msk.f32.gmra.mxu0 %vm2663_vm10, %v2640_v39 }
 0x6ee   :  { %v2941_v41 = vsel %vm2876_vm3, %v2787_v30, %v2909_v4  ;;  %v2486_v58 = vadd.f32 %v2485_v21, %v2372_v61 }
 0x6ef   :  { %4044 = vmatmul.msk.f32.gmra.mxu1 %vm228_vm0, %v2941_v41 }
 0x6f0   :  { %v2544_v54 = vadd.f32 %v6032_v0, %v2486_v58 }
 0x6f1   :  { %v2789_v59 = vpop.f32.mrf.mxu0 }
 0x6f2   :  { %v2790_v23 = vadd.f32 %v6162_v38, %v2789_v59  ;;  %v2609_v7 = vmul.f32 %v6034_v56, %v2544_v54  ;;  %vm2576_vm4 = vcmp.gt.f32.partialorder %v2544_v54, 0.0 }
 0x6f4   :  { %v2910_v10 = vmul.f32 %v6165_v45, %v2790_v23  ;;  %vm2877_vm5 = vcmp.gt.f32.partialorder %v2790_v23, 0.0  ;;  %v2491_v6 = vpop.f32.mrf.mxu3  ;;  %v2641_v3 = vsel %vm2576_vm4, %v2544_v54, %v2609_v7 }
 0x6f5   :  { %v2375_v13 = vpop.f32.mrf.mxu2  ;;  %4028 = vmatmul.msk.f32.gmra.mxu0 %vm2663_vm10, %v2641_v3 }
 0x6f6   :  { %v2942_v16 = vsel %vm2877_vm5, %v2790_v23, %v2910_v10  ;;  %v2489_v19 = vadd.f32 %v2488_v48, %v2375_v13 }
 0x6f7   :  { %4045 = vmatmul.msk.f32.gmra.mxu1 %vm228_vm0, %v2942_v16 }
 0x6f8   :  { %v2545_v22 = vadd.f32 %v6032_v0, %v2489_v19 }
 0x6f9   :  { %v2792_v14 = vpop.f32.mrf.mxu0 }
 0x6fa   :  { %v2793_v40 = vadd.f32 %v6162_v38, %v2792_v14  ;;  %v2610_v33 = vmul.f32 %v6034_v56, %v2545_v22  ;;  %vm2577_vm6 = vcmp.gt.f32.partialorder %v2545_v22, 0.0 }
 0x6fc   :  { %v2911_v57 = vmul.f32 %v6165_v45, %v2793_v40  ;;  %vm2878_vm7 = vcmp.gt.f32.partialorder %v2793_v40, 0.0  ;;  %v2494_v25 = vpop.f32.mrf.mxu3  ;;  %v2642_v2 = vsel %vm2577_vm6, %v2545_v22, %v2610_v33 }
 0x6fd   :  { %v2378_v29 = vpop.f32.mrf.mxu2  ;;  %4029 = vmatmul.msk.f32.gmra.mxu0 %vm2663_vm10, %v2642_v2 }
 0x6fe   :  { %v2943_v53 = vsel %vm2878_vm7, %v2793_v40, %v2911_v57  ;;  %v2492_v50 = vadd.f32 %v2491_v6, %v2378_v29 }
 0x6ff   :  { %4046 = vmatmul.msk.f32.gmra.mxu1 %vm228_vm0, %v2943_v53 }
 0x700   :  { %v2546_v28 = vadd.f32 %v6032_v0, %v2492_v50 }
 0x701   :  { %v2795_v31 = vpop.f32.mrf.mxu0 }
 0x702   :  { %v2796_v26 = vadd.f32 %v6162_v38, %v2795_v31  ;;  %v2611_v35 = vmul.f32 %v6034_v56, %v2546_v28  ;;  %vm2578_vm8 = vcmp.gt.f32.partialorder %v2546_v28, 0.0 }
 0x704   :  { %v2912_v55 = vmul.f32 %v6165_v45, %v2796_v26  ;;  %vm2879_vm9 = vcmp.gt.f32.partialorder %v2796_v26, 0.0  ;;  %v2497_v17 = vpop.f32.mrf.mxu3  ;;  %v2643_v15 = vsel %vm2578_vm8, %v2546_v28, %v2611_v35 }
 0x705   :  { %v2381_v32 = vpop.f32.mrf.mxu2  ;;  %4030 = vmatmul.msk.f32.gmra.mxu0 %vm2663_vm10, %v2643_v15 }
 0x706   :  { %v2944_v5 = vsel %vm2879_vm9, %v2796_v26, %v2912_v55  ;;  %v2495_v47 = vadd.f32 %v2494_v25, %v2381_v32 }
 0x707   :  { %4047 = vmatmul.msk.f32.gmra.mxu1 %vm228_vm0, %v2944_v5 }
 0x708   :  { %v2547_v11 = vadd.f32 %v6032_v0, %v2495_v47 }
 0x709   :  { %v2798_v43 = vpop.f32.mrf.mxu0 }
 0x70a   :  { %v2799_v51 = vadd.f32 %v6162_v38, %v2798_v43  ;;  %v2612_v46 = vmul.f32 %v6034_v56, %v2547_v11  ;;  %vm2579_vm11 = vcmp.gt.f32.partialorder %v2547_v11, 0.0 }
 0x70c   :  { %v2913_v37 = vmul.f32 %v6165_v45, %v2799_v51  ;;  %vm2880_vm12 = vcmp.gt.f32.partialorder %v2799_v51, 0.0  ;;  %v2500_v52 = vpop.f32.mrf.mxu3  ;;  %v2644_v20 = vsel %vm2579_vm11, %v2547_v11, %v2612_v46 }
 0x70d   :  { %v2384_v18 = vpop.f32.mrf.mxu2  ;;  %4031 = vmatmul.msk.f32.gmra.mxu0 %vm2663_vm10, %v2644_v20 }
 0x70e   :  { %v2945_v34 = vsel %vm2880_vm12, %v2799_v51, %v2913_v37  ;;  %v2498_v9 = vadd.f32 %v2497_v17, %v2384_v18 }
 0x70f   :  { %4048 = vmatmul.msk.f32.gmra.mxu1 %vm228_vm0, %v2945_v34 }
 0x710   :  { %v2548_v8 = vadd.f32 %v6032_v0, %v2498_v9 }
 0x712   :  { %v2613_v1 = vmul.f32 %v6034_v56, %v2548_v8  ;;  %vm2580_vm13 = vcmp.gt.f32.partialorder %v2548_v8, 0.0 }
 0x714   :  { %v2503_v24 = vpop.f32.mrf.mxu3  ;;  %v2645_v49 = vsel %vm2580_vm13, %v2548_v8, %v2613_v1 }
 0x715   :  { %v2387_v44 = vpop.f32.mrf.mxu2  ;;  %4032 = vmatmul.msk.f32.gmra.mxu0 %vm2663_vm10, %v2645_v49 }
 0x716   :  { %v2501_v21 = vadd.f32 %v2500_v52, %v2387_v44 }
 0x718   :  { %v2549_v42 = vadd.f32 %v6032_v0, %v2501_v21 }
 0x719   :  { %v2801_v27 = vpop.f32.mrf.mxu0 }
 0x71a   :  { %v2614_v36 = vmul.f32 %v6034_v56, %v2549_v42  ;;  %v2802_v62 = vadd.f32 %v6162_v38, %v2801_v27  ;;  %vm2581_vm14 = vcmp.gt.f32.partialorder %v2549_v42, 0.0 }
 0x71c   :  { %v2506_v12 = vpop.f32.mrf.mxu3  ;;  %vm2881_vm15 = vcmp.gt.f32.partialorder %v2802_v62, 0.0  ;;  %v2914_v63 = vmul.f32 %v6165_v45, %v2802_v62  ;;  %v2646_v30 = vsel %vm2581_vm14, %v2549_v42, %v2614_v36 }
 0x71d   :  { %v2390_v60 = vpop.f32.mrf.mxu2  ;;  %4033 = vmatmul.msk.f32.gmra.mxu0 %vm2663_vm10, %v2646_v30 }
 0x71e   :  { %v2504_v4 = vadd.f32 %v2503_v24, %v2390_v60  ;;  %v2946_v48 = vsel %vm2881_vm15, %v2802_v62, %v2914_v63 }
 0x71f   :  { %4049 = vmatmul.msk.f32.gmra.mxu1 %vm228_vm0, %v2946_v48 }
 0x720   :  { %v2550_v39 = vadd.f32 %v6032_v0, %v2504_v4 }
 0x721   :  { %v2804_v61 = vpop.f32.mrf.mxu0 }
 0x722   :  { %v2615_v41 = vmul.f32 %v6034_v56, %v2550_v39  ;;  %v2805_v58 = vadd.f32 %v6162_v38, %v2804_v61  ;;  %vm2582_vm1 = vcmp.gt.f32.partialorder %v2550_v39, 0.0 }
 0x724   :  { %v2509_v54 = vpop.f32.mrf.mxu3  ;;  %vm2882_vm2 = vcmp.gt.f32.partialorder %v2805_v58, 0.0  ;;  %v2915_v59 = vmul.f32 %v6165_v45, %v2805_v58  ;;  %v2647_v23 = vsel %vm2582_vm1, %v2550_v39, %v2615_v41 }
 0x725   :  { %v2393_v7 = vpop.f32.mrf.mxu2  ;;  %4034 = vmatmul.msk.f32.gmra.mxu0 %vm2663_vm10, %v2647_v23 }
 0x726   :  { %v2507_v10 = vadd.f32 %v2506_v12, %v2393_v7  ;;  %v2947_v6 = vsel %vm2882_vm2, %v2805_v58, %v2915_v59 }
 0x727   :  { %4050 = vmatmul.msk.f32.gmra.mxu1 %vm228_vm0, %v2947_v6 }
 0x728   :  { %v2551_v3 = vadd.f32 %v6032_v0, %v2507_v10 }
 0x729   :  { %v2807_v13 = vpop.f32.mrf.mxu0 }
 0x72a   :  { %v2616_v16 = vmul.f32 %v6034_v56, %v2551_v3  ;;  %v2808_v19 = vadd.f32 %v6162_v38, %v2807_v13  ;;  %vm2583_vm3 = vcmp.gt.f32.partialorder %v2551_v3, 0.0 }
 0x72c   :  { %vm2883_vm4 = vcmp.gt.f32.partialorder %v2808_v19, 0.0  ;;  %v2916_v22 = vmul.f32 %v6165_v45, %v2808_v19  ;;  %v2648_v14 = vsel %vm2583_vm3, %v2551_v3, %v2616_v16  ;;  %v2512_v33 = vpop.f32.mrf.mxu3 }
 0x72d   :  { %v2396_v40 = vpop.f32.mrf.mxu2  ;;  %4035 = vmatmul.msk.f32.gmra.mxu0 %vm2663_vm10, %v2648_v14 }
 0x72e   :  { %v2510_v57 = vadd.f32 %v2509_v54, %v2396_v40  ;;  %v2948_v25 = vsel %vm2883_vm4, %v2808_v19, %v2916_v22  ;;  %v3515_v19 = vld [vmem:[#allocation8 + $0x78] sm:$0xff] }
 0x72f   :  { %4051 = vmatmul.msk.f32.gmra.mxu1 %vm228_vm0, %v2948_v25  ;;  %v3510_v22 = vld [vmem:[#allocation8 + $0x58] sm:$0xff]  ;;  %3569 = vmatpush.msrb.mxu2 %v3515_v19 }
 0x730   :  { %v2552_v2 = vadd.f32 %v6032_v0, %v2510_v57  ;;  %3626 = vmatpush.msra.mxu3 %v3510_v22 }
 0x731   :  { %v2810_v53 = vpop.f32.mrf.mxu0 }
 0x732   :  { %v2617_v29 = vmul.f32 %v6034_v56, %v2552_v2  ;;  %vm2584_vm5 = vcmp.gt.f32.partialorder %v2552_v2, 0.0  ;;  %v2811_v50 = vadd.f32 %v6162_v38, %v2810_v53 }
 0x734   :  { %v2649_v28 = vsel %vm2584_vm5, %v2552_v2, %v2617_v29  ;;  %vm2884_vm6 = vcmp.gt.f32.partialorder %v2811_v50, 0.0  ;;  %v2917_v31 = vmul.f32 %v6165_v45, %v2811_v50  ;;  %v2515_v17 = vpop.f32.mrf.mxu3  ;;  %v6276_v29 = vld [vmem:[%s6516_s8 + $0x4] ss:$0 sm:$0xff] }
 0x735   :  { %v2399_v26 = vpop.f32.mrf.mxu2  ;;  %4036 = vmatmul.msk.f32.gmra.mxu0 %vm2663_vm10, %v2649_v28 }
 0x736   :  { %v2513_v35 = vadd.f32 %v2512_v33, %v2399_v26  ;;  %v2949_v55 = vsel %vm2884_vm6, %v2811_v50, %v2917_v31 }
 0x737   :  { %4052 = vmatmul.msk.f32.gmra.mxu1 %vm228_vm0, %v2949_v55 }
 0x738   :  { %v2553_v15 = vadd.f32 %v6032_v0, %v2513_v35 }
 0x739   :  { %v2813_v5 = vpop.f32.mrf.mxu0 }
 0x73a   :  { %v2618_v32 = vmul.f32 %v6034_v56, %v2553_v15  ;;  %vm2585_vm7 = vcmp.gt.f32.partialorder %v2553_v15, 0.0  ;;  %v2814_v47 = vadd.f32 %v6162_v38, %v2813_v5 }
 0x73c   :  { %v2650_v11 = vsel %vm2585_vm7, %v2553_v15, %v2618_v32  ;;  %vm2885_vm8 = vcmp.gt.f32.partialorder %v2814_v47, 0.0  ;;  %v2918_v43 = vmul.f32 %v6165_v45, %v2814_v47  ;;  %v2518_v20 = vpop.f32.mrf.mxu3 }
 0x73d   :  { %v2402_v51 = vpop.f32.mrf.mxu2  ;;  %4037 = vmatmul.msk.f32.gmra.mxu0 %vm2663_vm10, %v2650_v11 }
 0x73e   :  { %v2516_v46 = vadd.f32 %v2515_v17, %v2402_v51  ;;  %v2950_v37 = vsel %vm2885_vm8, %v2814_v47, %v2918_v43  ;;  %v6283_v17 = vstv %s3781_s22 }
 0x73f   :  { %4053 = vmatmul.msk.f32.gmra.mxu1 %vm228_vm0, %v2950_v37 }
 0x740   :  { %v2554_v52 = vadd.f32 %v6032_v0, %v2516_v46 }
 0x742   :  { %v2619_v18 = vmul.f32 %v6034_v56, %v2554_v52  ;;  %v2816_v34 = vpop.f32.mrf.mxu0  ;;  %vm2586_vm9 = vcmp.gt.f32.partialorder %v2554_v52, 0.0 }
 0x743   :  { %v2817_v9 = vadd.f32 %v6162_v38, %v2816_v34 }
 0x744   :  { %v2651_v8 = vsel %vm2586_vm9, %v2554_v52, %v2619_v18  ;;  %v2521_v62 = vpop.f32.mrf.mxu3 }
 0x745   :  { %vm2886_vm11 = vcmp.gt.f32.partialorder %v2817_v9, 0.0  ;;  %v2919_v1 = vmul.f32 %v6165_v45, %v2817_v9  ;;  %v2405_v24 = vpop.f32.mrf.mxu2  ;;  %4038 = vmatmul.msk.f32.gmra.mxu0 %vm2663_vm10, %v2651_v8 }
 0x746   :  { %v2519_v49 = vadd.f32 %v2518_v20, %v2405_v24 }
 0x747   :  { %v2951_v44 = vsel %vm2886_vm11, %v2817_v9, %v2919_v1 }
 0x748   :  { %v2555_v21 = vadd.f32 %v6032_v0, %v2519_v49  ;;  %4054 = vmatmul.msk.f32.gmra.mxu1 %vm228_vm0, %v2951_v44  ;;  %v3509_v49 = vld [vmem:[#allocation8 + $0x50] sm:$0xff] }
 0x749   :  { %3627 = vmatpush.msra.mxu3 %v3509_v49 }
 0x74a   :  { %v2620_v42 = vmul.f32 %v6034_v56, %v2555_v21  ;;  %v2819_v27 = vpop.f32.mrf.mxu0  ;;  %vm2587_vm12 = vcmp.gt.f32.partialorder %v2555_v21, 0.0 }
 0x74b   :  { %v2820_v36 = vadd.f32 %v6162_v38, %v2819_v27 }
 0x74c   :  { %v2652_v12 = vsel %vm2587_vm12, %v2555_v21, %v2620_v42 }
 0x74d   :  { %vm2887_vm13 = vcmp.gt.f32.partialorder %v2820_v36, 0.0  ;;  %v2920_v63 = vmul.f32 %v6165_v45, %v2820_v36  ;;  %v2408_v30 = vpop.f32.mrf.mxu2  ;;  %4039 = vmatmul.msk.f32.gmra.mxu0 %vm2663_vm10, %v2652_v12  ;;  %v3508_v12 = vld [vmem:[#allocation8 + $0x48] sm:$0xff] }
 0x74e   :  { %v2522_v60 = vadd.f32 %v2521_v62, %v2408_v30  ;;  %3628 = vmatpush.msra.mxu3 %v3508_v12 }
 0x74f   :  { %v2952_v4 = vsel %vm2887_vm13, %v2820_v36, %v2920_v63 }
 0x750   :  { %v2556_v48 = vadd.f32 %v6032_v0, %v2522_v60  ;;  %4055 = vmatmul.msk.f32.gmra.mxu1 %vm228_vm0, %v2952_v4 }
 0x752   :  { %v2621_v39 = vmul.f32 %v6034_v56, %v2556_v48  ;;  %v2822_v61 = vpop.f32.mrf.mxu0  ;;  %vm2588_vm14 = vcmp.gt.f32.partialorder %v2556_v48, 0.0 }
 0x753   :  { %v2823_v41 = vadd.f32 %v6162_v38, %v2822_v61 }
 0x754   :  { %v3089_v58 = vpop.f32.mrf.mxu1  ;;  %v2653_v54 = vsel %vm2588_vm14, %v2556_v48, %v2621_v39  ;;  %v3507_v39 = vld [vmem:[#allocation8 + $0x40] sm:$0xff] }
 0x755   :  { %vm2888_vm15 = vcmp.gt.f32.partialorder %v2823_v41, 0.0  ;;  %v2921_v59 = vmul.f32 %v6165_v45, %v2823_v41  ;;  %4040 = vmatmul.msk.f32.gmra.mxu0 %vm2663_vm10, %v2653_v54  ;;  %v3090_v31 = vadd.f32 %v6276_v29, %v3089_v58  ;;  %3629 = vmatpush.msra.mxu3 %v3507_v39 }
 0x757   :  { %v2953_v23 = vsel %vm2888_vm15, %v2823_v41, %v2921_v59  ;;  %v3218_v11 = vmul.f32 %v6283_v17, %v3090_v31  ;;  %vm3185_vm6 = vcmp.gt.f32.partialorder %v3090_v31, 0.0 }
 0x758   :  { %4056 = vmatmul.msk.f32.gmra.mxu1 %vm228_vm0, %v2953_v23 }
 0x759   :  { %v3250_v18 = vsel %vm3185_vm6, %v3090_v31, %v3218_v11  ;;  %vm3538_vm6 = vcmask 1044484  }
 0x75a   :  { %v2825_v7 = vpop.f32.mrf.mxu0  ;;  %v3282_v27 = vsel %vm228_vm0, %v3250_v18, 0.0 }
 0x75b   :  { %v2826_v0 = vadd.f32 %v6162_v38, %v2825_v7  ;;  %v3283_v61 = vrot.slane %v3282_v27, 4 }
 0x75c   :  { %v3092_v10 = vpop.f32.mrf.mxu1 }
 0x75d   :  { %vm2889_vm1 = vcmp.gt.f32.partialorder %v2826_v0, 0.0  ;;  %v2922_v56 = vmul.f32 %v6165_v45, %v2826_v0  ;;  %v3093_v50 = vadd.f32 %v6276_v29, %v3092_v10 }
 0x75f   :  { %v2954_v6 = vsel %vm2889_vm1, %v2826_v0, %v2922_v56  ;;  %v3219_v47 = vmul.f32 %v6283_v17, %v3093_v50  ;;  %vm3186_vm5 = vcmp.gt.f32.partialorder %v3093_v50, 0.0 }
 0x760   :  { %4057 = vmatmul.msk.f32.gmra.mxu1 %vm228_vm0, %v2954_v6 }
 0x761   :  { %v3251_v52 = vsel %vm3186_vm5, %v3093_v50, %v3219_v47  ;;  %vm3536_vm5 = vcmask 1043459  }
 0x762   :  { %v2828_v3 = vpop.f32.mrf.mxu0  ;;  %v3289_v44 = vsel %vm228_vm0, %v3251_v52, 0.0 }
 0x763   :  { %v2829_v13 = vadd.f32 %v6162_v38, %v2828_v3  ;;  %v3290_v60 = vrot.slane %v3289_v44, 4  ;;  %v3284_v3 = vadd.f32 %v3283_v61, %v3282_v27 }
 0x764   :  { %v3095_v16 = vpop.f32.mrf.mxu1 }
 0x765   :  { %vm2890_vm2 = vcmp.gt.f32.partialorder %v2829_v13, 0.0  ;;  %v2923_v14 = vmul.f32 %v6165_v45, %v2829_v13  ;;  %v3096_v26 = vadd.f32 %v6276_v29, %v3095_v16  ;;  %v3291_v10 = vadd.f32 %v3290_v60, %v3289_v44 }
 0x767   :  { %v2955_v40 = vsel %vm2890_vm2, %v2829_v13, %v2923_v14  ;;  %v3220_v43 = vmul.f32 %v6283_v17, %v3096_v26  ;;  %vm3187_vm7 = vcmp.gt.f32.partialorder %v3096_v26, 0.0  ;;  %vm3532_vm2 = vcmask 1041409  }
 0x768   :  { %4058 = vmatmul.msk.f32.gmra.mxu1 %vm228_vm0, %v2955_v40 }
 0x769   :  { %v3252_v34 = vsel %vm3187_vm7, %v3096_v26, %v3220_v43  ;;  %vm3540_vm7 = vcmask 1045509  }
 0x76a   :  { %v2831_v33 = vpop.f32.mrf.mxu0  ;;  %v3296_v36 = vsel %vm228_vm0, %v3252_v34, 0.0 }
 0x76b   :  { %v2832_v57 = vadd.f32 %v6162_v38, %v2831_v33  ;;  %v3297_v41 = vrot.slane %v3296_v36, 4  ;;  %v3292_v33 = vrot.slane %v3291_v10, 2 }
 0x76c   :  { %v3098_v25 = vpop.f32.mrf.mxu1 }
 0x76d   :  { %vm2891_vm3 = vcmp.gt.f32.partialorder %v2832_v57, 0.0  ;;  %v2924_v2 = vmul.f32 %v6165_v45, %v2832_v57  ;;  %v3099_v15 = vadd.f32 %v6276_v29, %v3098_v25  ;;  %v3298_v13 = vadd.f32 %v3297_v41, %v3296_v36 }
 0x76f   :  { %v2956_v53 = vsel %vm2891_vm3, %v2832_v57, %v2924_v2  ;;  %v3221_v46 = vmul.f32 %v6283_v17, %v3099_v15  ;;  %vm3188_vm8 = vcmp.gt.f32.partialorder %v3099_v15, 0.0  ;;  %v3285_v2 = vrot.slane %v3284_v3, 2 }
 0x770   :  { %4059 = vmatmul.msk.f32.gmra.mxu1 %vm228_vm0, %v2956_v53  ;;  %v3299_v53 = vrot.slane %v3298_v13, 2 }
 0x771   :  { %v3253_v1 = vsel %vm3188_vm8, %v3099_v15, %v3221_v46  ;;  %v3286_v43 = vadd.f32 %v3285_v2, %v3284_v3  ;;  %vm3542_vm8 = vcmask 1046534  }
 0x772   :  { %v2834_v28 = vpop.f32.mrf.mxu0  ;;  %v3303_v63 = vsel %vm228_vm0, %v3253_v1, 0.0 }
 0x773   :  { %v2835_v35 = vadd.f32 %v6162_v38, %v2834_v28  ;;  %v3304_v54 = vrot.slane %v3303_v63, 4 }
 0x774   :  { %v3101_v55 = vpop.f32.mrf.mxu1 }
 0x775   :  { %vm2892_vm4 = vcmp.gt.f32.partialorder %v2835_v35, 0.0  ;;  %v2925_v32 = vmul.f32 %v6165_v45, %v2835_v35  ;;  %v3102_v5 = vadd.f32 %v6276_v29, %v3101_v55  ;;  %v3305_v19 = vadd.f32 %v3304_v54, %v3303_v63 }
 0x777   :  { %v2957_v51 = vsel %vm2892_vm4, %v2835_v35, %v2925_v32  ;;  %v3222_v37 = vmul.f32 %v6283_v17, %v3102_v5  ;;  %vm3189_vm9 = vcmp.gt.f32.partialorder %v3102_v5, 0.0  ;;  %v3306_v28 = vrot.slane %v3305_v19, 2 }
 0x778   :  { %4060 = vmatmul.msk.f32.gmra.mxu1 %vm228_vm0, %v2957_v51  ;;  %v3293_v32 = vadd.f32 %v3292_v33, %v3291_v10  ;;  %v3300_v51 = vadd.f32 %v3299_v53, %v3298_v13  ;;  %vm3534_vm4 = vcmask 1042434  }
 0x779   :  { %v3254_v21 = vsel %vm3189_vm9, %v3102_v5, %v3222_v37  ;;  %v3307_v37 = vadd.f32 %v3306_v28, %v3305_v19  ;;  %vm3544_vm9 = vcmask 1047559  }
 0x77a   :  { %v2837_v20 = vpop.f32.mrf.mxu0  ;;  %v3310_v4 = vsel %vm228_vm0, %v3254_v21, 0.0  ;;  %v3287_v21 = vrot.slane %v3286_v43, 1 }
 0x77b   :  { %v2838_v9 = vadd.f32 %v6162_v38, %v2837_v20  ;;  %v3311_v23 = vrot.slane %v3310_v4, 4 }
 0x77c   :  { %v3104_v8 = vpop.f32.mrf.mxu1  ;;  %v3288_v61 = vadd.f32 %v3287_v21, %v3286_v43 }
 0x77d   :  { %v3105_v24 = vadd.f32 %v6276_v29, %v3104_v8  ;;  %vm2893_vm11 = vcmp.gt.f32.partialorder %v2838_v9, 0.0  ;;  %v2926_v42 = vmul.f32 %v6165_v45, %v2838_v9  ;;  %v3312_v14 = vadd.f32 %v3311_v23, %v3310_v4 }
 0x77f   :  { %vm3190_vm12 = vcmp.gt.f32.partialorder %v3105_v24, 0.0  ;;  %v3223_v62 = vmul.f32 %v6283_v17, %v3105_v24  ;;  %v2958_v30 = vsel %vm2893_vm11, %v2838_v9, %v2926_v42  ;;  %v3313_v35 = vrot.slane %v3312_v14, 2 }
 0x780   :  { %4061 = vmatmul.msk.f32.gmra.mxu1 %vm228_vm0, %v2958_v30  ;;  %v3294_v9 = vrot.slane %v3293_v32, 1  ;;  %v3308_v42 = vrot.slane %v3307_v37, 1 }
 0x781   :  { %v3255_v48 = vsel %vm3190_vm12, %v3105_v24, %v3223_v62  ;;  %v3314_v18 = vadd.f32 %v3313_v35, %v3312_v14  ;;  %v3301_v24 = vrot.slane %v3300_v51, 1 }
 0x782   :  { %v3317_v58 = vsel %vm228_vm0, %v3255_v48, 0.0  ;;  %v2840_v59 = vpop.f32.mrf.mxu0  ;;  %v3295_v63 = vadd.f32 %v3294_v9, %v3293_v32  ;;  %v3309_v41 = vadd.f32 %v3308_v42, %v3307_v37 }
 0x783   :  { %v2841_v7 = vadd.f32 %v6162_v38, %v2840_v59  ;;  %v3318_v56 = vrot.slane %v3317_v58, 4  ;;  %v3315_v62 = vrot.slane %v3314_v18, 1  ;;  %v3302_v4 = vadd.f32 %v3301_v24, %v3300_v51 }
 0x784   :  { %v3107_v0 = vpop.f32.mrf.mxu1  ;;  %v3596_v23 = vsel %vm3532_vm2, %v3295_v63, %v3288_v61 }
 0x785   :  { %v3108_v6 = vadd.f32 %v6276_v29, %v3107_v0  ;;  %vm2894_vm13 = vcmp.gt.f32.partialorder %v2841_v7, 0.0  ;;  %v2927_v16 = vmul.f32 %v6165_v45, %v2841_v7  ;;  %v3319_v57 = vadd.f32 %v3318_v56, %v3317_v58 }
 0x786   :  { %v3316_v54 = vadd.f32 %v3315_v62, %v3314_v18  ;;  %v3597_v10 = vsel %vm3534_vm4, %v3302_v4, %v3596_v23 }
 0x787   :  { %vm3191_vm14 = vcmp.gt.f32.partialorder %v3108_v6, 0.0  ;;  %v3224_v22 = vmul.f32 %v6283_v17, %v3108_v6  ;;  %v2959_v40 = vsel %vm2894_vm13, %v2841_v7, %v2927_v16  ;;  %v3320_v5 = vrot.slane %v3319_v57, 2 }
 0x788   :  { %4062 = vmatmul.msk.f32.gmra.mxu1 %vm228_vm0, %v2959_v40 }
 0x789   :  { %v3256_v25 = vsel %vm3191_vm14, %v3108_v6, %v3224_v22  ;;  %v3321_v8 = vadd.f32 %v3320_v5, %v3319_v57  ;;  %v3598_v6 = vsel %vm3536_vm5, %v3309_v41, %v3597_v10 }
 0x78a   :  { %v3324_v50 = vsel %vm228_vm0, %v3256_v25, 0.0  ;;  %v2843_v26 = vpop.f32.mrf.mxu0  ;;  %v3599_v19 = vsel %vm3538_vm6, %v3316_v54, %v3598_v6 }
 0x78b   :  { %v3325_v31 = vrot.slane %v3324_v50, 4  ;;  %v2844_v55 = vadd.f32 %v6162_v38, %v2843_v26  ;;  %v3322_v30 = vrot.slane %v3321_v8, 1  ;;  %v3514_v26 = vld [vmem:[#allocation8 + $0x70] sm:$0xff] }
 0x78c   :  { %v3110_v15 = vpop.f32.mrf.mxu1  ;;  %3570 = vmatpush.msrb.mxu2 %v3514_v26 }
 0x78d   :  { %v3326_v47 = vadd.f32 %v3325_v31, %v3324_v50  ;;  %v3111_v11 = vadd.f32 %v6276_v29, %v3110_v15  ;;  %vm2895_vm15 = vcmp.gt.f32.partialorder %v2844_v55, 0.0  ;;  %v2928_v46 = vmul.f32 %v6165_v45, %v2844_v55 }
 0x78e   :  { %v3323_v7 = vadd.f32 %v3322_v30, %v3321_v8 }
 0x78f   :  { %v3327_v52 = vrot.slane %v3326_v47, 2  ;;  %vm3192_vm1 = vcmp.gt.f32.partialorder %v3111_v11, 0.0  ;;  %v3225_v20 = vmul.f32 %v6283_v17, %v3111_v11  ;;  %v2960_v34 = vsel %vm2895_vm15, %v2844_v55, %v2928_v46 }
 0x790   :  { %4063 = vmatmul.msk.f32.gmra.mxu1 %vm228_vm0, %v2960_v34  ;;  %v3600_v40 = vsel %vm3540_vm7, %v3323_v7, %v3599_v19 }
 0x791   :  { %v3257_v1 = vsel %vm3192_vm1, %v3111_v11, %v3225_v20  ;;  %v3328_v49 = vadd.f32 %v3327_v52, %v3326_v47 }
 0x792   :  { %v3331_v44 = vsel %vm228_vm0, %v3257_v1, 0.0  ;;  %v2846_v36 = vpop.f32.mrf.mxu0 }
 0x793   :  { %v3332_v27 = vrot.slane %v3331_v44, 4  ;;  %v2847_v12 = vadd.f32 %v6162_v38, %v2846_v36  ;;  %v3329_v48 = vrot.slane %v3328_v49, 1 }
 0x795   :  { %v3333_v60 = vadd.f32 %v3332_v27, %v3331_v44  ;;  %vm2896_vm3 = vcmp.gt.f32.partialorder %v2847_v12, 0.0  ;;  %v2929_v39 = vmul.f32 %v6165_v45, %v2847_v12  ;;  %v3330_v56 = vadd.f32 %v3329_v48, %v3328_v49 }
 0x797   :  { %v3334_v58 = vrot.slane %v3333_v60, 2  ;;  %v2961_v59 = vsel %vm2896_vm3, %v2847_v12, %v2929_v39  ;;  %v3601_v57 = vsel %vm3542_vm8, %v3330_v56, %v3600_v40 }
 0x798   :  { %4064 = vmatmul.msk.f32.gmra.mxu1 %vm228_vm0, %v2961_v59 }
 0x799   :  { %v3335_v0 = vadd.f32 %v3334_v58, %v3333_v60 }
 0x79a   :  { %v2849_v13 = vpop.f32.mrf.mxu0 }
 0x79b   :  { %v3336_v3 = vrot.slane %v3335_v0, 1  ;;  %v2850_v16 = vadd.f32 %v6162_v38, %v2849_v13 }
 0x79c   :  { %v3113_v14 = vpop.f32.mrf.mxu1 }
 0x79d   :  { %v3337_v22 = vadd.f32 %v3336_v3, %v3335_v0  ;;  %vm2897_vm11 = vcmp.gt.f32.partialorder %v2850_v16, 0.0  ;;  %v2930_v33 = vmul.f32 %v6165_v45, %v2850_v16  ;;  %v3114_v34 = vadd.f32 %v6276_v29, %v3113_v14 }
 0x79f   :  { %v3602_v25 = vsel %vm3544_vm9, %v3337_v22, %v3601_v57  ;;  %v2962_v2 = vsel %vm2897_vm11, %v2850_v16, %v2930_v33  ;;  %v3226_v42 = vmul.f32 %v6283_v17, %v3114_v34  ;;  %vm3193_vm3 = vcmp.gt.f32.partialorder %v3114_v34, 0.0 }
 0x7a0   :  { %4075 = vmatmul.msk.f32.vlgmr.msra.gmra.mxu3 %vm228_vm0, %v3602_v25  ;;  %4065 = vmatmul.msk.f32.gmra.mxu1 %vm228_vm0, %v2962_v2 }
 0x7a1   :  { %v3258_v60 = vsel %vm3193_vm3, %v3114_v34, %v3226_v42 }
 0x7a2   :  { %v2852_v53 = vpop.f32.mrf.mxu0  ;;  %v3338_v23 = vsel %vm228_vm0, %v3258_v60, 0.0 }
 0x7a3   :  { %v2853_v50 = vadd.f32 %v6162_v38, %v2852_v53  ;;  %v3339_v16 = vrot.slane %v3338_v23, 4 }
 0x7a4   :  { %v3116_v28 = vpop.f32.mrf.mxu1 }
 0x7a5   :  { %vm2898_vm12 = vcmp.gt.f32.partialorder %v2853_v50, 0.0  ;;  %v2931_v31 = vmul.f32 %v6165_v45, %v2853_v50  ;;  %v3117_v18 = vadd.f32 %v6276_v29, %v3116_v28  ;;  %v3340_v28 = vadd.f32 %v3339_v16, %v3338_v23 }
 0x7a7   :  { %v2963_v35 = vsel %vm2898_vm12, %v2853_v50, %v2931_v31  ;;  %v3227_v21 = vmul.f32 %v6283_v17, %v3117_v18  ;;  %vm3194_vm1 = vcmp.gt.f32.partialorder %v3117_v18, 0.0 }
 0x7a8   :  { %4066 = vmatmul.msk.f32.gmra.mxu1 %vm228_vm0, %v2963_v35 }
 0x7a9   :  { %v3259_v30 = vsel %vm3194_vm1, %v3117_v18, %v3227_v21 }
 0x7aa   :  { %v2855_v55 = vpop.f32.mrf.mxu0  ;;  %v3345_v58 = vsel %vm228_vm0, %v3259_v30, 0.0 }
 0x7ab   :  { %v2856_v15 = vadd.f32 %v6162_v38, %v2855_v55  ;;  %v3346_v56 = vrot.slane %v3345_v58, 4 }
 0x7ac   :  { %v3119_v32 = vpop.f32.mrf.mxu1 }
 0x7ad   :  { %vm2899_vm13 = vcmp.gt.f32.partialorder %v2856_v15, 0.0  ;;  %v2932_v5 = vmul.f32 %v6165_v45, %v2856_v15  ;;  %v3120_v9 = vadd.f32 %v6276_v29, %v3119_v32  ;;  %v3347_v2 = vadd.f32 %v3346_v56, %v3345_v58 }
 0x7af   :  { %v2964_v47 = vsel %vm2899_vm13, %v2856_v15, %v2932_v5  ;;  %v3228_v27 = vmul.f32 %v6283_v17, %v3120_v9  ;;  %vm3195_vm11 = vcmp.gt.f32.partialorder %v3120_v9, 0.0  ;;  %v3348_v32 = vrot.slane %v3347_v2, 2 }
 0x7b0   :  { %4067 = vmatmul.msk.f32.gmra.mxu1 %vm228_vm0, %v2964_v47 }
 0x7b1   :  { %v3260_v4 = vsel %vm3195_vm11, %v3120_v9, %v3228_v27 }
 0x7b2   :  { %v2858_v11 = vpop.f32.mrf.mxu0  ;;  %v3352_v7 = vsel %vm228_vm0, %v3260_v4, 0.0 }
 0x7b3   :  { %v2859_v43 = vadd.f32 %v6162_v38, %v2858_v11  ;;  %v3353_v19 = vrot.slane %v3352_v7, 4 }
 0x7b4   :  { %v3122_v46 = vpop.f32.mrf.mxu1 }
 0x7b5   :  { %vm2900_vm14 = vcmp.gt.f32.partialorder %v2859_v43, 0.0  ;;  %v2933_v51 = vmul.f32 %v6165_v45, %v2859_v43  ;;  %v3123_v24 = vadd.f32 %v6276_v29, %v3122_v46  ;;  %v3354_v31 = vadd.f32 %v3353_v19, %v3352_v7 }
 0x7b7   :  { %v2965_v37 = vsel %vm2900_vm14, %v2859_v43, %v2933_v51  ;;  %v3229_v36 = vmul.f32 %v6283_v17, %v3123_v24  ;;  %vm3196_vm12 = vcmp.gt.f32.partialorder %v3123_v24, 0.0  ;;  %v3341_v43 = vrot.slane %v3340_v28, 2 }
 0x7b8   :  { %4068 = vmatmul.msk.f32.gmra.mxu1 %vm228_vm0, %v2965_v37  ;;  %v3355_v51 = vrot.slane %v3354_v31, 2 }
 0x7b9   :  { %v3261_v61 = vsel %vm3196_vm12, %v3123_v24, %v3229_v36 }
 0x7ba   :  { %v2861_v52 = vpop.f32.mrf.mxu0  ;;  %v3359_v10 = vsel %vm228_vm0, %v3261_v61, 0.0  ;;  %v3356_v21 = vadd.f32 %v3355_v51, %v3354_v31  ;;  %v3513_v31 = vld [vmem:[#allocation8 + $0x68] sm:$0xff] }
 0x7bb   :  { %v2862_v20 = vadd.f32 %v6162_v38, %v2861_v52  ;;  %v3360_v40 = vrot.slane %v3359_v10, 4  ;;  %3571 = vmatpush.msrb.mxu2 %v3513_v31 }
 0x7bc   :  { %v3125_v1 = vpop.f32.mrf.mxu1  ;;  %v3357_v30 = vrot.slane %v3356_v21, 1 }
 0x7bd   :  { %vm2901_vm15 = vcmp.gt.f32.partialorder %v2862_v20, 0.0  ;;  %v2934_v8 = vmul.f32 %v6165_v45, %v2862_v20  ;;  %v3126_v49 = vadd.f32 %v6276_v29, %v3125_v1  ;;  %v3361_v35 = vadd.f32 %v3360_v40, %v3359_v10 }
 0x7be   :  { %v3358_v7 = vadd.f32 %v3357_v30, %v3356_v21 }
 0x7bf   :  { %v2966_v44 = vsel %vm2901_vm15, %v2862_v20, %v2934_v8  ;;  %v3230_v12 = vmul.f32 %v6283_v17, %v3126_v49  ;;  %vm3197_vm13 = vcmp.gt.f32.partialorder %v3126_v49, 0.0  ;;  %v3362_v52 = vrot.slane %v3361_v35, 2 }
 0x7c0   :  { %4069 = vmatmul.msk.f32.gmra.mxu1 %vm228_vm0, %v2966_v44  ;;  %v3349_v8 = vadd.f32 %v3348_v32, %v3347_v2  ;;  %v3342_v44 = vadd.f32 %v3341_v43, %v3340_v28 }
 0x7c1   :  { %v3262_v54 = vsel %vm3197_vm13, %v3126_v49, %v3230_v12  ;;  %v3363_v27 = vadd.f32 %v3362_v52, %v3361_v35 }
 0x7c2   :  { %v2864_v62 = vpop.f32.mrf.mxu0  ;;  %v3366_v6 = vsel %vm228_vm0, %v3262_v54, 0.0  ;;  %v3350_v12 = vrot.slane %v3349_v8, 1 }
 0x7c3   :  { %v2865_v63 = vadd.f32 %v6162_v38, %v2864_v62  ;;  %v3367_v33 = vrot.slane %v3366_v6, 4 }
 0x7c4   :  { %v3351_v54 = vadd.f32 %v3350_v12, %v3349_v8 }
 0x7c5   :  { %vm2902_vm14 = vcmp.gt.f32.partialorder %v2865_v63, 0.0  ;;  %v2935_v48 = vmul.f32 %v6165_v45, %v2865_v63  ;;  %v3128_v39 = vpop.f32.mrf.mxu1  ;;  %v3368_v15 = vadd.f32 %v3367_v33, %v3366_v6 }
 0x7c6   :  { %v3129_v41 = vadd.f32 %v6276_v29, %v3128_v39  ;;  %v3364_v39 = vrot.slane %v3363_v27, 1 }
 0x7c7   :  { %v2967_v59 = vsel %vm2902_vm14, %v2865_v63, %v2935_v48  ;;  %v3369_v18 = vrot.slane %v3368_v15, 2  ;;  %v3343_v48 = vrot.slane %v3342_v44, 1 }
 0x7c8   :  { %vm3198_vm15 = vcmp.gt.f32.partialorder %v3129_v41, 0.0  ;;  %v3231_v0 = vmul.f32 %v6283_v17, %v3129_v41  ;;  %4070 = vmatmul.msk.f32.gmra.mxu1 %vm228_vm0, %v2967_v59  ;;  %v3365_v56 = vadd.f32 %v3364_v39, %v3363_v27  ;;  %v3512_v27 = vld [vmem:[#allocation8 + $0x60] sm:$0xff] }
 0x7c9   :  { %v3370_v62 = vadd.f32 %v3369_v18, %v3368_v15  ;;  %v3344_v10 = vadd.f32 %v3343_v48, %v3342_v44  ;;  %3572 = vmatpush.msrb.mxu2 %v3512_v27 }
 0x7ca   :  { %v3263_v3 = vsel %vm3198_vm15, %v3129_v41, %v3231_v0  ;;  %v2867_v13 = vpop.f32.mrf.mxu0 }
 0x7cb   :  { %v3373_v22 = vsel %vm228_vm0, %v3263_v3, 0.0  ;;  %v2868_v14 = vadd.f32 %v6162_v38, %v2867_v13  ;;  %v3371_v41 = vrot.slane %v3370_v62, 1  ;;  %v3603_v13 = vsel %vm3532_vm2, %v3351_v54, %v3344_v10 }
 0x7cc   :  { %v3374_v53 = vrot.slane %v3373_v22, 4 }
 0x7cd   :  { %vm2903_vm1 = vcmp.gt.f32.partialorder %v2868_v14, 0.0  ;;  %v2936_v57 = vmul.f32 %v6165_v45, %v2868_v14  ;;  %v3131_v25 = vpop.f32.mrf.mxu1  ;;  %v3372_v3 = vadd.f32 %v3371_v41, %v3370_v62 }
 0x7ce   :  { %v3132_v50 = vadd.f32 %v6276_v29, %v3131_v25  ;;  %v3375_v5 = vadd.f32 %v3374_v53, %v3373_v22 }
 0x7cf   :  { %v2968_v26 = vsel %vm2903_vm1, %v2868_v14, %v2936_v57  ;;  %v3604_v14 = vsel %vm3534_vm4, %v3358_v7, %v3603_v13 }
 0x7d0   :  { %vm3199_vm3 = vcmp.gt.f32.partialorder %v3132_v50, 0.0  ;;  %v3232_v55 = vmul.f32 %v6283_v17, %v3132_v50  ;;  %4071 = vmatmul.msk.f32.gmra.mxu1 %vm228_vm0, %v2968_v26  ;;  %v3376_v1 = vrot.slane %v3375_v5, 2  ;;  %v3605_v33 = vsel %vm3536_vm5, %v3365_v56, %v3604_v14 }
 0x7d1   :  { %v3606_v25 = vsel %vm3538_vm6, %v3372_v3, %v3605_v33 }
 0x7d2   :  { %v3264_v47 = vsel %vm3199_vm3, %v3132_v50, %v3232_v55  ;;  %v2870_v11 = vpop.f32.mrf.mxu0  ;;  %v3377_v63 = vadd.f32 %v3376_v1, %v3375_v5 }
 0x7d3   :  { %v3380_v46 = vsel %vm228_vm0, %v3264_v47, 0.0  ;;  %v2871_v37 = vadd.f32 %v6162_v38, %v2870_v11 }
 0x7d4   :  { %v3381_v20 = vrot.slane %v3380_v46, 4  ;;  %v3378_v59 = vrot.slane %v3377_v63, 1 }
 0x7d5   :  { %vm2904_vm11 = vcmp.gt.f32.partialorder %v2871_v37, 0.0  ;;  %v2937_v34 = vmul.f32 %v6165_v45, %v2871_v37  ;;  %v3134_v9 = vpop.f32.mrf.mxu1 }
 0x7d6   :  { %v3382_v24 = vadd.f32 %v3381_v20, %v3380_v46  ;;  %v3135_v49 = vadd.f32 %v6276_v29, %v3134_v9  ;;  %v3379_v16 = vadd.f32 %v3378_v59, %v3377_v63 }
 0x7d7   :  { %v2969_v42 = vsel %vm2904_vm11, %v2871_v37, %v2937_v34 }
 0x7d8   :  { %v3383_v36 = vrot.slane %v3382_v24, 2  ;;  %vm3200_vm12 = vcmp.gt.f32.partialorder %v3135_v49, 0.0  ;;  %v3233_v38 = vmul.f32 %v6283_v17, %v3135_v49  ;;  %4072 = vmatmul.msk.f32.gmra.mxu1 %vm228_vm0, %v2969_v42  ;;  %v3607_v53 = vsel %vm3540_vm7, %v3379_v16, %v3606_v25 }
 0x7da   :  { %v3265_v45 = vsel %vm3200_vm12, %v3135_v49, %v3233_v38  ;;  %v3384_v60 = vadd.f32 %v3383_v36, %v3382_v24 }
 0x7db   :  { %v3387_v4 = vsel %vm228_vm0, %v3265_v45, 0.0 }
 0x7dc   :  { %v3388_v61 = vrot.slane %v3387_v4, 4  ;;  %v3385_v0 = vrot.slane %v3384_v60, 1 }
 0x7dd   :  { %v3137_v58 = vpop.f32.mrf.mxu1 }
 0x7de   :  { %v3389_v23 = vadd.f32 %v3388_v61, %v3387_v4  ;;  %v3386_v22 = vadd.f32 %v3385_v0, %v3384_v60  ;;  %v3138_v15 = vadd.f32 %v6276_v29, %v3137_v58 }
 0x7e0   :  { %v3390_v6 = vrot.slane %v3389_v23, 2  ;;  %v3608_v50 = vsel %vm3542_vm8, %v3386_v22, %v3607_v53  ;;  %v3234_v51 = vmul.f32 %v6283_v17, %v3138_v15  ;;  %vm3201_vm14 = vcmp.gt.f32.partialorder %v3138_v15, 0.0 }
 0x7e2   :  { %v3391_v19 = vadd.f32 %v3390_v6, %v3389_v23  ;;  %v3266_v18 = vsel %vm3201_vm14, %v3138_v15, %v3234_v51 }
 0x7e3   :  { %v3394_v44 = vsel %vm228_vm0, %v3266_v18, 0.0 }
 0x7e4   :  { %v3392_v40 = vrot.slane %v3391_v19, 1  ;;  %v3395_v63 = vrot.slane %v3394_v44, 4 }
 0x7e5   :  { %v3140_v57 = vpop.f32.mrf.mxu1 }
 0x7e6   :  { %v3393_v2 = vadd.f32 %v3392_v40, %v3391_v19  ;;  %v3141_v55 = vadd.f32 %v6276_v29, %v3140_v57  ;;  %v3396_v58 = vadd.f32 %v3395_v63, %v3394_v44 }
 0x7e8   :  { %v3609_v28 = vsel %vm3544_vm9, %v3393_v2, %v3608_v50  ;;  %v3235_v43 = vmul.f32 %v6283_v17, %v3141_v55  ;;  %vm3202_vm13 = vcmp.gt.f32.partialorder %v3141_v55, 0.0  ;;  %v3397_v6 = vrot.slane %v3396_v58, 2 }
 0x7e9   :  { %4076 = vmatmul.msk.f32.gmra.mxu3 %vm228_vm0, %v3609_v28 }
 0x7ea   :  { %v3267_v20 = vsel %vm3202_vm13, %v3141_v55, %v3235_v43  ;;  %v3398_v2 = vadd.f32 %v3397_v6, %v3396_v58 }
 0x7eb   :  { %v3401_v24 = vsel %vm228_vm0, %v3267_v20, 0.0 }
 0x7ec   :  { %v3402_v38 = vrot.slane %v3401_v24, 4 }
 0x7ed   :  { %v3143_v26 = vpop.f32.mrf.mxu1 }
 0x7ee   :  { %v3144_v32 = vadd.f32 %v6276_v29, %v3143_v26  ;;  %v3403_v39 = vadd.f32 %v3402_v38, %v3401_v24 }
 0x7f0   :  { %v3236_v46 = vmul.f32 %v6283_v17, %v3144_v32  ;;  %vm3203_vm15 = vcmp.gt.f32.partialorder %v3144_v32, 0.0  ;;  %v3404_v0 = vrot.slane %v3403_v39, 2 }
 0x7f2   :  { %v3268_v34 = vsel %vm3203_vm15, %v3144_v32, %v3236_v46  ;;  %v3405_v40 = vadd.f32 %v3404_v0, %v3403_v39 }
 0x7f3   :  { %v3408_v21 = vsel %vm228_vm0, %v3268_v34, 0.0 }
 0x7f4   :  { %v3409_v45 = vrot.slane %v3408_v21, 4 }
 0x7f5   :  { %v3146_v35 = vpop.f32.mrf.mxu1 }
 0x7f6   :  { %v3147_v47 = vadd.f32 %v6276_v29, %v3146_v35  ;;  %v3410_v54 = vadd.f32 %v3409_v45, %v3408_v21  ;;  %v3406_v35 = vrot.slane %v3405_v40, 1 }
 0x7f8   :  { %v3237_v37 = vmul.f32 %v6283_v17, %v3147_v47  ;;  %vm3204_vm1 = vcmp.gt.f32.partialorder %v3147_v47, 0.0  ;;  %v3411_v3 = vrot.slane %v3410_v54, 2 }
 0x7fa   :  { %v3269_v8 = vsel %vm3204_vm1, %v3147_v47, %v3237_v37  ;;  %v3412_v53 = vadd.f32 %v3411_v3, %v3410_v54 }
 0x7fb   :  { %v3415_v36 = vsel %vm228_vm0, %v3269_v8, 0.0 }
 0x7fc   :  { %v3416_v60 = vrot.slane %v3415_v36, 4  ;;  %v3413_v32 = vrot.slane %v3412_v53, 1 }
 0x7fd   :  { %v3149_v5 = vpop.f32.mrf.mxu1 }
 0x7fe   :  { %v3150_v11 = vadd.f32 %v6276_v29, %v3149_v5  ;;  %v3417_v59 = vadd.f32 %v3416_v60, %v3415_v36  ;;  %v3414_v34 = vadd.f32 %v3413_v32, %v3412_v53  ;;  %v4084_v32 = vld [vmem:[%s6514_s6 + $0x78] sm:$0xff] }
 0x7ff   :  { %3671 = vmatpush.msra.mxu2 %v4084_v32 }
 0x800   :  { %v3238_v52 = vmul.f32 %v6283_v17, %v3150_v11  ;;  %vm3205_vm3 = vcmp.gt.f32.partialorder %v3150_v11, 0.0  ;;  %v3418_v16 = vrot.slane %v3417_v59, 2 }
 0x802   :  { %v3270_v49 = vsel %vm3205_vm3, %v3150_v11, %v3238_v52  ;;  %v3419_v50 = vadd.f32 %v3418_v16, %v3417_v59  ;;  %v3399_v11 = vrot.slane %v3398_v2, 1  ;;  %v3407_v52 = vadd.f32 %v3406_v35, %v3405_v40 }
 0x803   :  { %v3422_v62 = vsel %vm228_vm0, %v3270_v49, 0.0 }
 0x804   :  { %v3423_v4 = vrot.slane %v3422_v62, 4  ;;  %v3420_v43 = vrot.slane %v3419_v50, 1  ;;  %v3400_v8 = vadd.f32 %v3399_v11, %v3398_v2 }
 0x805   :  { %v3152_v9 = vpop.f32.mrf.mxu1 }
 0x806   :  { %v3153_v1 = vadd.f32 %v6276_v29, %v3152_v9  ;;  %v3424_v7 = vadd.f32 %v3423_v4, %v3422_v62  ;;  %v3533_v44 = vsel %vm3532_vm2, %v3407_v52, %v3400_v8 }
 0x807   :  { %v3535_v27 = vsel %vm3534_vm4, %v3414_v34, %v3533_v44 }
 0x808   :  { %vm3206_vm11 = vcmp.gt.f32.partialorder %v3153_v1, 0.0  ;;  %v3239_v42 = vmul.f32 %v6283_v17, %v3153_v1  ;;  %v3425_v22 = vrot.slane %v3424_v7, 2 }
 0x80a   :  { %v3271_v12 = vsel %vm3206_vm11, %v3153_v1, %v3239_v42  ;;  %v3426_v26 = vadd.f32 %v3425_v22, %v3424_v7  ;;  %v3421_v1 = vadd.f32 %v3420_v43, %v3419_v50 }
 0x80b   :  { %v3429_v30 = vsel %vm228_vm0, %v3271_v12, 0.0 }
 0x80c   :  { %v3430_v61 = vrot.slane %v3429_v30, 4  ;;  %v3427_v46 = vrot.slane %v3426_v26, 1  ;;  %v3537_v38 = vsel %vm3536_vm5, %v3421_v1, %v3535_v27 }
 0x80d   :  { %v3155_v48 = vpop.f32.mrf.mxu1 }
 0x80e   :  { %v3156_v41 = vadd.f32 %v6276_v29, %v3155_v48  ;;  %v3431_v10 = vadd.f32 %v3430_v61, %v3429_v30  ;;  %v3428_v49 = vadd.f32 %v3427_v46, %v3426_v26 }
 0x810   :  { %vm3207_vm12 = vcmp.gt.f32.partialorder %v3156_v41, 0.0  ;;  %v3240_v23 = vmul.f32 %v6283_v17, %v3156_v41  ;;  %v3432_v33 = vrot.slane %v3431_v10, 2  ;;  %v3539_v63 = vsel %vm3538_vm6, %v3428_v49, %v3537_v38 }
 0x812   :  { %v3272_v56 = vsel %vm3207_vm12, %v3156_v41, %v3240_v23  ;;  %v3433_v55 = vadd.f32 %v3432_v33, %v3431_v10 }
 0x813   :  { %v3436_v13 = vsel %vm228_vm0, %v3272_v56, 0.0 }
 0x814   :  { %v3437_v19 = vrot.slane %v3436_v13, 4  ;;  %v3434_v20 = vrot.slane %v3433_v55, 1 }
 0x815   :  { %v3158_v14 = vpop.f32.mrf.mxu1 }
 0x816   :  { %v3438_v57 = vadd.f32 %v3437_v19, %v3436_v13  ;;  %v3159_v25 = vadd.f32 %v6276_v29, %v3158_v14  ;;  %v3435_v21 = vadd.f32 %v3434_v20, %v3433_v55 }
 0x818   :  { %v3439_v28 = vrot.slane %v3438_v57, 2  ;;  %vm3208_vm13 = vcmp.gt.f32.partialorder %v3159_v25, 0.0  ;;  %v3241_v31 = vmul.f32 %v6283_v17, %v3159_v25  ;;  %v3541_v30 = vsel %vm3540_vm7, %v3435_v21, %v3539_v63 }
 0x81a   :  { %v3273_v15 = vsel %vm3208_vm13, %v3159_v25, %v3241_v31  ;;  %v3440_v5 = vadd.f32 %v3439_v28, %v3438_v57 }
 0x81b   :  { %v3443_v47 = vsel %vm228_vm0, %v3273_v15, 0.0 }
 0x81c   :  { %v3444_v51 = vrot.slane %v3443_v47, 4  ;;  %v3441_v9 = vrot.slane %v3440_v5, 1 }
 0x81d   :  { %v3161_v37 = vpop.f32.mrf.mxu1 }
 0x81e   :  { %v3445_v18 = vadd.f32 %v3444_v51, %v3443_v47  ;;  %v3442_v36 = vadd.f32 %v3441_v9, %v3440_v5  ;;  %v3162_v41 = vadd.f32 %v6276_v29, %v3161_v37  ;;  %v4083_v5 = vld [vmem:[%s6514_s6 + $0x70] sm:$0xff]  ;;  %v4082_v37 = vld [vmem:[%s6514_s6 + $0x68] sm:$0xff]  ;;  %v4081_v9 = vld [vmem:[%s6514_s6 + $0x60] sm:$0xff] }
 0x81f   :  { %3672 = vmatpush.msra.mxu2 %v4083_v5  ;;  %v4080_v5 = vld [vmem:[%s6514_s6 + $0x58] sm:$0xff] }
 0x820   :  { %v3446_v24 = vrot.slane %v3445_v18, 2  ;;  %v3543_v60 = vsel %vm3542_vm8, %v3442_v36, %v3541_v30  ;;  %v3242_v0 = vmul.f32 %v6283_v17, %v3162_v41  ;;  %vm3209_vm15 = vcmp.gt.f32.partialorder %v3162_v41, 0.0 }
 0x821   :  { %3673 = vmatpush.msra.mxu2 %v4082_v37 }
 0x822   :  { %v3447_v42 = vadd.f32 %v3446_v24, %v3445_v18  ;;  %v3274_v13 = vsel %vm3209_vm15, %v3162_v41, %v3242_v0 }
 0x823   :  { %v3450_v57 = vsel %vm228_vm0, %v3274_v13, 0.0  ;;  %3674 = vmatpush.msra.mxu2 %v4081_v9 }
 0x824   :  { %v3448_v62 = vrot.slane %v3447_v42, 1  ;;  %v3451_v26 = vrot.slane %v3450_v57, 4 }
 0x825   :  { %v3164_v12 = vpop.f32.mrf.mxu1  ;;  %3675 = vmatpush.msra.mxu2 %v4080_v5 }
 0x826   :  { %v3449_v45 = vadd.f32 %v3448_v62, %v3447_v42  ;;  %v3165_v61 = vadd.f32 %v6276_v29, %v3164_v12  ;;  %v3452_v52 = vadd.f32 %v3451_v26, %v3450_v57 }
 0x828   :  { %v3545_v4 = vsel %vm3544_vm9, %v3449_v45, %v3543_v60  ;;  %v3243_v7 = vmul.f32 %v6283_v17, %v3165_v61  ;;  %vm3210_vm14 = vcmp.gt.f32.partialorder %v3165_v61, 0.0  ;;  %v3453_v44 = vrot.slane %v3452_v52, 2 }
 0x829   :  { %4073 = vmatmul.msk.f32.vlgmr.msrb.gmra.mxu2 %vm228_vm0, %v3545_v4 }
 0x82a   :  { %v3275_v3 = vsel %vm3210_vm14, %v3165_v61, %v3243_v7  ;;  %v3454_v60 = vadd.f32 %v3453_v44, %v3452_v52 }
 0x82b   :  { %v3457_v40 = vsel %vm228_vm0, %v3275_v3, 0.0 }
 0x82c   :  { %v3458_v50 = vrot.slane %v3457_v40, 4 }
 0x82d   :  { %v3167_v48 = vpop.f32.mrf.mxu1 }
 0x82e   :  { %v3168_v58 = vadd.f32 %v6276_v29, %v3167_v48  ;;  %v3459_v43 = vadd.f32 %v3458_v50, %v3457_v40 }
 0x830   :  { %v3244_v10 = vmul.f32 %v6283_v17, %v3168_v58  ;;  %vm3211_vm1 = vcmp.gt.f32.partialorder %v3168_v58, 0.0  ;;  %v3460_v1 = vrot.slane %v3459_v43, 2 }
 0x832   :  { %v3276_v16 = vsel %vm3211_vm1, %v3168_v58, %v3244_v10  ;;  %v3461_v12 = vadd.f32 %v3460_v1, %v3459_v43  ;;  %v3455_v10 = vrot.slane %v3454_v60, 1  ;;  %v4077_v43 = vld [vmem:[%s6514_s6 + $0x40] sm:$0xff] }
 0x833   :  { %v3464_v25 = vsel %vm228_vm0, %v3276_v16, 0.0 }
 0x834   :  { %v3465_v35 = vrot.slane %v3464_v25, 4  ;;  %v3462_v58 = vrot.slane %v3461_v12, 1 }
 0x835   :  { %v3170_v39 = vpop.f32.mrf.mxu1 }
 0x836   :  { %v3171_v59 = vadd.f32 %v6276_v29, %v3170_v39  ;;  %v3466_v20 = vadd.f32 %v3465_v35, %v3464_v25 }
 0x838   :  { %v3245_v56 = vmul.f32 %v6283_v17, %v3171_v59  ;;  %vm3212_vm3 = vcmp.gt.f32.partialorder %v3171_v59, 0.0  ;;  %v3467_v21 = vrot.slane %v3466_v20, 2 }
 0x83a   :  { %v3277_v22 = vsel %vm3212_vm3, %v3171_v59, %v3245_v56  ;;  %v3468_v4 = vadd.f32 %v3467_v21, %v3466_v20  ;;  %v3642_v20 = vstv %s3782_s17 }
 0x83b   :  { %v3471_v53 = vsel %vm228_vm0, %v3277_v22, 0.0 }
 0x83c   :  { %v3472_v15 = vrot.slane %v3471_v53, 4 }
 0x83d   :  { %v3173_v54 = vpop.f32.mrf.mxu1 }
 0x83e   :  { %v3174_v23 = vadd.f32 %v6276_v29, %v3173_v54  ;;  %v3473_v18 = vadd.f32 %v3472_v15, %v3471_v53 }
 0x840   :  { %v3246_v6 = vmul.f32 %v6283_v17, %v3174_v23  ;;  %vm3213_vm11 = vcmp.gt.f32.partialorder %v3174_v23, 0.0  ;;  %v3474_v27 = vrot.slane %v3473_v18, 2 }
 0x842   :  { %v3278_v33 = vsel %vm3213_vm11, %v3174_v23, %v3246_v6  ;;  %v3475_v48 = vadd.f32 %v3474_v27, %v3473_v18  ;;  %v3469_v23 = vrot.slane %v3468_v4, 1  ;;  %v3696_v27 = vld [vmem:[#allocation6 + $0x70] sm:$0xff] }
 0x843   :  { %v3478_v28 = vsel %vm228_vm0, %v3278_v33, 0.0 }
 0x844   :  { %v3479_v47 = vrot.slane %v3478_v28, 4  ;;  %v3476_v56 = vrot.slane %v3475_v48, 1 }
 0x845   :  { %v3176_v19 = vpop.f32.mrf.mxu1 }
 0x846   :  { %v3177_v14 = vadd.f32 %v6276_v29, %v3176_v19  ;;  %v3480_v8 = vadd.f32 %v3479_v47, %v3478_v28  ;;  %v3470_v19 = vadd.f32 %v3469_v23, %v3468_v4  ;;  %v3477_v40 = vadd.f32 %v3476_v56, %v3475_v48  ;;  %v4079_v47 = vld [vmem:[%s6514_s6 + $0x50] sm:$0xff]  ;;  %v3738_v4 = vld [vmem:[%s6515_s7 + $0x18] sm:$0xff]  ;;  %v4131_v23 = vld [vmem:[%s6516_s8 + $0x7] ss:$0 sm:$0xff] }
 0x847   :  { %3676 = vmatpush.msra.mxu2 %v4079_v47 }
 0x848   :  { %vm3214_vm12 = vcmp.gt.f32.partialorder %v3177_v14, 0.0  ;;  %v3247_v2 = vmul.f32 %v6283_v17, %v3177_v14  ;;  %v3481_v38 = vrot.slane %v3480_v8, 2 }
 0x84a   :  { %v3279_v31 = vsel %vm3214_vm12, %v3177_v14, %v3247_v2  ;;  %v3482_v41 = vadd.f32 %v3481_v38, %v3480_v8  ;;  %v3456_v14 = vadd.f32 %v3455_v10, %v3454_v60  ;;  %v3697_v8 = vld [vmem:[#allocation6 + $0x78] sm:$0xff]  ;;  %v3694_v38 = vld [vmem:[#allocation6 + $0x60] sm:$0xff] }
 0x84b   :  { %v3485_v55 = vsel %vm228_vm0, %v3279_v31, 0.0  ;;  %3717 = vmatpush.msrb.mxu3 %v3697_v8 }
 0x84c   :  { %v3486_v51 = vrot.slane %v3485_v55, 4  ;;  %v3483_v3 = vrot.slane %v3482_v41, 1 }
 0x84d   :  { %v3179_v11 = vpop.f32.mrf.mxu1  ;;  %3718 = vmatpush.msrb.mxu3 %v3696_v27 }
 0x84e   :  { %v3180_v46 = vadd.f32 %v6276_v29, %v3179_v11  ;;  %v3487_v24 = vadd.f32 %v3486_v51, %v3485_v55  ;;  %v3484_v33 = vadd.f32 %v3483_v3, %v3482_v41  ;;  %v4078_v11 = vld [vmem:[%s6514_s6 + $0x48] sm:$0xff]  ;;  %v4129_v51 = vld [vmem:[%s6516_s8 + $0x5] ss:$0 sm:$0xff]  ;;  %s3783_s6 = sld [smem:[#allocation2 + $0x4]] }
 0x84f   :  { %3677 = vmatpush.msra.mxu2 %v4078_v11 }
 0x850   :  { %vm3215_vm13 = vcmp.gt.f32.partialorder %v3180_v46, 0.0  ;;  %v3248_v34 = vmul.f32 %v6283_v17, %v3180_v46  ;;  %v3488_v63 = vrot.slane %v3487_v24, 2 }
 0x851   :  { %3678 = vmatpush.msra.mxu2 %v4077_v43 }
 0x852   :  { %v3280_v49 = vsel %vm3215_vm13, %v3180_v46, %v3248_v34  ;;  %v3489_v54 = vadd.f32 %v3488_v63, %v3487_v24  ;;  %v3631_v46 = vpop.f32.mrf.mxu3 }
 0x853   :  { %v3492_v42 = vsel %vm228_vm0, %v3280_v49, 0.0  ;;  %3758 = vmatpush.msrb.mxu2 %v3738_v4 }
 0x854   :  { %v3493_v36 = vrot.slane %v3492_v42, 4  ;;  %v3490_v13 = vrot.slane %v3489_v54, 1  ;;  %v3688_v63 = vstv %s3783_s6 }
 0x855   :  { %v3182_v62 = vpop.f32.mrf.mxu1 }
 0x856   :  { %v3494_v45 = vadd.f32 %v3493_v36, %v3492_v42  ;;  %v3183_v30 = vadd.f32 %v6276_v29, %v3182_v62  ;;  %v3463_v29 = vadd.f32 %v3462_v58, %v3461_v12  ;;  %v3491_v25 = vadd.f32 %v3490_v13, %v3489_v54  ;;  %v3695_v36 = vld [vmem:[#allocation6 + $0x68] sm:$0xff]  ;;  %v4130_v62 = vld [vmem:[%s6516_s8 + $0x6] ss:$0 sm:$0xff]  ;;  %v3737_v58 = vld [vmem:[%s6515_s7 + $0x10] sm:$0xff] }
 0x857   :  { %3719 = vmatpush.msrb.mxu3 %v3695_v36  ;;  %3759 = vmatpush.msrb.mxu2 %v3737_v58  ;;  %v3736_v54 = vld [vmem:[%s6515_s7 + $0x8] sm:$0xff] }
 0x858   :  { %v3495_v39 = vrot.slane %v3494_v45, 2  ;;  %vm3216_vm14 = vcmp.gt.f32.partialorder %v3183_v30, 0.0  ;;  %v3249_v61 = vmul.f32 %v6283_v17, %v3183_v30  ;;  %v3546_v57 = vsel %vm3532_vm2, %v3463_v29, %v3456_v14 }
 0x859   :  { %v3547_v50 = vsel %vm3534_vm4, %v3470_v19, %v3546_v57  ;;  %3720 = vmatpush.msrb.mxu3 %v3694_v38  ;;  %3760 = vmatpush.msrb.mxu2 %v3736_v54  ;;  %v4132_v19 = vld [vmem:[%s6516_s8 + $0x8] ss:$0 sm:$0xff] }
 0x85a   :  { %v3281_v59 = vsel %vm3216_vm14, %v3183_v30, %v3249_v61  ;;  %v3496_v7 = vadd.f32 %v3495_v39, %v3494_v45  ;;  %v3548_v31 = vsel %vm3536_vm5, %v3477_v40, %v3547_v50 }
 0x85b   :  { %v3499_v0 = vsel %vm228_vm0, %v3281_v59, 0.0  ;;  %v3549_v26 = vsel %vm3538_vm6, %v3484_v33, %v3548_v31  ;;  %v3735_v59 = vld [vmem:[%s6515_s7] sm:$0xff] }
 0x85c   :  { %v3500_v6 = vrot.slane %v3499_v0, 4  ;;  %v3497_v22 = vrot.slane %v3496_v7, 1  ;;  %v3550_v55 = vsel %vm3540_vm7, %v3491_v25, %v3549_v26  ;;  %3761 = vmatpush.msrb.mxu2 %v3735_v59 }
 0x85e   :  { %v3501_v16 = vadd.f32 %v3500_v6, %v3499_v0  ;;  %v3498_v53 = vadd.f32 %v3497_v22, %v3496_v7  ;;  %v3730_v0 = vstv %s3784_s26 }
 0x860   :  { %v3502_v17 = vrot.slane %v3501_v16, 2  ;;  %v3551_v15 = vsel %vm3542_vm8, %v3498_v53, %v3550_v55  ;;  %vm3769_vm8 = vcmask 23552  }
 0x862   :  { %v3503_v2 = vadd.f32 %v3502_v17, %v3501_v16 }
 0x864   :  { %v3504_v28 = vrot.slane %v3503_v2, 1 }
 0x866   :  { %v3505_v35 = vadd.f32 %v3504_v28, %v3503_v2 }
 0x868   :  { %v3552_v32 = vsel %vm3544_vm9, %v3505_v35, %v3551_v15 }
 0x869   :  { %4074 = vmatmul.msk.f32.gmra.mxu2 %vm228_vm0, %v3552_v32 }
 0x86c   :  { %v3634_v1 = vpop.f32.mrf.mxu3 }
 0x8ac   :  { %v3574_v37 = vpop.f32.mrf.mxu2 }
 0x8ad   :  { %v3632_v52 = vadd.f32 %v3631_v46, %v3574_v37 }
 0x8af   :  { %v3638_v18 = vadd.f32 %v4129_v51, %v3632_v52 }
 0x8b1   :  { %vm3640_vm2 = vcmp.gt.f32.partialorder %v3638_v18, 0.0  ;;  %v3643_v34 = vmul.f32 %v3642_v20, %v3638_v18 }
 0x8b3   :  { %v3645_v9 = vsel %vm3640_vm2, %v3638_v18, %v3643_v34 }
 0x8b4   :  { %4085 = vmatmul.msk.f32.vlgmr.msra.gmra.mxu2 %vm2663_vm10, %v3645_v9 }
 0x8ec   :  { %v3577_v24 = vpop.f32.mrf.mxu2 }
 0x8ed   :  { %v3635_v49 = vadd.f32 %v3634_v1, %v3577_v24 }
 0x8ef   :  { %v3639_v44 = vadd.f32 %v4129_v51, %v3635_v49 }
 0x8f1   :  { %v3644_v21 = vmul.f32 %v3642_v20, %v3639_v44  ;;  %vm3641_vm4 = vcmp.gt.f32.partialorder %v3639_v44, 0.0 }
 0x8f3   :  { %v3646_v42 = vsel %vm3641_vm4, %v3639_v44, %v3644_v21 }
 0x8f4   :  { %4086 = vmatmul.msk.f32.gmra.mxu2 %vm2663_vm10, %v3646_v42 }
 0x937   :  { %v3680_v12 = vpop.f32.mrf.mxu2 }
 0x938   :  { %v3681_v45 = vadd.f32 %v4130_v62, %v3680_v12 }
 0x93a   :  { %vm3686_vm5 = vcmp.gt.f32.partialorder %v3681_v45, 0.0  ;;  %v3689_v30 = vmul.f32 %v3688_v63, %v3681_v45 }
 0x93c   :  { %v3691_v60 = vsel %vm3686_vm5, %v3681_v45, %v3689_v30 }
 0x93d   :  { %4087 = vmatmul.msk.f32.vlgmr.msrb.gmra.mxu3 %vm228_vm0, %v3691_v60 }
 0x977   :  { %v3683_v48 = vpop.f32.mrf.mxu2 }
 0x978   :  { %v3684_v39 = vadd.f32 %v4130_v62, %v3683_v48 }
 0x97a   :  { %vm3687_vm10 = vcmp.gt.f32.partialorder %v3684_v39, 0.0  ;;  %v3690_v61 = vmul.f32 %v3688_v63, %v3684_v39 }
 0x97c   :  { %v3692_v41 = vsel %vm3687_vm10, %v3684_v39, %v3690_v61 }
 0x97d   :  { %4088 = vmatmul.msk.f32.gmra.mxu3 %vm228_vm0, %v3692_v41 }
 0x9c0   :  { %v3722_v7 = vpop.f32.mrf.mxu3 }
 0x9c1   :  { %v3723_v10 = vadd.f32 %v4131_v23, %v3722_v7 }
 0x9c3   :  { %vm3728_vm6 = vcmp.gt.f32.partialorder %v3723_v10, 0.0  ;;  %v3731_v56 = vmul.f32 %v3730_v0, %v3723_v10 }
 0x9c5   :  { %v3733_v6 = vsel %vm3728_vm6, %v3723_v10, %v3731_v56 }
 0x9c6   :  { %4089 = vmatmul.msk.f32.vlgmr.msrb.gmra.mxu2 %vm228_vm0, %v3733_v6 }
 0xa00   :  { %v3725_v3 = vpop.f32.mrf.mxu3 }
 0xa01   :  { %v3726_v29 = vadd.f32 %v4131_v23, %v3725_v3 }
 0xa03   :  { %vm3729_vm7 = vcmp.gt.f32.partialorder %v3726_v29, 0.0  ;;  %v3732_v13 = vmul.f32 %v3730_v0, %v3726_v29 }
 0xa05   :  { %v3734_v16 = vsel %vm3729_vm7, %v3726_v29, %v3732_v13 }
 0xa06   :  { %4090 = vmatmul.msk.f32.gmra.mxu2 %vm228_vm0, %v3734_v16 }
 0xa49   :  { %v3763_v22 = vpop.f32.mrf.mxu2 }
 0xa4a   :  { %v3764_v14 = vadd.f32 %v4132_v19, %v3763_v22 }
 0xa4c   :  { %3770 = vst.msk [vmem:[%s6518_s10] sm:$0xff] %vm3769_vm8, %v3764_v14 }
 0xa89   :  { %v3766_v40 = vpop.f32.mrf.mxu2 }
 0xa8a   :  { %v3767_v17 = vadd.f32 %v4132_v19, %v3766_v40 }
 0xa8c   :  { %3771 = vst.msk [vmem:[%s6518_s10 + $0x8] sm:$0xff] %vm3769_vm8, %v3767_v17 }
 0xa8d   :  { %3776 = vsyncpa [#allocation3], 1 }
 0xa8e   :  { %3777 = vsyncpa [#allocation7], 1 }
 0xa8f   :  { %3778 = vsyncpa [#allocation10], 1 }
 0xa90   :  { %3779 = vsyncpa [#allocation4], 1 }

</bundles_post_ra>
